<compile_context>
chip_gen: v7x
topology: tpu7x:2x2x1
jax: 0.10.0
libtpu: 0.0.40
codegen_flags: <defaults>
</compile_context>

<pallas_src>
import jax
import jax.numpy as jnp
import numpy as np
from jax.experimental import pallas as pl
from jax.experimental.pallas import tpu as pltpu


# ---------------------------------------------------------------------------
# Fused forward kernel: conv1+pool -> conv2+pool -> conv3+pool -> FC1 -> FC2
# One grid step = one batch element.  All activations stay in VMEM.
# ---------------------------------------------------------------------------
def fused_forward_kernel(x_ref, w1_ref, b1_ref, w2_ref, b2_ref, w3_ref, b3_ref,
                         wa1_ref, ba1_ref, wa2_ref, ba2_ref, o_ref,
                         xp1, xp2, xp3, pt1, pt2, pt3):
    K = w1_ref.shape[0]
    pad = (K - 1) // 2

    def conv_pool(x_val, xp_ref, pt_ref, w_ref, b_ref):
        """x_val: (H, W, Cin) unpadded activation.  Returns (H//2, W//2, Cout)."""
        H, W, Cin = x_val.shape
        Cout = w_ref.shape[3]
        H2, W2 = H // 2, W // 2

        # Zero-pad into a VMEM scratch (no HBM round-trip of padded tensors).
        xp_ref[...] = jnp.zeros(xp_ref.shape, jnp.float32)
        xp_ref[pad:pad + H, pad:pad + W, :] = x_val

        # Hoist the K*K weight taps (each (Cin, Cout)) out of all loops.
        wk = [[w_ref[dy, dx] for dx in range(K)] for dy in range(K)]

        if W % 8 == 0:
            # Per-tap whole-plane matmul: (H*W, Cin) @ (Cin, Cout), accumulated.
            acc = None
            for dy in range(K):
                for dx in range(K):
                    patch = xp_ref[dy:dy + H, dx:dx + W, :].reshape(H * W, Cin)
                    t = jnp.dot(patch, wk[dy][dx],
                                preferred_element_type=jnp.float32)
                    acc = t if acc is None else acc + t
            rows = [acc[h * W:(h + 1) * W, :] for h in range(H)]
        else:
            # Narrow plane (W not a multiple of 8): per-row matmuls (still tiny).
            rows = []
            for h in range(H):
                racc = None
                for dy in range(K):
                    for dx in range(K):
                        patch = xp_ref[h + dy, dx:dx + W, :]         # (W, Cin)
                        t = jnp.dot(patch, wk[dy][dx],
                                    preferred_element_type=jnp.float32)
                        racc = t if racc is None else racc + t
                rows.append(racc)

        # 2x2 / stride-2 max-pool.  Bias + ReLU are applied AFTER the pool,
        # which is exactly equivalent (per-channel bias, monotone max/ReLU)
        # and does 4x less element-wise work.
        for ho in range(H2):                                          # row pairs
            pt_ref[ho] = jnp.maximum(rows[2 * ho], rows[2 * ho + 1])
        even = pt_ref[:, pl.ds(0, W2, stride=2), :]                   # column pairs
        odd = pt_ref[:, pl.ds(1, W2, stride=2), :]
        pooled = jnp.maximum(even, odd)                               # (H2, W2, Cout)
        return jnp.maximum(pooled + b_ref[...], 0.0)

    a = x_ref[0]                                        # (H, W, Cin)
    a = conv_pool(a, xp1, pt1, w1_ref, b1_ref)          # (H/2, W/2, hidden)
    a = conv_pool(a, xp2, pt2, w2_ref, b2_ref)          # (H/4, W/4, hidden)
    a = conv_pool(a, xp3, pt3, w3_ref, b3_ref)          # (H/8, W/8, hidden)

    # FC head.  wa1_ref has shape (Hf, Wf, hidden, d1) with rows permuted in the
    # wrapper so that  sum_{h,w} a[h, w, :] @ wa1_ref[h, w]  ==  flatten_nchw(a) @ W_a[0].
    Hf, Wf = wa1_ref.shape[0], wa1_ref.shape[1]
    s1 = None
    for h in range(Hf):
        for w in range(Wf):
            t = jnp.dot(a[h, w:w + 1, :], wa1_ref[h, w],
                        preferred_element_type=jnp.float32)
            s1 = t if s1 is None else s1 + t
    s1 = jnp.maximum(s1 + ba1_ref[...], 0.0)                          # (1, d1)
    s2 = jnp.dot(s1, wa2_ref[...],
                 preferred_element_type=jnp.float32) + ba2_ref[...]   # (1, n_classes)
    o_ref[0] = s2.astype(o_ref.dtype)


# ---------------------------------------------------------------------------
# Wrapper: layout prep (NCHW->NHWC input, OIHW->HWIO conv weights, NCHW-flatten
# folded into a row permutation of W_a[0]) + the single fused pallas_call.
# ---------------------------------------------------------------------------
def my_model_forward(images_nchw, params, kernel_size):
    N, C, H, W = images_nchw.shape
    K = kernel_size
    pad = (K - 1) // 2
    hidden = params["W_c"][0].shape[0]
    d1 = params["W_a"][0].shape[1]
    n_classes = params["W_a"][1].shape[1]
    Hf, Wf = H // 8, W // 8                      # spatial size after 3 conv+pool stages

    x_nhwc = jnp.transpose(images_nchw, (0, 2, 3, 1))
    w_hwio = [jnp.transpose(w, (2, 3, 1, 0)) for w in params["W_c"]]   # (K,K,Cin,Cout)
    b_c = [b.reshape(1, -1) for b in params["b_c"]]
    # Fold PyTorch's NCHW .view() flatten into a row permutation of W_a[0]:
    # wa1[h, w, c, k] = W_a0[c*Hf*Wf + h*Wf + w, k]
    wa1 = params["W_a"][0].reshape(hidden, Hf, Wf, d1).transpose(1, 2, 0, 3)
    ba1 = params["b_a"][0].reshape(1, -1)
    wa2 = params["W_a"][1]
    ba2 = params["b_a"][1].reshape(1, -1)

    out = pl.pallas_call(
        fused_forward_kernel,
        out_shape=jax.ShapeDtypeStruct((N, 1, n_classes), jnp.float32),
        grid_spec=pltpu.PrefetchScalarGridSpec(
            num_scalar_prefetch=0,
            grid=(N,),
            in_specs=[
                pl.BlockSpec((1, H, W, C), lambda b: (b, 0, 0, 0)),
                pl.BlockSpec((K, K, C, hidden), lambda b: (0, 0, 0, 0)),
                pl.BlockSpec((1, hidden), lambda b: (0, 0)),
                pl.BlockSpec((K, K, hidden, hidden), lambda b: (0, 0, 0, 0)),
                pl.BlockSpec((1, hidden), lambda b: (0, 0)),
                pl.BlockSpec((K, K, hidden, hidden), lambda b: (0, 0, 0, 0)),
                pl.BlockSpec((1, hidden), lambda b: (0, 0)),
                pl.BlockSpec((Hf, Wf, hidden, d1), lambda b: (0, 0, 0, 0)),
                pl.BlockSpec((1, d1), lambda b: (0, 0)),
                pl.BlockSpec((d1, n_classes), lambda b: (0, 0)),
                pl.BlockSpec((1, n_classes), lambda b: (0, 0)),
            ],
            out_specs=pl.BlockSpec((1, 1, n_classes), lambda b: (b, 0, 0)),
            scratch_shapes=[
                pltpu.VMEM((H + 2 * pad, W + 2 * pad, C), jnp.float32),        # xp1
                pltpu.VMEM((H // 2 + 2 * pad, W // 2 + 2 * pad, hidden), jnp.float32),  # xp2
                pltpu.VMEM((H // 4 + 2 * pad, W // 4 + 2 * pad, hidden), jnp.float32),  # xp3
                pltpu.VMEM((H // 2, W, hidden), jnp.float32),                  # pt1
                pltpu.VMEM((H // 4, W // 2, hidden), jnp.float32),             # pt2
                pltpu.VMEM((H // 8, W // 4, hidden), jnp.float32),             # pt3
            ],
        ),
        compiler_params=pltpu.CompilerParams(dimension_semantics=("parallel",)),
    )(x_nhwc, w_hwio[0], b_c[0], w_hwio[1], b_c[1], w_hwio[2], b_c[2],
      wa1, ba1, wa2, ba2)
    return out.reshape(N, n_classes)


# ---------------------------------------------------------------------------
# Parameter init (mirrors MyModel.__init__ shapes; deterministic, in-script)
# ---------------------------------------------------------------------------
def init_params(key, im_size, hidden_dim, kernel_size, n_classes):
    C, H, W = im_size
    weight_scale = 1e-4
    N_conv, M_fc = 3, 2
    params = {"W_c": [], "b_c": [], "W_a": [], "b_a": []}
    keys = jax.random.split(key, N_conv + M_fc)
    c = C
    for n in range(N_conv):
        params["W_c"].append(weight_scale * jax.random.normal(
            keys[n], (hidden_dim, c, kernel_size, kernel_size), jnp.float32))  # OIHW
        params["b_c"].append(jnp.zeros((hidden_dim,), jnp.float32))
        c = hidden_dim
    d0 = hidden_dim * H * W // 4 ** N_conv
    d1 = 10000 // 10
    params["W_a"].append(weight_scale * jax.random.normal(keys[N_conv], (d0, d1), jnp.float32))
    params["b_a"].append(jnp.zeros((d1,), jnp.float32))
    params["W_a"].append(weight_scale * jax.random.normal(keys[N_conv + 1], (d1, n_classes), jnp.float32))
    params["b_a"].append(jnp.zeros((n_classes,), jnp.float32))
    return params


# ---------------------------------------------------------------------------
# Pure-JAX reference for validation (matches torch semantics exactly).
# ---------------------------------------------------------------------------
def reference_forward(images_nchw, params, kernel_size):
    pad = (kernel_size - 1) // 2
    p = images_nchw
    for w, b in zip(params["W_c"], params["b_c"]):
        c = jax.lax.conv_general_dilated(
            p, w, window_strides=(1, 1), padding=[(pad, pad), (pad, pad)],
            dimension_numbers=("NCHW", "OIHW", "NCHW"),
            precision=jax.lax.Precision.HIGHEST) + b[None, :, None, None]
        r = jnp.maximum(c, 0.0)
        p = jax.lax.reduce_window(r, -jnp.inf, jax.lax.max,
                                  (1, 1, 2, 2), (1, 1, 2, 2), "VALID")
    prev = p.reshape(p.shape[0], -1)
    scores = prev
    for w, b in zip(params["W_a"], params["b_a"]):
        scores = jnp.dot(prev, w, precision=jax.lax.Precision.HIGHEST) + b
        prev = jnp.maximum(scores, 0.0)
    return scores


# TODO(synk): checkpoint()/compare_weights()/level_grads() use torch.save/load and
# .grad inspection; they are training utilities, not part of the forward pass.

if __name__ == "__main__":
    key = jax.random.PRNGKey(0)
    im_size = (3, 16, 16)      # (C, H, W)
    hidden_dim = 16
    kernel_size = 3
    n_classes = 10
    batch = 2

    pkey, xkey = jax.random.split(key)
    params = init_params(pkey, im_size, hidden_dim, kernel_size, n_classes)
    x = jax.random.normal(xkey, (batch,) + im_size, jnp.float32)   # NCHW, like PyTorch

    forward = jax.jit(my_model_forward, static_argnames=("kernel_size",))
    out = forward(x, params, kernel_size=kernel_size)
    out = jax.block_until_ready(out)

    ref = reference_forward(x, params, kernel_size)
    ref = jax.block_until_ready(ref)

    assert out.shape == (batch, n_classes)
    np.testing.assert_allclose(np.asarray(out), np.asarray(ref), rtol=1e-2, atol=1e-18)
    print("KERNEL_OK")
</pallas_src>

<mosaic_0001>
module attributes {stable_mosaic.version = 11 : i64} {
  func.func @fused_forward_kernel(%arg0: i32, %arg1: memref<1x16x16x3xf32, #tpu.memory_space<vmem>>, %arg2: memref<3x3x3x16xf32, #tpu.memory_space<vmem>>, %arg3: memref<1x16xf32, #tpu.memory_space<vmem>>, %arg4: memref<3x3x16x16xf32, #tpu.memory_space<vmem>>, %arg5: memref<1x16xf32, #tpu.memory_space<vmem>>, %arg6: memref<3x3x16x16xf32, #tpu.memory_space<vmem>>, %arg7: memref<1x16xf32, #tpu.memory_space<vmem>>, %arg8: memref<2x2x16x1000xf32, #tpu.memory_space<vmem>>, %arg9: memref<1x1000xf32, #tpu.memory_space<vmem>>, %arg10: memref<1000x10xf32, #tpu.memory_space<vmem>>, %arg11: memref<1x10xf32, #tpu.memory_space<vmem>>, %arg12: memref<1x1x10xf32, #tpu.memory_space<vmem>>, %arg13: memref<18x18x3xf32, #tpu.memory_space<vmem>>, %arg14: memref<10x10x16xf32, #tpu.memory_space<vmem>>, %arg15: memref<6x6x16xf32, #tpu.memory_space<vmem>>, %arg16: memref<8x16x16xf32, #tpu.memory_space<vmem>>, %arg17: memref<4x8x16xf32, #tpu.memory_space<vmem>>, %arg18: memref<2x4x16xf32, #tpu.memory_space<vmem>>) attributes {dimension_semantics = [#tpu.dimension_semantics<parallel>], iteration_bounds = array<i64: 2>, scalar_prefetch = 0 : i64, scratch_operands = 6 : i64, tpu.core_type = #tpu.core_type<tc>, window_params = [{transform_indices = @transform_0, window_bounds = array<i64: 1, 16, 16, 3>}, {pipeline_mode = #tpu.pipeline_mode<synchronous>, transform_indices = @transform_1, window_bounds = array<i64: 3, 3, 3, 16>}, {pipeline_mode = #tpu.pipeline_mode<synchronous>, transform_indices = @transform_2, window_bounds = array<i64: 1, 16>}, {pipeline_mode = #tpu.pipeline_mode<synchronous>, transform_indices = @transform_3, window_bounds = array<i64: 3, 3, 16, 16>}, {pipeline_mode = #tpu.pipeline_mode<synchronous>, transform_indices = @transform_4, window_bounds = array<i64: 1, 16>}, {pipeline_mode = #tpu.pipeline_mode<synchronous>, transform_indices = @transform_5, window_bounds = array<i64: 3, 3, 16, 16>}, {pipeline_mode = #tpu.pipeline_mode<synchronous>, transform_indices = @transform_6, window_bounds = array<i64: 1, 16>}, {pipeline_mode = #tpu.pipeline_mode<synchronous>, transform_indices = @transform_7, window_bounds = array<i64: 2, 2, 16, 1000>}, {pipeline_mode = #tpu.pipeline_mode<synchronous>, transform_indices = @transform_8, window_bounds = array<i64: 1, 1000>}, {pipeline_mode = #tpu.pipeline_mode<synchronous>, transform_indices = @transform_9, window_bounds = array<i64: 1000, 10>}, {pipeline_mode = #tpu.pipeline_mode<synchronous>, transform_indices = @transform_10, window_bounds = array<i64: 1, 10>}, {transform_indices = @transform_11, window_bounds = array<i64: 1, 1, 10>}]} {
    %c0 = arith.constant 0 : index
    %c0_0 = arith.constant 0 : index
    %c0_1 = arith.constant 0 : index
    %c0_2 = arith.constant 0 : index
    %0 = vector.load %arg1[%c0, %c0_0, %c0_1, %c0_2] : memref<1x16x16x3xf32, #tpu.memory_space<vmem>>, vector<1x16x16x3xf32>
    %1 = vector.shape_cast %0 : vector<1x16x16x3xf32> to vector<16x16x3xf32>
    %cst = arith.constant 0.000000e+00 : f32
    %2 = vector.broadcast %cst : f32 to vector<18x18x3xf32>
    %c0_3 = arith.constant 0 : index
    %c0_4 = arith.constant 0 : index
    %c0_5 = arith.constant 0 : index
    %3 = vector.load %arg13[%c0_3, %c0_4, %c0_5] : memref<18x18x3xf32, #tpu.memory_space<vmem>>, vector<18x18x3xf32>
    tpu.vector_store %arg13[%c0_3, %c0_4, %c0_5], %2 {strides = array<i32>} : memref<18x18x3xf32, #tpu.memory_space<vmem>>, vector<18x18x3xf32>,
    %c1 = arith.constant 1 : index
    %c1_6 = arith.constant 1 : index
    %c0_7 = arith.constant 0 : index
    %4 = vector.load %arg13[%c1, %c1_6, %c0_7] : memref<18x18x3xf32, #tpu.memory_space<vmem>>, vector<16x16x3xf32>
    tpu.vector_store %arg13[%c1, %c1_6, %c0_7], %1 {strides = array<i32>} : memref<18x18x3xf32, #tpu.memory_space<vmem>>, vector<16x16x3xf32>,
    %c0_8 = arith.constant 0 : index
    %c0_9 = arith.constant 0 : index
    %c0_10 = arith.constant 0 : index
    %c0_11 = arith.constant 0 : index
    %5 = vector.load %arg2[%c0_8, %c0_9, %c0_10, %c0_11] : memref<3x3x3x16xf32, #tpu.memory_space<vmem>>, vector<1x1x3x16xf32>
    %6 = vector.shape_cast %5 : vector<1x1x3x16xf32> to vector<3x16xf32>
    %c0_12 = arith.constant 0 : index
    %c1_13 = arith.constant 1 : index
    %c0_14 = arith.constant 0 : index
    %c0_15 = arith.constant 0 : index
    %7 = vector.load %arg2[%c0_12, %c1_13, %c0_14, %c0_15] : memref<3x3x3x16xf32, #tpu.memory_space<vmem>>, vector<1x1x3x16xf32>
    %8 = vector.shape_cast %7 : vector<1x1x3x16xf32> to vector<3x16xf32>
    %c0_16 = arith.constant 0 : index
    %c2 = arith.constant 2 : index
    %c0_17 = arith.constant 0 : index
    %c0_18 = arith.constant 0 : index
    %9 = vector.load %arg2[%c0_16, %c2, %c0_17, %c0_18] : memref<3x3x3x16xf32, #tpu.memory_space<vmem>>, vector<1x1x3x16xf32>
    %10 = vector.shape_cast %9 : vector<1x1x3x16xf32> to vector<3x16xf32>
    %c1_19 = arith.constant 1 : index
    %c0_20 = arith.constant 0 : index
    %c0_21 = arith.constant 0 : index
    %c0_22 = arith.constant 0 : index
    %11 = vector.load %arg2[%c1_19, %c0_20, %c0_21, %c0_22] : memref<3x3x3x16xf32, #tpu.memory_space<vmem>>, vector<1x1x3x16xf32>
    %12 = vector.shape_cast %11 : vector<1x1x3x16xf32> to vector<3x16xf32>
    %c1_23 = arith.constant 1 : index
    %c1_24 = arith.constant 1 : index
    %c0_25 = arith.constant 0 : index
    %c0_26 = arith.constant 0 : index
    %13 = vector.load %arg2[%c1_23, %c1_24, %c0_25, %c0_26] : memref<3x3x3x16xf32, #tpu.memory_space<vmem>>, vector<1x1x3x16xf32>
    %14 = vector.shape_cast %13 : vector<1x1x3x16xf32> to vector<3x16xf32>
    %c1_27 = arith.constant 1 : index
    %c2_28 = arith.constant 2 : index
    %c0_29 = arith.constant 0 : index
    %c0_30 = arith.constant 0 : index
    %15 = vector.load %arg2[%c1_27, %c2_28, %c0_29, %c0_30] : memref<3x3x3x16xf32, #tpu.memory_space<vmem>>, vector<1x1x3x16xf32>
    %16 = vector.shape_cast %15 : vector<1x1x3x16xf32> to vector<3x16xf32>
    %c2_31 = arith.constant 2 : index
    %c0_32 = arith.constant 0 : index
    %c0_33 = arith.constant 0 : index
    %c0_34 = arith.constant 0 : index
    %17 = vector.load %arg2[%c2_31, %c0_32, %c0_33, %c0_34] : memref<3x3x3x16xf32, #tpu.memory_space<vmem>>, vector<1x1x3x16xf32>
    %18 = vector.shape_cast %17 : vector<1x1x3x16xf32> to vector<3x16xf32>
    %c2_35 = arith.constant 2 : index
    %c1_36 = arith.constant 1 : index
    %c0_37 = arith.constant 0 : index
    %c0_38 = arith.constant 0 : index
    %19 = vector.load %arg2[%c2_35, %c1_36, %c0_37, %c0_38] : memref<3x3x3x16xf32, #tpu.memory_space<vmem>>, vector<1x1x3x16xf32>
    %20 = vector.shape_cast %19 : vector<1x1x3x16xf32> to vector<3x16xf32>
    %c2_39 = arith.constant 2 : index
    %c2_40 = arith.constant 2 : index
    %c0_41 = arith.constant 0 : index
    %c0_42 = arith.constant 0 : index
    %21 = vector.load %arg2[%c2_39, %c2_40, %c0_41, %c0_42] : memref<3x3x3x16xf32, #tpu.memory_space<vmem>>, vector<1x1x3x16xf32>
    %22 = vector.shape_cast %21 : vector<1x1x3x16xf32> to vector<3x16xf32>
    %c0_43 = arith.constant 0 : index
    %c0_44 = arith.constant 0 : index
    %c0_45 = arith.constant 0 : index
    %23 = vector.load %arg13[%c0_43, %c0_44, %c0_45] : memref<18x18x3xf32, #tpu.memory_space<vmem>>, vector<16x16x3xf32>
    %24 = vector.shape_cast %23 : vector<16x16x3xf32> to vector<256x3xf32>
    %cst_46 = arith.constant dense<0.000000e+00> : vector<256x16xf32>
    %25 = tpu.matmul %24, %6, %cst_46 {dimension_numbers = #tpu.dot_dimension_numbers<[1], [0], [0], [1], [0, 0, 1, 1], [], []>} : vector<256x3xf32>, vector<3x16xf32>, vector<256x16xf32> -> vector<256x16xf32>
    %c0_47 = arith.constant 0 : index
    %c1_48 = arith.constant 1 : index
    %c0_49 = arith.constant 0 : index
    %26 = vector.load %arg13[%c0_47, %c1_48, %c0_49] : memref<18x18x3xf32, #tpu.memory_space<vmem>>, vector<16x16x3xf32>
    %27 = vector.shape_cast %26 : vector<16x16x3xf32> to vector<256x3xf32>
    %cst_50 = arith.constant dense<0.000000e+00> : vector<256x16xf32>
    %28 = tpu.matmul %27, %8, %cst_50 {dimension_numbers = #tpu.dot_dimension_numbers<[1], [0], [0], [1], [0, 0, 1, 1], [], []>} : vector<256x3xf32>, vector<3x16xf32>, vector<256x16xf32> -> vector<256x16xf32>
    %29 = arith.addf %25, %28 : vector<256x16xf32>
    %c0_51 = arith.constant 0 : index
    %c2_52 = arith.constant 2 : index
    %c0_53 = arith.constant 0 : index
    %30 = vector.load %arg13[%c0_51, %c2_52, %c0_53] : memref<18x18x3xf32, #tpu.memory_space<vmem>>, vector<16x16x3xf32>
    %31 = vector.shape_cast %30 : vector<16x16x3xf32> to vector<256x3xf32>
    %cst_54 = arith.constant dense<0.000000e+00> : vector<256x16xf32>
    %32 = tpu.matmul %31, %10, %cst_54 {dimension_numbers = #tpu.dot_dimension_numbers<[1], [0], [0], [1], [0, 0, 1, 1], [], []>} : vector<256x3xf32>, vector<3x16xf32>, vector<256x16xf32> -> vector<256x16xf32>
    %33 = arith.addf %29, %32 : vector<256x16xf32>
    %c1_55 = arith.constant 1 : index
    %c0_56 = arith.constant 0 : index
    %c0_57 = arith.constant 0 : index
    %34 = vector.load %arg13[%c1_55, %c0_56, %c0_57] : memref<18x18x3xf32, #tpu.memory_space<vmem>>, vector<16x16x3xf32>
    %35 = vector.shape_cast %34 : vector<16x16x3xf32> to vector<256x3xf32>
    %cst_58 = arith.constant dense<0.000000e+00> : vector<256x16xf32>
    %36 = tpu.matmul %35, %12, %cst_58 {dimension_numbers = #tpu.dot_dimension_numbers<[1], [0], [0], [1], [0, 0, 1, 1], [], []>} : vector<256x3xf32>, vector<3x16xf32>, vector<256x16xf32> -> vector<256x16xf32>
    %37 = arith.addf %33, %36 : vector<256x16xf32>
    %c1_59 = arith.constant 1 : index
    %c1_60 = arith.constant 1 : index
    %c0_61 = arith.constant 0 : index
    %38 = vector.load %arg13[%c1_59, %c1_60, %c0_61] : memref<18x18x3xf32, #tpu.memory_space<vmem>>, vector<16x16x3xf32>
    %39 = vector.shape_cast %38 : vector<16x16x3xf32> to vector<256x3xf32>
    %cst_62 = arith.constant dense<0.000000e+00> : vector<256x16xf32>
    %40 = tpu.matmul %39, %14, %cst_62 {dimension_numbers = #tpu.dot_dimension_numbers<[1], [0], [0], [1], [0, 0, 1, 1], [], []>} : vector<256x3xf32>, vector<3x16xf32>, vector<256x16xf32> -> vector<256x16xf32>
    %41 = arith.addf %37, %40 : vector<256x16xf32>
    %c1_63 = arith.constant 1 : index
    %c2_64 = arith.constant 2 : index
    %c0_65 = arith.constant 0 : index
    %42 = vector.load %arg13[%c1_63, %c2_64, %c0_65] : memref<18x18x3xf32, #tpu.memory_space<vmem>>, vector<16x16x3xf32>
    %43 = vector.shape_cast %42 : vector<16x16x3xf32> to vector<256x3xf32>
    %cst_66 = arith.constant dense<0.000000e+00> : vector<256x16xf32>
    %44 = tpu.matmul %43, %16, %cst_66 {dimension_numbers = #tpu.dot_dimension_numbers<[1], [0], [0], [1], [0, 0, 1, 1], [], []>} : vector<256x3xf32>, vector<3x16xf32>, vector<256x16xf32> -> vector<256x16xf32>
    %45 = arith.addf %41, %44 : vector<256x16xf32>
    %c2_67 = arith.constant 2 : index
    %c0_68 = arith.constant 0 : index
    %c0_69 = arith.constant 0 : index
    %46 = vector.load %arg13[%c2_67, %c0_68, %c0_69] : memref<18x18x3xf32, #tpu.memory_space<vmem>>, vector<16x16x3xf32>
    %47 = vector.shape_cast %46 : vector<16x16x3xf32> to vector<256x3xf32>
    %cst_70 = arith.constant dense<0.000000e+00> : vector<256x16xf32>
    %48 = tpu.matmul %47, %18, %cst_70 {dimension_numbers = #tpu.dot_dimension_numbers<[1], [0], [0], [1], [0, 0, 1, 1], [], []>} : vector<256x3xf32>, vector<3x16xf32>, vector<256x16xf32> -> vector<256x16xf32>
    %49 = arith.addf %45, %48 : vector<256x16xf32>
    %c2_71 = arith.constant 2 : index
    %c1_72 = arith.constant 1 : index
    %c0_73 = arith.constant 0 : index
    %50 = vector.load %arg13[%c2_71, %c1_72, %c0_73] : memref<18x18x3xf32, #tpu.memory_space<vmem>>, vector<16x16x3xf32>
    %51 = vector.shape_cast %50 : vector<16x16x3xf32> to vector<256x3xf32>
    %cst_74 = arith.constant dense<0.000000e+00> : vector<256x16xf32>
    %52 = tpu.matmul %51, %20, %cst_74 {dimension_numbers = #tpu.dot_dimension_numbers<[1], [0], [0], [1], [0, 0, 1, 1], [], []>} : vector<256x3xf32>, vector<3x16xf32>, vector<256x16xf32> -> vector<256x16xf32>
    %53 = arith.addf %49, %52 : vector<256x16xf32>
    %c2_75 = arith.constant 2 : index
    %c2_76 = arith.constant 2 : index
    %c0_77 = arith.constant 0 : index
    %54 = vector.load %arg13[%c2_75, %c2_76, %c0_77] : memref<18x18x3xf32, #tpu.memory_space<vmem>>, vector<16x16x3xf32>
    %55 = vector.shape_cast %54 : vector<16x16x3xf32> to vector<256x3xf32>
    %cst_78 = arith.constant dense<0.000000e+00> : vector<256x16xf32>
    %56 = tpu.matmul %55, %22, %cst_78 {dimension_numbers = #tpu.dot_dimension_numbers<[1], [0], [0], [1], [0, 0, 1, 1], [], []>} : vector<256x3xf32>, vector<3x16xf32>, vector<256x16xf32> -> vector<256x16xf32>
    %57 = arith.addf %53, %56 : vector<256x16xf32>
    %58 = vector.extract_strided_slice %57 {offsets = [0, 0], sizes = [16, 16], strides = [1, 1]} : vector<256x16xf32> to vector<16x16xf32>
    %59 = vector.extract_strided_slice %57 {offsets = [16, 0], sizes = [16, 16], strides = [1, 1]} : vector<256x16xf32> to vector<16x16xf32>
    %60 = vector.extract_strided_slice %57 {offsets = [32, 0], sizes = [16, 16], strides = [1, 1]} : vector<256x16xf32> to vector<16x16xf32>
    %61 = vector.extract_strided_slice %57 {offsets = [48, 0], sizes = [16, 16], strides = [1, 1]} : vector<256x16xf32> to vector<16x16xf32>
    %62 = vector.extract_strided_slice %57 {offsets = [64, 0], sizes = [16, 16], strides = [1, 1]} : vector<256x16xf32> to vector<16x16xf32>
    %63 = vector.extract_strided_slice %57 {offsets = [80, 0], sizes = [16, 16], strides = [1, 1]} : vector<256x16xf32> to vector<16x16xf32>
    %64 = vector.extract_strided_slice %57 {offsets = [96, 0], sizes = [16, 16], strides = [1, 1]} : vector<256x16xf32> to vector<16x16xf32>
    %65 = vector.extract_strided_slice %57 {offsets = [112, 0], sizes = [16, 16], strides = [1, 1]} : vector<256x16xf32> to vector<16x16xf32>
    %66 = vector.extract_strided_slice %57 {offsets = [128, 0], sizes = [16, 16], strides = [1, 1]} : vector<256x16xf32> to vector<16x16xf32>
    %67 = vector.extract_strided_slice %57 {offsets = [144, 0], sizes = [16, 16], strides = [1, 1]} : vector<256x16xf32> to vector<16x16xf32>
    %68 = vector.extract_strided_slice %57 {offsets = [160, 0], sizes = [16, 16], strides = [1, 1]} : vector<256x16xf32> to vector<16x16xf32>
    %69 = vector.extract_strided_slice %57 {offsets = [176, 0], sizes = [16, 16], strides = [1, 1]} : vector<256x16xf32> to vector<16x16xf32>
    %70 = vector.extract_strided_slice %57 {offsets = [192, 0], sizes = [16, 16], strides = [1, 1]} : vector<256x16xf32> to vector<16x16xf32>
    %71 = vector.extract_strided_slice %57 {offsets = [208, 0], sizes = [16, 16], strides = [1, 1]} : vector<256x16xf32> to vector<16x16xf32>
    %72 = vector.extract_strided_slice %57 {offsets = [224, 0], sizes = [16, 16], strides = [1, 1]} : vector<256x16xf32> to vector<16x16xf32>
    %73 = vector.extract_strided_slice %57 {offsets = [240, 0], sizes = [16, 16], strides = [1, 1]} : vector<256x16xf32> to vector<16x16xf32>
    %74 = arith.maximumf %58, %59 : vector<16x16xf32>
    %c0_79 = arith.constant 0 : index
    %c0_80 = arith.constant 0 : index
    %c0_81 = arith.constant 0 : index
    %75 = vector.load %arg16[%c0_79, %c0_80, %c0_81] : memref<8x16x16xf32, #tpu.memory_space<vmem>>, vector<1x16x16xf32>
    %76 = vector.shape_cast %75 : vector<1x16x16xf32> to vector<16x16xf32>
    %77 = vector.shape_cast %74 : vector<16x16xf32> to vector<1x16x16xf32>
    tpu.vector_store %arg16[%c0_79, %c0_80, %c0_81], %77 {strides = array<i32>} : memref<8x16x16xf32, #tpu.memory_space<vmem>>, vector<1x16x16xf32>,
    %78 = arith.maximumf %60, %61 : vector<16x16xf32>
    %c1_82 = arith.constant 1 : index
    %c0_83 = arith.constant 0 : index
    %c0_84 = arith.constant 0 : index
    %79 = vector.load %arg16[%c1_82, %c0_83, %c0_84] : memref<8x16x16xf32, #tpu.memory_space<vmem>>, vector<1x16x16xf32>
    %80 = vector.shape_cast %79 : vector<1x16x16xf32> to vector<16x16xf32>
    %81 = vector.shape_cast %78 : vector<16x16xf32> to vector<1x16x16xf32>
    tpu.vector_store %arg16[%c1_82, %c0_83, %c0_84], %81 {strides = array<i32>} : memref<8x16x16xf32, #tpu.memory_space<vmem>>, vector<1x16x16xf32>,
    %82 = arith.maximumf %62, %63 : vector<16x16xf32>
    %c2_85 = arith.constant 2 : index
    %c0_86 = arith.constant 0 : index
    %c0_87 = arith.constant 0 : index
    %83 = vector.load %arg16[%c2_85, %c0_86, %c0_87] : memref<8x16x16xf32, #tpu.memory_space<vmem>>, vector<1x16x16xf32>
    %84 = vector.shape_cast %83 : vector<1x16x16xf32> to vector<16x16xf32>
    %85 = vector.shape_cast %82 : vector<16x16xf32> to vector<1x16x16xf32>
    tpu.vector_store %arg16[%c2_85, %c0_86, %c0_87], %85 {strides = array<i32>} : memref<8x16x16xf32, #tpu.memory_space<vmem>>, vector<1x16x16xf32>,
    %86 = arith.maximumf %64, %65 : vector<16x16xf32>
    %c3 = arith.constant 3 : index
    %c0_88 = arith.constant 0 : index
    %c0_89 = arith.constant 0 : index
    %87 = vector.load %arg16[%c3, %c0_88, %c0_89] : memref<8x16x16xf32, #tpu.memory_space<vmem>>, vector<1x16x16xf32>
    %88 = vector.shape_cast %87 : vector<1x16x16xf32> to vector<16x16xf32>
    %89 = vector.shape_cast %86 : vector<16x16xf32> to vector<1x16x16xf32>
    tpu.vector_store %arg16[%c3, %c0_88, %c0_89], %89 {strides = array<i32>} : memref<8x16x16xf32, #tpu.memory_space<vmem>>, vector<1x16x16xf32>,
    %90 = arith.maximumf %66, %67 : vector<16x16xf32>
    %c4 = arith.constant 4 : index
    %c0_90 = arith.constant 0 : index
    %c0_91 = arith.constant 0 : index
    %91 = vector.load %arg16[%c4, %c0_90, %c0_91] : memref<8x16x16xf32, #tpu.memory_space<vmem>>, vector<1x16x16xf32>
    %92 = vector.shape_cast %91 : vector<1x16x16xf32> to vector<16x16xf32>
    %93 = vector.shape_cast %90 : vector<16x16xf32> to vector<1x16x16xf32>
    tpu.vector_store %arg16[%c4, %c0_90, %c0_91], %93 {strides = array<i32>} : memref<8x16x16xf32, #tpu.memory_space<vmem>>, vector<1x16x16xf32>,
    %94 = arith.maximumf %68, %69 : vector<16x16xf32>
    %c5 = arith.constant 5 : index
    %c0_92 = arith.constant 0 : index
    %c0_93 = arith.constant 0 : index
    %95 = vector.load %arg16[%c5, %c0_92, %c0_93] : memref<8x16x16xf32, #tpu.memory_space<vmem>>, vector<1x16x16xf32>
    %96 = vector.shape_cast %95 : vector<1x16x16xf32> to vector<16x16xf32>
    %97 = vector.shape_cast %94 : vector<16x16xf32> to vector<1x16x16xf32>
    tpu.vector_store %arg16[%c5, %c0_92, %c0_93], %97 {strides = array<i32>} : memref<8x16x16xf32, #tpu.memory_space<vmem>>, vector<1x16x16xf32>,
    %98 = arith.maximumf %70, %71 : vector<16x16xf32>
    %c6 = arith.constant 6 : index
    %c0_94 = arith.constant 0 : index
    %c0_95 = arith.constant 0 : index
    %99 = vector.load %arg16[%c6, %c0_94, %c0_95] : memref<8x16x16xf32, #tpu.memory_space<vmem>>, vector<1x16x16xf32>
    %100 = vector.shape_cast %99 : vector<1x16x16xf32> to vector<16x16xf32>
    %101 = vector.shape_cast %98 : vector<16x16xf32> to vector<1x16x16xf32>
    tpu.vector_store %arg16[%c6, %c0_94, %c0_95], %101 {strides = array<i32>} : memref<8x16x16xf32, #tpu.memory_space<vmem>>, vector<1x16x16xf32>,
    %102 = arith.maximumf %72, %73 : vector<16x16xf32>
    %c7 = arith.constant 7 : index
    %c0_96 = arith.constant 0 : index
    %c0_97 = arith.constant 0 : index
    %103 = vector.load %arg16[%c7, %c0_96, %c0_97] : memref<8x16x16xf32, #tpu.memory_space<vmem>>, vector<1x16x16xf32>
    %104 = vector.shape_cast %103 : vector<1x16x16xf32> to vector<16x16xf32>
    %105 = vector.shape_cast %102 : vector<16x16xf32> to vector<1x16x16xf32>
    tpu.vector_store %arg16[%c7, %c0_96, %c0_97], %105 {strides = array<i32>} : memref<8x16x16xf32, #tpu.memory_space<vmem>>, vector<1x16x16xf32>,
    %c0_98 = arith.constant 0 : index
    %c0_99 = arith.constant 0 : index
    %c0_100 = arith.constant 0 : index
    %106 = tpu.strided_load %arg16[%c0_98, %c0_99, %c0_100] {strides = array<i32: 1, 2, 1>} : memref<8x16x16xf32, #tpu.memory_space<vmem>>, vector<8x8x16xf32>
    %c0_101 = arith.constant 0 : index
    %c1_102 = arith.constant 1 : index
    %c0_103 = arith.constant 0 : index
    %107 = tpu.strided_load %arg16[%c0_101, %c1_102, %c0_103] {strides = array<i32: 1, 2, 1>} : memref<8x16x16xf32, #tpu.memory_space<vmem>>, vector<8x8x16xf32>
    %108 = arith.maximumf %106, %107 : vector<8x8x16xf32>
    %c0_104 = arith.constant 0 : index
    %c0_105 = arith.constant 0 : index
    %109 = vector.load %arg3[%c0_104, %c0_105] : memref<1x16xf32, #tpu.memory_space<vmem>>, vector<1x16xf32>
    %110 = vector.shape_cast %109 : vector<1x16xf32> to vector<1x1x16xf32>
    %111 = vector.broadcast %110 : vector<1x1x16xf32> to vector<8x8x16xf32>
    %112 = arith.addf %108, %111 : vector<8x8x16xf32>
    %cst_106 = arith.constant 0.000000e+00 : f32
    %113 = vector.broadcast %cst_106 : f32 to vector<8x8x16xf32>
    %114 = arith.maximumf %112, %113 : vector<8x8x16xf32>
    %cst_107 = arith.constant 0.000000e+00 : f32
    %115 = vector.broadcast %cst_107 : f32 to vector<10x10x16xf32>
    %c0_108 = arith.constant 0 : index
    %c0_109 = arith.constant 0 : index
    %c0_110 = arith.constant 0 : index
    %116 = vector.load %arg14[%c0_108, %c0_109, %c0_110] : memref<10x10x16xf32, #tpu.memory_space<vmem>>, vector<10x10x16xf32>
    tpu.vector_store %arg14[%c0_108, %c0_109, %c0_110], %115 {strides = array<i32>} : memref<10x10x16xf32, #tpu.memory_space<vmem>>, vector<10x10x16xf32>,
    %c1_111 = arith.constant 1 : index
    %c1_112 = arith.constant 1 : index
    %c0_113 = arith.constant 0 : index
    %117 = vector.load %arg14[%c1_111, %c1_112, %c0_113] : memref<10x10x16xf32, #tpu.memory_space<vmem>>, vector<8x8x16xf32>
    tpu.vector_store %arg14[%c1_111, %c1_112, %c0_113], %114 {strides = array<i32>} : memref<10x10x16xf32, #tpu.memory_space<vmem>>, vector<8x8x16xf32>,
    %c0_114 = arith.constant 0 : index
    %c0_115 = arith.constant 0 : index
    %c0_116 = arith.constant 0 : index
    %c0_117 = arith.constant 0 : index
    %118 = vector.load %arg4[%c0_114, %c0_115, %c0_116, %c0_117] : memref<3x3x16x16xf32, #tpu.memory_space<vmem>>, vector<1x1x16x16xf32>
    %119 = vector.shape_cast %118 : vector<1x1x16x16xf32> to vector<16x16xf32>
    %c0_118 = arith.constant 0 : index
    %c1_119 = arith.constant 1 : index
    %c0_120 = arith.constant 0 : index
    %c0_121 = arith.constant 0 : index
    %120 = vector.load %arg4[%c0_118, %c1_119, %c0_120, %c0_121] : memref<3x3x16x16xf32, #tpu.memory_space<vmem>>, vector<1x1x16x16xf32>
    %121 = vector.shape_cast %120 : vector<1x1x16x16xf32> to vector<16x16xf32>
    %c0_122 = arith.constant 0 : index
    %c2_123 = arith.constant 2 : index
    %c0_124 = arith.constant 0 : index
    %c0_125 = arith.constant 0 : index
    %122 = vector.load %arg4[%c0_122, %c2_123, %c0_124, %c0_125] : memref<3x3x16x16xf32, #tpu.memory_space<vmem>>, vector<1x1x16x16xf32>
    %123 = vector.shape_cast %122 : vector<1x1x16x16xf32> to vector<16x16xf32>
    %c1_126 = arith.constant 1 : index
    %c0_127 = arith.constant 0 : index
    %c0_128 = arith.constant 0 : index
    %c0_129 = arith.constant 0 : index
    %124 = vector.load %arg4[%c1_126, %c0_127, %c0_128, %c0_129] : memref<3x3x16x16xf32, #tpu.memory_space<vmem>>, vector<1x1x16x16xf32>
    %125 = vector.shape_cast %124 : vector<1x1x16x16xf32> to vector<16x16xf32>
    %c1_130 = arith.constant 1 : index
    %c1_131 = arith.constant 1 : index
    %c0_132 = arith.constant 0 : index
    %c0_133 = arith.constant 0 : index
    %126 = vector.load %arg4[%c1_130, %c1_131, %c0_132, %c0_133] : memref<3x3x16x16xf32, #tpu.memory_space<vmem>>, vector<1x1x16x16xf32>
    %127 = vector.shape_cast %126 : vector<1x1x16x16xf32> to vector<16x16xf32>
    %c1_134 = arith.constant 1 : index
    %c2_135 = arith.constant 2 : index
    %c0_136 = arith.constant 0 : index
    %c0_137 = arith.constant 0 : index
    %128 = vector.load %arg4[%c1_134, %c2_135, %c0_136, %c0_137] : memref<3x3x16x16xf32, #tpu.memory_space<vmem>>, vector<1x1x16x16xf32>
    %129 = vector.shape_cast %128 : vector<1x1x16x16xf32> to vector<16x16xf32>
    %c2_138 = arith.constant 2 : index
    %c0_139 = arith.constant 0 : index
    %c0_140 = arith.constant 0 : index
    %c0_141 = arith.constant 0 : index
    %130 = vector.load %arg4[%c2_138, %c0_139, %c0_140, %c0_141] : memref<3x3x16x16xf32, #tpu.memory_space<vmem>>, vector<1x1x16x16xf32>
    %131 = vector.shape_cast %130 : vector<1x1x16x16xf32> to vector<16x16xf32>
    %c2_142 = arith.constant 2 : index
    %c1_143 = arith.constant 1 : index
    %c0_144 = arith.constant 0 : index
    %c0_145 = arith.constant 0 : index
    %132 = vector.load %arg4[%c2_142, %c1_143, %c0_144, %c0_145] : memref<3x3x16x16xf32, #tpu.memory_space<vmem>>, vector<1x1x16x16xf32>
    %133 = vector.shape_cast %132 : vector<1x1x16x16xf32> to vector<16x16xf32>
    %c2_146 = arith.constant 2 : index
    %c2_147 = arith.constant 2 : index
    %c0_148 = arith.constant 0 : index
    %c0_149 = arith.constant 0 : index
    %134 = vector.load %arg4[%c2_146, %c2_147, %c0_148, %c0_149] : memref<3x3x16x16xf32, #tpu.memory_space<vmem>>, vector<1x1x16x16xf32>
    %135 = vector.shape_cast %134 : vector<1x1x16x16xf32> to vector<16x16xf32>
    %c0_150 = arith.constant 0 : index
    %c0_151 = arith.constant 0 : index
    %c0_152 = arith.constant 0 : index
    %136 = vector.load %arg14[%c0_150, %c0_151, %c0_152] : memref<10x10x16xf32, #tpu.memory_space<vmem>>, vector<8x8x16xf32>
    %137 = vector.shape_cast %136 : vector<8x8x16xf32> to vector<64x16xf32>
    %cst_153 = arith.constant dense<0.000000e+00> : vector<64x16xf32>
    %138 = tpu.matmul %137, %119, %cst_153 {dimension_numbers = #tpu.dot_dimension_numbers<[1], [0], [0], [1], [0, 0, 1, 1], [], []>} : vector<64x16xf32>, vector<16x16xf32>, vector<64x16xf32> -> vector<64x16xf32>
    %c0_154 = arith.constant 0 : index
    %c1_155 = arith.constant 1 : index
    %c0_156 = arith.constant 0 : index
    %139 = vector.load %arg14[%c0_154, %c1_155, %c0_156] : memref<10x10x16xf32, #tpu.memory_space<vmem>>, vector<8x8x16xf32>
    %140 = vector.shape_cast %139 : vector<8x8x16xf32> to vector<64x16xf32>
    %cst_157 = arith.constant dense<0.000000e+00> : vector<64x16xf32>
    %141 = tpu.matmul %140, %121, %cst_157 {dimension_numbers = #tpu.dot_dimension_numbers<[1], [0], [0], [1], [0, 0, 1, 1], [], []>} : vector<64x16xf32>, vector<16x16xf32>, vector<64x16xf32> -> vector<64x16xf32>
    %142 = arith.addf %138, %141 : vector<64x16xf32>
    %c0_158 = arith.constant 0 : index
    %c2_159 = arith.constant 2 : index
    %c0_160 = arith.constant 0 : index
    %143 = vector.load %arg14[%c0_158, %c2_159, %c0_160] : memref<10x10x16xf32, #tpu.memory_space<vmem>>, vector<8x8x16xf32>
    %144 = vector.shape_cast %143 : vector<8x8x16xf32> to vector<64x16xf32>
    %cst_161 = arith.constant dense<0.000000e+00> : vector<64x16xf32>
    %145 = tpu.matmul %144, %123, %cst_161 {dimension_numbers = #tpu.dot_dimension_numbers<[1], [0], [0], [1], [0, 0, 1, 1], [], []>} : vector<64x16xf32>, vector<16x16xf32>, vector<64x16xf32> -> vector<64x16xf32>
    %146 = arith.addf %142, %145 : vector<64x16xf32>
    %c1_162 = arith.constant 1 : index
    %c0_163 = arith.constant 0 : index
    %c0_164 = arith.constant 0 : index
    %147 = vector.load %arg14[%c1_162, %c0_163, %c0_164] : memref<10x10x16xf32, #tpu.memory_space<vmem>>, vector<8x8x16xf32>
    %148 = vector.shape_cast %147 : vector<8x8x16xf32> to vector<64x16xf32>
    %cst_165 = arith.constant dense<0.000000e+00> : vector<64x16xf32>
    %149 = tpu.matmul %148, %125, %cst_165 {dimension_numbers = #tpu.dot_dimension_numbers<[1], [0], [0], [1], [0, 0, 1, 1], [], []>} : vector<64x16xf32>, vector<16x16xf32>, vector<64x16xf32> -> vector<64x16xf32>
    %150 = arith.addf %146, %149 : vector<64x16xf32>
    %c1_166 = arith.constant 1 : index
    %c1_167 = arith.constant 1 : index
    %c0_168 = arith.constant 0 : index
    %151 = vector.load %arg14[%c1_166, %c1_167, %c0_168] : memref<10x10x16xf32, #tpu.memory_space<vmem>>, vector<8x8x16xf32>
    %152 = vector.shape_cast %151 : vector<8x8x16xf32> to vector<64x16xf32>
    %cst_169 = arith.constant dense<0.000000e+00> : vector<64x16xf32>
    %153 = tpu.matmul %152, %127, %cst_169 {dimension_numbers = #tpu.dot_dimension_numbers<[1], [0], [0], [1], [0, 0, 1, 1], [], []>} : vector<64x16xf32>, vector<16x16xf32>, vector<64x16xf32> -> vector<64x16xf32>
    %154 = arith.addf %150, %153 : vector<64x16xf32>
    %c1_170 = arith.constant 1 : index
    %c2_171 = arith.constant 2 : index
    %c0_172 = arith.constant 0 : index
    %155 = vector.load %arg14[%c1_170, %c2_171, %c0_172] : memref<10x10x16xf32, #tpu.memory_space<vmem>>, vector<8x8x16xf32>
    %156 = vector.shape_cast %155 : vector<8x8x16xf32> to vector<64x16xf32>
    %cst_173 = arith.constant dense<0.000000e+00> : vector<64x16xf32>
    %157 = tpu.matmul %156, %129, %cst_173 {dimension_numbers = #tpu.dot_dimension_numbers<[1], [0], [0], [1], [0, 0, 1, 1], [], []>} : vector<64x16xf32>, vector<16x16xf32>, vector<64x16xf32> -> vector<64x16xf32>
    %158 = arith.addf %154, %157 : vector<64x16xf32>
    %c2_174 = arith.constant 2 : index
    %c0_175 = arith.constant 0 : index
    %c0_176 = arith.constant 0 : index
    %159 = vector.load %arg14[%c2_174, %c0_175, %c0_176] : memref<10x10x16xf32, #tpu.memory_space<vmem>>, vector<8x8x16xf32>
    %160 = vector.shape_cast %159 : vector<8x8x16xf32> to vector<64x16xf32>
    %cst_177 = arith.constant dense<0.000000e+00> : vector<64x16xf32>
    %161 = tpu.matmul %160, %131, %cst_177 {dimension_numbers = #tpu.dot_dimension_numbers<[1], [0], [0], [1], [0, 0, 1, 1], [], []>} : vector<64x16xf32>, vector<16x16xf32>, vector<64x16xf32> -> vector<64x16xf32>
    %162 = arith.addf %158, %161 : vector<64x16xf32>
    %c2_178 = arith.constant 2 : index
    %c1_179 = arith.constant 1 : index
    %c0_180 = arith.constant 0 : index
    %163 = vector.load %arg14[%c2_178, %c1_179, %c0_180] : memref<10x10x16xf32, #tpu.memory_space<vmem>>, vector<8x8x16xf32>
    %164 = vector.shape_cast %163 : vector<8x8x16xf32> to vector<64x16xf32>
    %cst_181 = arith.constant dense<0.000000e+00> : vector<64x16xf32>
    %165 = tpu.matmul %164, %133, %cst_181 {dimension_numbers = #tpu.dot_dimension_numbers<[1], [0], [0], [1], [0, 0, 1, 1], [], []>} : vector<64x16xf32>, vector<16x16xf32>, vector<64x16xf32> -> vector<64x16xf32>
    %166 = arith.addf %162, %165 : vector<64x16xf32>
    %c2_182 = arith.constant 2 : index
    %c2_183 = arith.constant 2 : index
    %c0_184 = arith.constant 0 : index
    %167 = vector.load %arg14[%c2_182, %c2_183, %c0_184] : memref<10x10x16xf32, #tpu.memory_space<vmem>>, vector<8x8x16xf32>
    %168 = vector.shape_cast %167 : vector<8x8x16xf32> to vector<64x16xf32>
    %cst_185 = arith.constant dense<0.000000e+00> : vector<64x16xf32>
    %169 = tpu.matmul %168, %135, %cst_185 {dimension_numbers = #tpu.dot_dimension_numbers<[1], [0], [0], [1], [0, 0, 1, 1], [], []>} : vector<64x16xf32>, vector<16x16xf32>, vector<64x16xf32> -> vector<64x16xf32>
    %170 = arith.addf %166, %169 : vector<64x16xf32>
    %171 = vector.extract_strided_slice %170 {offsets = [0, 0], sizes = [8, 16], strides = [1, 1]} : vector<64x16xf32> to vector<8x16xf32>
    %172 = vector.extract_strided_slice %170 {offsets = [8, 0], sizes = [8, 16], strides = [1, 1]} : vector<64x16xf32> to vector<8x16xf32>
    %173 = vector.extract_strided_slice %170 {offsets = [16, 0], sizes = [8, 16], strides = [1, 1]} : vector<64x16xf32> to vector<8x16xf32>
    %174 = vector.extract_strided_slice %170 {offsets = [24, 0], sizes = [8, 16], strides = [1, 1]} : vector<64x16xf32> to vector<8x16xf32>
    %175 = vector.extract_strided_slice %170 {offsets = [32, 0], sizes = [8, 16], strides = [1, 1]} : vector<64x16xf32> to vector<8x16xf32>
    %176 = vector.extract_strided_slice %170 {offsets = [40, 0], sizes = [8, 16], strides = [1, 1]} : vector<64x16xf32> to vector<8x16xf32>
    %177 = vector.extract_strided_slice %170 {offsets = [48, 0], sizes = [8, 16], strides = [1, 1]} : vector<64x16xf32> to vector<8x16xf32>
    %178 = vector.extract_strided_slice %170 {offsets = [56, 0], sizes = [8, 16], strides = [1, 1]} : vector<64x16xf32> to vector<8x16xf32>
    %179 = arith.maximumf %171, %172 : vector<8x16xf32>
    %c0_186 = arith.constant 0 : index
    %c0_187 = arith.constant 0 : index
    %c0_188 = arith.constant 0 : index
    %180 = vector.load %arg17[%c0_186, %c0_187, %c0_188] : memref<4x8x16xf32, #tpu.memory_space<vmem>>, vector<1x8x16xf32>
    %181 = vector.shape_cast %180 : vector<1x8x16xf32> to vector<8x16xf32>
    %182 = vector.shape_cast %179 : vector<8x16xf32> to vector<1x8x16xf32>
    tpu.vector_store %arg17[%c0_186, %c0_187, %c0_188], %182 {strides = array<i32>} : memref<4x8x16xf32, #tpu.memory_space<vmem>>, vector<1x8x16xf32>,
    %183 = arith.maximumf %173, %174 : vector<8x16xf32>
    %c1_189 = arith.constant 1 : index
    %c0_190 = arith.constant 0 : index
    %c0_191 = arith.constant 0 : index
    %184 = vector.load %arg17[%c1_189, %c0_190, %c0_191] : memref<4x8x16xf32, #tpu.memory_space<vmem>>, vector<1x8x16xf32>
    %185 = vector.shape_cast %184 : vector<1x8x16xf32> to vector<8x16xf32>
    %186 = vector.shape_cast %183 : vector<8x16xf32> to vector<1x8x16xf32>
    tpu.vector_store %arg17[%c1_189, %c0_190, %c0_191], %186 {strides = array<i32>} : memref<4x8x16xf32, #tpu.memory_space<vmem>>, vector<1x8x16xf32>,
    %187 = arith.maximumf %175, %176 : vector<8x16xf32>
    %c2_192 = arith.constant 2 : index
    %c0_193 = arith.constant 0 : index
    %c0_194 = arith.constant 0 : index
    %188 = vector.load %arg17[%c2_192, %c0_193, %c0_194] : memref<4x8x16xf32, #tpu.memory_space<vmem>>, vector<1x8x16xf32>
    %189 = vector.shape_cast %188 : vector<1x8x16xf32> to vector<8x16xf32>
    %190 = vector.shape_cast %187 : vector<8x16xf32> to vector<1x8x16xf32>
    tpu.vector_store %arg17[%c2_192, %c0_193, %c0_194], %190 {strides = array<i32>} : memref<4x8x16xf32, #tpu.memory_space<vmem>>, vector<1x8x16xf32>,
    %191 = arith.maximumf %177, %178 : vector<8x16xf32>
    %c3_195 = arith.constant 3 : index
    %c0_196 = arith.constant 0 : index
    %c0_197 = arith.constant 0 : index
    %192 = vector.load %arg17[%c3_195, %c0_196, %c0_197] : memref<4x8x16xf32, #tpu.memory_space<vmem>>, vector<1x8x16xf32>
    %193 = vector.shape_cast %192 : vector<1x8x16xf32> to vector<8x16xf32>
    %194 = vector.shape_cast %191 : vector<8x16xf32> to vector<1x8x16xf32>
    tpu.vector_store %arg17[%c3_195, %c0_196, %c0_197], %194 {strides = array<i32>} : memref<4x8x16xf32, #tpu.memory_space<vmem>>, vector<1x8x16xf32>,
    %c0_198 = arith.constant 0 : index
    %c0_199 = arith.constant 0 : index
    %c0_200 = arith.constant 0 : index
    %195 = tpu.strided_load %arg17[%c0_198, %c0_199, %c0_200] {strides = array<i32: 1, 2, 1>} : memref<4x8x16xf32, #tpu.memory_space<vmem>>, vector<4x4x16xf32>
    %c0_201 = arith.constant 0 : index
    %c1_202 = arith.constant 1 : index
    %c0_203 = arith.constant 0 : index
    %196 = tpu.strided_load %arg17[%c0_201, %c1_202, %c0_203] {strides = array<i32: 1, 2, 1>} : memref<4x8x16xf32, #tpu.memory_space<vmem>>, vector<4x4x16xf32>
    %197 = arith.maximumf %195, %196 : vector<4x4x16xf32>
    %c0_204 = arith.constant 0 : index
    %c0_205 = arith.constant 0 : index
    %198 = vector.load %arg5[%c0_204, %c0_205] : memref<1x16xf32, #tpu.memory_space<vmem>>, vector<1x16xf32>
    %199 = vector.shape_cast %198 : vector<1x16xf32> to vector<1x1x16xf32>
    %200 = vector.broadcast %199 : vector<1x1x16xf32> to vector<4x4x16xf32>
    %201 = arith.addf %197, %200 : vector<4x4x16xf32>
    %cst_206 = arith.constant 0.000000e+00 : f32
    %202 = vector.broadcast %cst_206 : f32 to vector<4x4x16xf32>
    %203 = arith.maximumf %201, %202 : vector<4x4x16xf32>
    %cst_207 = arith.constant 0.000000e+00 : f32
    %204 = vector.broadcast %cst_207 : f32 to vector<6x6x16xf32>
    %c0_208 = arith.constant 0 : index
    %c0_209 = arith.constant 0 : index
    %c0_210 = arith.constant 0 : index
    %205 = vector.load %arg15[%c0_208, %c0_209, %c0_210] : memref<6x6x16xf32, #tpu.memory_space<vmem>>, vector<6x6x16xf32>
    tpu.vector_store %arg15[%c0_208, %c0_209, %c0_210], %204 {strides = array<i32>} : memref<6x6x16xf32, #tpu.memory_space<vmem>>, vector<6x6x16xf32>,
    %c1_211 = arith.constant 1 : index
    %c1_212 = arith.constant 1 : index
    %c0_213 = arith.constant 0 : index
    %206 = vector.load %arg15[%c1_211, %c1_212, %c0_213] : memref<6x6x16xf32, #tpu.memory_space<vmem>>, vector<4x4x16xf32>
    tpu.vector_store %arg15[%c1_211, %c1_212, %c0_213], %203 {strides = array<i32>} : memref<6x6x16xf32, #tpu.memory_space<vmem>>, vector<4x4x16xf32>,
    %c0_214 = arith.constant 0 : index
    %c0_215 = arith.constant 0 : index
    %c0_216 = arith.constant 0 : index
    %c0_217 = arith.constant 0 : index
    %207 = vector.load %arg6[%c0_214, %c0_215, %c0_216, %c0_217] : memref<3x3x16x16xf32, #tpu.memory_space<vmem>>, vector<1x1x16x16xf32>
    %208 = vector.shape_cast %207 : vector<1x1x16x16xf32> to vector<16x16xf32>
    %c0_218 = arith.constant 0 : index
    %c1_219 = arith.constant 1 : index
    %c0_220 = arith.constant 0 : index
    %c0_221 = arith.constant 0 : index
    %209 = vector.load %arg6[%c0_218, %c1_219, %c0_220, %c0_221] : memref<3x3x16x16xf32, #tpu.memory_space<vmem>>, vector<1x1x16x16xf32>
    %210 = vector.shape_cast %209 : vector<1x1x16x16xf32> to vector<16x16xf32>
    %c0_222 = arith.constant 0 : index
    %c2_223 = arith.constant 2 : index
    %c0_224 = arith.constant 0 : index
    %c0_225 = arith.constant 0 : index
    %211 = vector.load %arg6[%c0_222, %c2_223, %c0_224, %c0_225] : memref<3x3x16x16xf32, #tpu.memory_space<vmem>>, vector<1x1x16x16xf32>
    %212 = vector.shape_cast %211 : vector<1x1x16x16xf32> to vector<16x16xf32>
    %c1_226 = arith.constant 1 : index
    %c0_227 = arith.constant 0 : index
    %c0_228 = arith.constant 0 : index
    %c0_229 = arith.constant 0 : index
    %213 = vector.load %arg6[%c1_226, %c0_227, %c0_228, %c0_229] : memref<3x3x16x16xf32, #tpu.memory_space<vmem>>, vector<1x1x16x16xf32>
    %214 = vector.shape_cast %213 : vector<1x1x16x16xf32> to vector<16x16xf32>
    %c1_230 = arith.constant 1 : index
    %c1_231 = arith.constant 1 : index
    %c0_232 = arith.constant 0 : index
    %c0_233 = arith.constant 0 : index
    %215 = vector.load %arg6[%c1_230, %c1_231, %c0_232, %c0_233] : memref<3x3x16x16xf32, #tpu.memory_space<vmem>>, vector<1x1x16x16xf32>
    %216 = vector.shape_cast %215 : vector<1x1x16x16xf32> to vector<16x16xf32>
    %c1_234 = arith.constant 1 : index
    %c2_235 = arith.constant 2 : index
    %c0_236 = arith.constant 0 : index
    %c0_237 = arith.constant 0 : index
    %217 = vector.load %arg6[%c1_234, %c2_235, %c0_236, %c0_237] : memref<3x3x16x16xf32, #tpu.memory_space<vmem>>, vector<1x1x16x16xf32>
    %218 = vector.shape_cast %217 : vector<1x1x16x16xf32> to vector<16x16xf32>
    %c2_238 = arith.constant 2 : index
    %c0_239 = arith.constant 0 : index
    %c0_240 = arith.constant 0 : index
    %c0_241 = arith.constant 0 : index
    %219 = vector.load %arg6[%c2_238, %c0_239, %c0_240, %c0_241] : memref<3x3x16x16xf32, #tpu.memory_space<vmem>>, vector<1x1x16x16xf32>
    %220 = vector.shape_cast %219 : vector<1x1x16x16xf32> to vector<16x16xf32>
    %c2_242 = arith.constant 2 : index
    %c1_243 = arith.constant 1 : index
    %c0_244 = arith.constant 0 : index
    %c0_245 = arith.constant 0 : index
    %221 = vector.load %arg6[%c2_242, %c1_243, %c0_244, %c0_245] : memref<3x3x16x16xf32, #tpu.memory_space<vmem>>, vector<1x1x16x16xf32>
    %222 = vector.shape_cast %221 : vector<1x1x16x16xf32> to vector<16x16xf32>
    %c2_246 = arith.constant 2 : index
    %c2_247 = arith.constant 2 : index
    %c0_248 = arith.constant 0 : index
    %c0_249 = arith.constant 0 : index
    %223 = vector.load %arg6[%c2_246, %c2_247, %c0_248, %c0_249] : memref<3x3x16x16xf32, #tpu.memory_space<vmem>>, vector<1x1x16x16xf32>
    %224 = vector.shape_cast %223 : vector<1x1x16x16xf32> to vector<16x16xf32>
    %c0_250 = arith.constant 0 : index
    %c0_251 = arith.constant 0 : index
    %c0_252 = arith.constant 0 : index
    %225 = vector.load %arg15[%c0_250, %c0_251, %c0_252] : memref<6x6x16xf32, #tpu.memory_space<vmem>>, vector<1x4x16xf32>
    %226 = vector.shape_cast %225 : vector<1x4x16xf32> to vector<4x16xf32>
    %cst_253 = arith.constant dense<0.000000e+00> : vector<4x16xf32>
    %227 = tpu.matmul %226, %208, %cst_253 {dimension_numbers = #tpu.dot_dimension_numbers<[1], [0], [0], [1], [0, 0, 1, 1], [], []>} : vector<4x16xf32>, vector<16x16xf32>, vector<4x16xf32> -> vector<4x16xf32>
    %c0_254 = arith.constant 0 : index
    %c1_255 = arith.constant 1 : index
    %c0_256 = arith.constant 0 : index
    %228 = vector.load %arg15[%c0_254, %c1_255, %c0_256] : memref<6x6x16xf32, #tpu.memory_space<vmem>>, vector<1x4x16xf32>
    %229 = vector.shape_cast %228 : vector<1x4x16xf32> to vector<4x16xf32>
    %cst_257 = arith.constant dense<0.000000e+00> : vector<4x16xf32>
    %230 = tpu.matmul %229, %210, %cst_257 {dimension_numbers = #tpu.dot_dimension_numbers<[1], [0], [0], [1], [0, 0, 1, 1], [], []>} : vector<4x16xf32>, vector<16x16xf32>, vector<4x16xf32> -> vector<4x16xf32>
    %231 = arith.addf %227, %230 : vector<4x16xf32>
    %c0_258 = arith.constant 0 : index
    %c2_259 = arith.constant 2 : index
    %c0_260 = arith.constant 0 : index
    %232 = vector.load %arg15[%c0_258, %c2_259, %c0_260] : memref<6x6x16xf32, #tpu.memory_space<vmem>>, vector<1x4x16xf32>
    %233 = vector.shape_cast %232 : vector<1x4x16xf32> to vector<4x16xf32>
    %cst_261 = arith.constant dense<0.000000e+00> : vector<4x16xf32>
    %234 = tpu.matmul %233, %212, %cst_261 {dimension_numbers = #tpu.dot_dimension_numbers<[1], [0], [0], [1], [0, 0, 1, 1], [], []>} : vector<4x16xf32>, vector<16x16xf32>, vector<4x16xf32> -> vector<4x16xf32>
    %235 = arith.addf %231, %234 : vector<4x16xf32>
    %c1_262 = arith.constant 1 : index
    %c0_263 = arith.constant 0 : index
    %c0_264 = arith.constant 0 : index
    %236 = vector.load %arg15[%c1_262, %c0_263, %c0_264] : memref<6x6x16xf32, #tpu.memory_space<vmem>>, vector<1x4x16xf32>
    %237 = vector.shape_cast %236 : vector<1x4x16xf32> to vector<4x16xf32>
    %cst_265 = arith.constant dense<0.000000e+00> : vector<4x16xf32>
    %238 = tpu.matmul %237, %214, %cst_265 {dimension_numbers = #tpu.dot_dimension_numbers<[1], [0], [0], [1], [0, 0, 1, 1], [], []>} : vector<4x16xf32>, vector<16x16xf32>, vector<4x16xf32> -> vector<4x16xf32>
    %239 = arith.addf %235, %238 : vector<4x16xf32>
    %c1_266 = arith.constant 1 : index
    %c1_267 = arith.constant 1 : index
    %c0_268 = arith.constant 0 : index
    %240 = vector.load %arg15[%c1_266, %c1_267, %c0_268] : memref<6x6x16xf32, #tpu.memory_space<vmem>>, vector<1x4x16xf32>
    %241 = vector.shape_cast %240 : vector<1x4x16xf32> to vector<4x16xf32>
    %cst_269 = arith.constant dense<0.000000e+00> : vector<4x16xf32>
    %242 = tpu.matmul %241, %216, %cst_269 {dimension_numbers = #tpu.dot_dimension_numbers<[1], [0], [0], [1], [0, 0, 1, 1], [], []>} : vector<4x16xf32>, vector<16x16xf32>, vector<4x16xf32> -> vector<4x16xf32>
    %243 = arith.addf %239, %242 : vector<4x16xf32>
    %c1_270 = arith.constant 1 : index
    %c2_271 = arith.constant 2 : index
    %c0_272 = arith.constant 0 : index
    %244 = vector.load %arg15[%c1_270, %c2_271, %c0_272] : memref<6x6x16xf32, #tpu.memory_space<vmem>>, vector<1x4x16xf32>
    %245 = vector.shape_cast %244 : vector<1x4x16xf32> to vector<4x16xf32>
    %cst_273 = arith.constant dense<0.000000e+00> : vector<4x16xf32>
    %246 = tpu.matmul %245, %218, %cst_273 {dimension_numbers = #tpu.dot_dimension_numbers<[1], [0], [0], [1], [0, 0, 1, 1], [], []>} : vector<4x16xf32>, vector<16x16xf32>, vector<4x16xf32> -> vector<4x16xf32>
    %247 = arith.addf %243, %246 : vector<4x16xf32>
    %c2_274 = arith.constant 2 : index
    %c0_275 = arith.constant 0 : index
    %c0_276 = arith.constant 0 : index
    %248 = vector.load %arg15[%c2_274, %c0_275, %c0_276] : memref<6x6x16xf32, #tpu.memory_space<vmem>>, vector<1x4x16xf32>
    %249 = vector.shape_cast %248 : vector<1x4x16xf32> to vector<4x16xf32>
    %cst_277 = arith.constant dense<0.000000e+00> : vector<4x16xf32>
    %250 = tpu.matmul %249, %220, %cst_277 {dimension_numbers = #tpu.dot_dimension_numbers<[1], [0], [0], [1], [0, 0, 1, 1], [], []>} : vector<4x16xf32>, vector<16x16xf32>, vector<4x16xf32> -> vector<4x16xf32>
    %251 = arith.addf %247, %250 : vector<4x16xf32>
    %c2_278 = arith.constant 2 : index
    %c1_279 = arith.constant 1 : index
    %c0_280 = arith.constant 0 : index
    %252 = vector.load %arg15[%c2_278, %c1_279, %c0_280] : memref<6x6x16xf32, #tpu.memory_space<vmem>>, vector<1x4x16xf32>
    %253 = vector.shape_cast %252 : vector<1x4x16xf32> to vector<4x16xf32>
    %cst_281 = arith.constant dense<0.000000e+00> : vector<4x16xf32>
    %254 = tpu.matmul %253, %222, %cst_281 {dimension_numbers = #tpu.dot_dimension_numbers<[1], [0], [0], [1], [0, 0, 1, 1], [], []>} : vector<4x16xf32>, vector<16x16xf32>, vector<4x16xf32> -> vector<4x16xf32>
    %255 = arith.addf %251, %254 : vector<4x16xf32>
    %c2_282 = arith.constant 2 : index
    %c2_283 = arith.constant 2 : index
    %c0_284 = arith.constant 0 : index
    %256 = vector.load %arg15[%c2_282, %c2_283, %c0_284] : memref<6x6x16xf32, #tpu.memory_space<vmem>>, vector<1x4x16xf32>
    %257 = vector.shape_cast %256 : vector<1x4x16xf32> to vector<4x16xf32>
    %cst_285 = arith.constant dense<0.000000e+00> : vector<4x16xf32>
    %258 = tpu.matmul %257, %224, %cst_285 {dimension_numbers = #tpu.dot_dimension_numbers<[1], [0], [0], [1], [0, 0, 1, 1], [], []>} : vector<4x16xf32>, vector<16x16xf32>, vector<4x16xf32> -> vector<4x16xf32>
    %259 = arith.addf %255, %258 : vector<4x16xf32>
    %c1_286 = arith.constant 1 : index
    %c0_287 = arith.constant 0 : index
    %c0_288 = arith.constant 0 : index
    %260 = vector.load %arg15[%c1_286, %c0_287, %c0_288] : memref<6x6x16xf32, #tpu.memory_space<vmem>>, vector<1x4x16xf32>
    %261 = vector.shape_cast %260 : vector<1x4x16xf32> to vector<4x16xf32>
    %cst_289 = arith.constant dense<0.000000e+00> : vector<4x16xf32>
    %262 = tpu.matmul %261, %208, %cst_289 {dimension_numbers = #tpu.dot_dimension_numbers<[1], [0], [0], [1], [0, 0, 1, 1], [], []>} : vector<4x16xf32>, vector<16x16xf32>, vector<4x16xf32> -> vector<4x16xf32>
    %c1_290 = arith.constant 1 : index
    %c1_291 = arith.constant 1 : index
    %c0_292 = arith.constant 0 : index
    %263 = vector.load %arg15[%c1_290, %c1_291, %c0_292] : memref<6x6x16xf32, #tpu.memory_space<vmem>>, vector<1x4x16xf32>
    %264 = vector.shape_cast %263 : vector<1x4x16xf32> to vector<4x16xf32>
    %cst_293 = arith.constant dense<0.000000e+00> : vector<4x16xf32>
    %265 = tpu.matmul %264, %210, %cst_293 {dimension_numbers = #tpu.dot_dimension_numbers<[1], [0], [0], [1], [0, 0, 1, 1], [], []>} : vector<4x16xf32>, vector<16x16xf32>, vector<4x16xf32> -> vector<4x16xf32>
    %266 = arith.addf %262, %265 : vector<4x16xf32>
    %c1_294 = arith.constant 1 : index
    %c2_295 = arith.constant 2 : index
    %c0_296 = arith.constant 0 : index
    %267 = vector.load %arg15[%c1_294, %c2_295, %c0_296] : memref<6x6x16xf32, #tpu.memory_space<vmem>>, vector<1x4x16xf32>
    %268 = vector.shape_cast %267 : vector<1x4x16xf32> to vector<4x16xf32>
    %cst_297 = arith.constant dense<0.000000e+00> : vector<4x16xf32>
    %269 = tpu.matmul %268, %212, %cst_297 {dimension_numbers = #tpu.dot_dimension_numbers<[1], [0], [0], [1], [0, 0, 1, 1], [], []>} : vector<4x16xf32>, vector<16x16xf32>, vector<4x16xf32> -> vector<4x16xf32>
    %270 = arith.addf %266, %269 : vector<4x16xf32>
    %c2_298 = arith.constant 2 : index
    %c0_299 = arith.constant 0 : index
    %c0_300 = arith.constant 0 : index
    %271 = vector.load %arg15[%c2_298, %c0_299, %c0_300] : memref<6x6x16xf32, #tpu.memory_space<vmem>>, vector<1x4x16xf32>
    %272 = vector.shape_cast %271 : vector<1x4x16xf32> to vector<4x16xf32>
    %cst_301 = arith.constant dense<0.000000e+00> : vector<4x16xf32>
    %273 = tpu.matmul %272, %214, %cst_301 {dimension_numbers = #tpu.dot_dimension_numbers<[1], [0], [0], [1], [0, 0, 1, 1], [], []>} : vector<4x16xf32>, vector<16x16xf32>, vector<4x16xf32> -> vector<4x16xf32>
    %274 = arith.addf %270, %273 : vector<4x16xf32>
    %c2_302 = arith.constant 2 : index
    %c1_303 = arith.constant 1 : index
    %c0_304 = arith.constant 0 : index
    %275 = vector.load %arg15[%c2_302, %c1_303, %c0_304] : memref<6x6x16xf32, #tpu.memory_space<vmem>>, vector<1x4x16xf32>
    %276 = vector.shape_cast %275 : vector<1x4x16xf32> to vector<4x16xf32>
    %cst_305 = arith.constant dense<0.000000e+00> : vector<4x16xf32>
    %277 = tpu.matmul %276, %216, %cst_305 {dimension_numbers = #tpu.dot_dimension_numbers<[1], [0], [0], [1], [0, 0, 1, 1], [], []>} : vector<4x16xf32>, vector<16x16xf32>, vector<4x16xf32> -> vector<4x16xf32>
    %278 = arith.addf %274, %277 : vector<4x16xf32>
    %c2_306 = arith.constant 2 : index
    %c2_307 = arith.constant 2 : index
    %c0_308 = arith.constant 0 : index
    %279 = vector.load %arg15[%c2_306, %c2_307, %c0_308] : memref<6x6x16xf32, #tpu.memory_space<vmem>>, vector<1x4x16xf32>
    %280 = vector.shape_cast %279 : vector<1x4x16xf32> to vector<4x16xf32>
    %cst_309 = arith.constant dense<0.000000e+00> : vector<4x16xf32>
    %281 = tpu.matmul %280, %218, %cst_309 {dimension_numbers = #tpu.dot_dimension_numbers<[1], [0], [0], [1], [0, 0, 1, 1], [], []>} : vector<4x16xf32>, vector<16x16xf32>, vector<4x16xf32> -> vector<4x16xf32>
    %282 = arith.addf %278, %281 : vector<4x16xf32>
    %c3_310 = arith.constant 3 : index
    %c0_311 = arith.constant 0 : index
    %c0_312 = arith.constant 0 : index
    %283 = vector.load %arg15[%c3_310, %c0_311, %c0_312] : memref<6x6x16xf32, #tpu.memory_space<vmem>>, vector<1x4x16xf32>
    %284 = vector.shape_cast %283 : vector<1x4x16xf32> to vector<4x16xf32>
    %cst_313 = arith.constant dense<0.000000e+00> : vector<4x16xf32>
    %285 = tpu.matmul %284, %220, %cst_313 {dimension_numbers = #tpu.dot_dimension_numbers<[1], [0], [0], [1], [0, 0, 1, 1], [], []>} : vector<4x16xf32>, vector<16x16xf32>, vector<4x16xf32> -> vector<4x16xf32>
    %286 = arith.addf %282, %285 : vector<4x16xf32>
    %c3_314 = arith.constant 3 : index
    %c1_315 = arith.constant 1 : index
    %c0_316 = arith.constant 0 : index
    %287 = vector.load %arg15[%c3_314, %c1_315, %c0_316] : memref<6x6x16xf32, #tpu.memory_space<vmem>>, vector<1x4x16xf32>
    %288 = vector.shape_cast %287 : vector<1x4x16xf32> to vector<4x16xf32>
    %cst_317 = arith.constant dense<0.000000e+00> : vector<4x16xf32>
    %289 = tpu.matmul %288, %222, %cst_317 {dimension_numbers = #tpu.dot_dimension_numbers<[1], [0], [0], [1], [0, 0, 1, 1], [], []>} : vector<4x16xf32>, vector<16x16xf32>, vector<4x16xf32> -> vector<4x16xf32>
    %290 = arith.addf %286, %289 : vector<4x16xf32>
    %c3_318 = arith.constant 3 : index
    %c2_319 = arith.constant 2 : index
    %c0_320 = arith.constant 0 : index
    %291 = vector.load %arg15[%c3_318, %c2_319, %c0_320] : memref<6x6x16xf32, #tpu.memory_space<vmem>>, vector<1x4x16xf32>
    %292 = vector.shape_cast %291 : vector<1x4x16xf32> to vector<4x16xf32>
    %cst_321 = arith.constant dense<0.000000e+00> : vector<4x16xf32>
    %293 = tpu.matmul %292, %224, %cst_321 {dimension_numbers = #tpu.dot_dimension_numbers<[1], [0], [0], [1], [0, 0, 1, 1], [], []>} : vector<4x16xf32>, vector<16x16xf32>, vector<4x16xf32> -> vector<4x16xf32>
    %294 = arith.addf %290, %293 : vector<4x16xf32>
    %c2_322 = arith.constant 2 : index
    %c0_323 = arith.constant 0 : index
    %c0_324 = arith.constant 0 : index
    %295 = vector.load %arg15[%c2_322, %c0_323, %c0_324] : memref<6x6x16xf32, #tpu.memory_space<vmem>>, vector<1x4x16xf32>
    %296 = vector.shape_cast %295 : vector<1x4x16xf32> to vector<4x16xf32>
    %cst_325 = arith.constant dense<0.000000e+00> : vector<4x16xf32>
    %297 = tpu.matmul %296, %208, %cst_325 {dimension_numbers = #tpu.dot_dimension_numbers<[1], [0], [0], [1], [0, 0, 1, 1], [], []>} : vector<4x16xf32>, vector<16x16xf32>, vector<4x16xf32> -> vector<4x16xf32>
    %c2_326 = arith.constant 2 : index
    %c1_327 = arith.constant 1 : index
    %c0_328 = arith.constant 0 : index
    %298 = vector.load %arg15[%c2_326, %c1_327, %c0_328] : memref<6x6x16xf32, #tpu.memory_space<vmem>>, vector<1x4x16xf32>
    %299 = vector.shape_cast %298 : vector<1x4x16xf32> to vector<4x16xf32>
    %cst_329 = arith.constant dense<0.000000e+00> : vector<4x16xf32>
    %300 = tpu.matmul %299, %210, %cst_329 {dimension_numbers = #tpu.dot_dimension_numbers<[1], [0], [0], [1], [0, 0, 1, 1], [], []>} : vector<4x16xf32>, vector<16x16xf32>, vector<4x16xf32> -> vector<4x16xf32>
    %301 = arith.addf %297, %300 : vector<4x16xf32>
    %c2_330 = arith.constant 2 : index
    %c2_331 = arith.constant 2 : index
    %c0_332 = arith.constant 0 : index
    %302 = vector.load %arg15[%c2_330, %c2_331, %c0_332] : memref<6x6x16xf32, #tpu.memory_space<vmem>>, vector<1x4x16xf32>
    %303 = vector.shape_cast %302 : vector<1x4x16xf32> to vector<4x16xf32>
    %cst_333 = arith.constant dense<0.000000e+00> : vector<4x16xf32>
    %304 = tpu.matmul %303, %212, %cst_333 {dimension_numbers = #tpu.dot_dimension_numbers<[1], [0], [0], [1], [0, 0, 1, 1], [], []>} : vector<4x16xf32>, vector<16x16xf32>, vector<4x16xf32> -> vector<4x16xf32>
    %305 = arith.addf %301, %304 : vector<4x16xf32>
    %c3_334 = arith.constant 3 : index
    %c0_335 = arith.constant 0 : index
    %c0_336 = arith.constant 0 : index
    %306 = vector.load %arg15[%c3_334, %c0_335, %c0_336] : memref<6x6x16xf32, #tpu.memory_space<vmem>>, vector<1x4x16xf32>
    %307 = vector.shape_cast %306 : vector<1x4x16xf32> to vector<4x16xf32>
    %cst_337 = arith.constant dense<0.000000e+00> : vector<4x16xf32>
    %308 = tpu.matmul %307, %214, %cst_337 {dimension_numbers = #tpu.dot_dimension_numbers<[1], [0], [0], [1], [0, 0, 1, 1], [], []>} : vector<4x16xf32>, vector<16x16xf32>, vector<4x16xf32> -> vector<4x16xf32>
    %309 = arith.addf %305, %308 : vector<4x16xf32>
    %c3_338 = arith.constant 3 : index
    %c1_339 = arith.constant 1 : index
    %c0_340 = arith.constant 0 : index
    %310 = vector.load %arg15[%c3_338, %c1_339, %c0_340] : memref<6x6x16xf32, #tpu.memory_space<vmem>>, vector<1x4x16xf32>
    %311 = vector.shape_cast %310 : vector<1x4x16xf32> to vector<4x16xf32>
    %cst_341 = arith.constant dense<0.000000e+00> : vector<4x16xf32>
    %312 = tpu.matmul %311, %216, %cst_341 {dimension_numbers = #tpu.dot_dimension_numbers<[1], [0], [0], [1], [0, 0, 1, 1], [], []>} : vector<4x16xf32>, vector<16x16xf32>, vector<4x16xf32> -> vector<4x16xf32>
    %313 = arith.addf %309, %312 : vector<4x16xf32>
    %c3_342 = arith.constant 3 : index
    %c2_343 = arith.constant 2 : index
    %c0_344 = arith.constant 0 : index
    %314 = vector.load %arg15[%c3_342, %c2_343, %c0_344] : memref<6x6x16xf32, #tpu.memory_space<vmem>>, vector<1x4x16xf32>
    %315 = vector.shape_cast %314 : vector<1x4x16xf32> to vector<4x16xf32>
    %cst_345 = arith.constant dense<0.000000e+00> : vector<4x16xf32>
    %316 = tpu.matmul %315, %218, %cst_345 {dimension_numbers = #tpu.dot_dimension_numbers<[1], [0], [0], [1], [0, 0, 1, 1], [], []>} : vector<4x16xf32>, vector<16x16xf32>, vector<4x16xf32> -> vector<4x16xf32>
    %317 = arith.addf %313, %316 : vector<4x16xf32>
    %c4_346 = arith.constant 4 : index
    %c0_347 = arith.constant 0 : index
    %c0_348 = arith.constant 0 : index
    %318 = vector.load %arg15[%c4_346, %c0_347, %c0_348] : memref<6x6x16xf32, #tpu.memory_space<vmem>>, vector<1x4x16xf32>
    %319 = vector.shape_cast %318 : vector<1x4x16xf32> to vector<4x16xf32>
    %cst_349 = arith.constant dense<0.000000e+00> : vector<4x16xf32>
    %320 = tpu.matmul %319, %220, %cst_349 {dimension_numbers = #tpu.dot_dimension_numbers<[1], [0], [0], [1], [0, 0, 1, 1], [], []>} : vector<4x16xf32>, vector<16x16xf32>, vector<4x16xf32> -> vector<4x16xf32>
    %321 = arith.addf %317, %320 : vector<4x16xf32>
    %c4_350 = arith.constant 4 : index
    %c1_351 = arith.constant 1 : index
    %c0_352 = arith.constant 0 : index
    %322 = vector.load %arg15[%c4_350, %c1_351, %c0_352] : memref<6x6x16xf32, #tpu.memory_space<vmem>>, vector<1x4x16xf32>
    %323 = vector.shape_cast %322 : vector<1x4x16xf32> to vector<4x16xf32>
    %cst_353 = arith.constant dense<0.000000e+00> : vector<4x16xf32>
    %324 = tpu.matmul %323, %222, %cst_353 {dimension_numbers = #tpu.dot_dimension_numbers<[1], [0], [0], [1], [0, 0, 1, 1], [], []>} : vector<4x16xf32>, vector<16x16xf32>, vector<4x16xf32> -> vector<4x16xf32>
    %325 = arith.addf %321, %324 : vector<4x16xf32>
    %c4_354 = arith.constant 4 : index
    %c2_355 = arith.constant 2 : index
    %c0_356 = arith.constant 0 : index
    %326 = vector.load %arg15[%c4_354, %c2_355, %c0_356] : memref<6x6x16xf32, #tpu.memory_space<vmem>>, vector<1x4x16xf32>
    %327 = vector.shape_cast %326 : vector<1x4x16xf32> to vector<4x16xf32>
    %cst_357 = arith.constant dense<0.000000e+00> : vector<4x16xf32>
    %328 = tpu.matmul %327, %224, %cst_357 {dimension_numbers = #tpu.dot_dimension_numbers<[1], [0], [0], [1], [0, 0, 1, 1], [], []>} : vector<4x16xf32>, vector<16x16xf32>, vector<4x16xf32> -> vector<4x16xf32>
    %329 = arith.addf %325, %328 : vector<4x16xf32>
    %c3_358 = arith.constant 3 : index
    %c0_359 = arith.constant 0 : index
    %c0_360 = arith.constant 0 : index
    %330 = vector.load %arg15[%c3_358, %c0_359, %c0_360] : memref<6x6x16xf32, #tpu.memory_space<vmem>>, vector<1x4x16xf32>
    %331 = vector.shape_cast %330 : vector<1x4x16xf32> to vector<4x16xf32>
    %cst_361 = arith.constant dense<0.000000e+00> : vector<4x16xf32>
    %332 = tpu.matmul %331, %208, %cst_361 {dimension_numbers = #tpu.dot_dimension_numbers<[1], [0], [0], [1], [0, 0, 1, 1], [], []>} : vector<4x16xf32>, vector<16x16xf32>, vector<4x16xf32> -> vector<4x16xf32>
    %c3_362 = arith.constant 3 : index
    %c1_363 = arith.constant 1 : index
    %c0_364 = arith.constant 0 : index
    %333 = vector.load %arg15[%c3_362, %c1_363, %c0_364] : memref<6x6x16xf32, #tpu.memory_space<vmem>>, vector<1x4x16xf32>
    %334 = vector.shape_cast %333 : vector<1x4x16xf32> to vector<4x16xf32>
    %cst_365 = arith.constant dense<0.000000e+00> : vector<4x16xf32>
    %335 = tpu.matmul %334, %210, %cst_365 {dimension_numbers = #tpu.dot_dimension_numbers<[1], [0], [0], [1], [0, 0, 1, 1], [], []>} : vector<4x16xf32>, vector<16x16xf32>, vector<4x16xf32> -> vector<4x16xf32>
    %336 = arith.addf %332, %335 : vector<4x16xf32>
    %c3_366 = arith.constant 3 : index
    %c2_367 = arith.constant 2 : index
    %c0_368 = arith.constant 0 : index
    %337 = vector.load %arg15[%c3_366, %c2_367, %c0_368] : memref<6x6x16xf32, #tpu.memory_space<vmem>>, vector<1x4x16xf32>
    %338 = vector.shape_cast %337 : vector<1x4x16xf32> to vector<4x16xf32>
    %cst_369 = arith.constant dense<0.000000e+00> : vector<4x16xf32>
    %339 = tpu.matmul %338, %212, %cst_369 {dimension_numbers = #tpu.dot_dimension_numbers<[1], [0], [0], [1], [0, 0, 1, 1], [], []>} : vector<4x16xf32>, vector<16x16xf32>, vector<4x16xf32> -> vector<4x16xf32>
    %340 = arith.addf %336, %339 : vector<4x16xf32>
    %c4_370 = arith.constant 4 : index
    %c0_371 = arith.constant 0 : index
    %c0_372 = arith.constant 0 : index
    %341 = vector.load %arg15[%c4_370, %c0_371, %c0_372] : memref<6x6x16xf32, #tpu.memory_space<vmem>>, vector<1x4x16xf32>
    %342 = vector.shape_cast %341 : vector<1x4x16xf32> to vector<4x16xf32>
    %cst_373 = arith.constant dense<0.000000e+00> : vector<4x16xf32>
    %343 = tpu.matmul %342, %214, %cst_373 {dimension_numbers = #tpu.dot_dimension_numbers<[1], [0], [0], [1], [0, 0, 1, 1], [], []>} : vector<4x16xf32>, vector<16x16xf32>, vector<4x16xf32> -> vector<4x16xf32>
    %344 = arith.addf %340, %343 : vector<4x16xf32>
    %c4_374 = arith.constant 4 : index
    %c1_375 = arith.constant 1 : index
    %c0_376 = arith.constant 0 : index
    %345 = vector.load %arg15[%c4_374, %c1_375, %c0_376] : memref<6x6x16xf32, #tpu.memory_space<vmem>>, vector<1x4x16xf32>
    %346 = vector.shape_cast %345 : vector<1x4x16xf32> to vector<4x16xf32>
    %cst_377 = arith.constant dense<0.000000e+00> : vector<4x16xf32>
    %347 = tpu.matmul %346, %216, %cst_377 {dimension_numbers = #tpu.dot_dimension_numbers<[1], [0], [0], [1], [0, 0, 1, 1], [], []>} : vector<4x16xf32>, vector<16x16xf32>, vector<4x16xf32> -> vector<4x16xf32>
    %348 = arith.addf %344, %347 : vector<4x16xf32>
    %c4_378 = arith.constant 4 : index
    %c2_379 = arith.constant 2 : index
    %c0_380 = arith.constant 0 : index
    %349 = vector.load %arg15[%c4_378, %c2_379, %c0_380] : memref<6x6x16xf32, #tpu.memory_space<vmem>>, vector<1x4x16xf32>
    %350 = vector.shape_cast %349 : vector<1x4x16xf32> to vector<4x16xf32>
    %cst_381 = arith.constant dense<0.000000e+00> : vector<4x16xf32>
    %351 = tpu.matmul %350, %218, %cst_381 {dimension_numbers = #tpu.dot_dimension_numbers<[1], [0], [0], [1], [0, 0, 1, 1], [], []>} : vector<4x16xf32>, vector<16x16xf32>, vector<4x16xf32> -> vector<4x16xf32>
    %352 = arith.addf %348, %351 : vector<4x16xf32>
    %c5_382 = arith.constant 5 : index
    %c0_383 = arith.constant 0 : index
    %c0_384 = arith.constant 0 : index
    %353 = vector.load %arg15[%c5_382, %c0_383, %c0_384] : memref<6x6x16xf32, #tpu.memory_space<vmem>>, vector<1x4x16xf32>
    %354 = vector.shape_cast %353 : vector<1x4x16xf32> to vector<4x16xf32>
    %cst_385 = arith.constant dense<0.000000e+00> : vector<4x16xf32>
    %355 = tpu.matmul %354, %220, %cst_385 {dimension_numbers = #tpu.dot_dimension_numbers<[1], [0], [0], [1], [0, 0, 1, 1], [], []>} : vector<4x16xf32>, vector<16x16xf32>, vector<4x16xf32> -> vector<4x16xf32>
    %356 = arith.addf %352, %355 : vector<4x16xf32>
    %c5_386 = arith.constant 5 : index
    %c1_387 = arith.constant 1 : index
    %c0_388 = arith.constant 0 : index
    %357 = vector.load %arg15[%c5_386, %c1_387, %c0_388] : memref<6x6x16xf32, #tpu.memory_space<vmem>>, vector<1x4x16xf32>
    %358 = vector.shape_cast %357 : vector<1x4x16xf32> to vector<4x16xf32>
    %cst_389 = arith.constant dense<0.000000e+00> : vector<4x16xf32>
    %359 = tpu.matmul %358, %222, %cst_389 {dimension_numbers = #tpu.dot_dimension_numbers<[1], [0], [0], [1], [0, 0, 1, 1], [], []>} : vector<4x16xf32>, vector<16x16xf32>, vector<4x16xf32> -> vector<4x16xf32>
    %360 = arith.addf %356, %359 : vector<4x16xf32>
    %c5_390 = arith.constant 5 : index
    %c2_391 = arith.constant 2 : index
    %c0_392 = arith.constant 0 : index
    %361 = vector.load %arg15[%c5_390, %c2_391, %c0_392] : memref<6x6x16xf32, #tpu.memory_space<vmem>>, vector<1x4x16xf32>
    %362 = vector.shape_cast %361 : vector<1x4x16xf32> to vector<4x16xf32>
    %cst_393 = arith.constant dense<0.000000e+00> : vector<4x16xf32>
    %363 = tpu.matmul %362, %224, %cst_393 {dimension_numbers = #tpu.dot_dimension_numbers<[1], [0], [0], [1], [0, 0, 1, 1], [], []>} : vector<4x16xf32>, vector<16x16xf32>, vector<4x16xf32> -> vector<4x16xf32>
    %364 = arith.addf %360, %363 : vector<4x16xf32>
    %365 = arith.maximumf %259, %294 : vector<4x16xf32>
    %c0_394 = arith.constant 0 : index
    %c0_395 = arith.constant 0 : index
    %c0_396 = arith.constant 0 : index
    %366 = vector.load %arg18[%c0_394, %c0_395, %c0_396] : memref<2x4x16xf32, #tpu.memory_space<vmem>>, vector<1x4x16xf32>
    %367 = vector.shape_cast %366 : vector<1x4x16xf32> to vector<4x16xf32>
    %368 = vector.shape_cast %365 : vector<4x16xf32> to vector<1x4x16xf32>
    tpu.vector_store %arg18[%c0_394, %c0_395, %c0_396], %368 {strides = array<i32>} : memref<2x4x16xf32, #tpu.memory_space<vmem>>, vector<1x4x16xf32>,
    %369 = arith.maximumf %329, %364 : vector<4x16xf32>
    %c1_397 = arith.constant 1 : index
    %c0_398 = arith.constant 0 : index
    %c0_399 = arith.constant 0 : index
    %370 = vector.load %arg18[%c1_397, %c0_398, %c0_399] : memref<2x4x16xf32, #tpu.memory_space<vmem>>, vector<1x4x16xf32>
    %371 = vector.shape_cast %370 : vector<1x4x16xf32> to vector<4x16xf32>
    %372 = vector.shape_cast %369 : vector<4x16xf32> to vector<1x4x16xf32>
    tpu.vector_store %arg18[%c1_397, %c0_398, %c0_399], %372 {strides = array<i32>} : memref<2x4x16xf32, #tpu.memory_space<vmem>>, vector<1x4x16xf32>,
    %c0_400 = arith.constant 0 : index
    %c0_401 = arith.constant 0 : index
    %c0_402 = arith.constant 0 : index
    %373 = tpu.strided_load %arg18[%c0_400, %c0_401, %c0_402] {strides = array<i32: 1, 2, 1>} : memref<2x4x16xf32, #tpu.memory_space<vmem>>, vector<2x2x16xf32>
    %c0_403 = arith.constant 0 : index
    %c1_404 = arith.constant 1 : index
    %c0_405 = arith.constant 0 : index
    %374 = tpu.strided_load %arg18[%c0_403, %c1_404, %c0_405] {strides = array<i32: 1, 2, 1>} : memref<2x4x16xf32, #tpu.memory_space<vmem>>, vector<2x2x16xf32>
    %375 = arith.maximumf %373, %374 : vector<2x2x16xf32>
    %c0_406 = arith.constant 0 : index
    %c0_407 = arith.constant 0 : index
    %376 = vector.load %arg7[%c0_406, %c0_407] : memref<1x16xf32, #tpu.memory_space<vmem>>, vector<1x16xf32>
    %377 = vector.shape_cast %376 : vector<1x16xf32> to vector<1x1x16xf32>
    %378 = vector.broadcast %377 : vector<1x1x16xf32> to vector<2x2x16xf32>
    %379 = arith.addf %375, %378 : vector<2x2x16xf32>
    %cst_408 = arith.constant 0.000000e+00 : f32
    %380 = vector.broadcast %cst_408 : f32 to vector<2x2x16xf32>
    %381 = arith.maximumf %379, %380 : vector<2x2x16xf32>
    %382 = vector.extract_strided_slice %381 {offsets = [0, 0, 0], sizes = [1, 1, 16], strides = [1, 1, 1]} : vector<2x2x16xf32> to vector<1x1x16xf32>
    %383 = vector.shape_cast %382 : vector<1x1x16xf32> to vector<1x16xf32>
    %c0_409 = arith.constant 0 : index
    %c0_410 = arith.constant 0 : index
    %c0_411 = arith.constant 0 : index
    %c0_412 = arith.constant 0 : index
    %384 = vector.load %arg8[%c0_409, %c0_410, %c0_411, %c0_412] : memref<2x2x16x1000xf32, #tpu.memory_space<vmem>>, vector<1x1x16x1000xf32>
    %385 = vector.shape_cast %384 : vector<1x1x16x1000xf32> to vector<16x1000xf32>
    %cst_413 = arith.constant dense<0.000000e+00> : vector<1x1000xf32>
    %386 = tpu.matmul %383, %385, %cst_413 {dimension_numbers = #tpu.dot_dimension_numbers<[1], [0], [0], [1], [0, 0, 1, 1], [], []>} : vector<1x16xf32>, vector<16x1000xf32>, vector<1x1000xf32> -> vector<1x1000xf32>
    %387 = vector.extract_strided_slice %381 {offsets = [0, 1, 0], sizes = [1, 1, 16], strides = [1, 1, 1]} : vector<2x2x16xf32> to vector<1x1x16xf32>
    %388 = vector.shape_cast %387 : vector<1x1x16xf32> to vector<1x16xf32>
    %c0_414 = arith.constant 0 : index
    %c1_415 = arith.constant 1 : index
    %c0_416 = arith.constant 0 : index
    %c0_417 = arith.constant 0 : index
    %389 = vector.load %arg8[%c0_414, %c1_415, %c0_416, %c0_417] : memref<2x2x16x1000xf32, #tpu.memory_space<vmem>>, vector<1x1x16x1000xf32>
    %390 = vector.shape_cast %389 : vector<1x1x16x1000xf32> to vector<16x1000xf32>
    %cst_418 = arith.constant dense<0.000000e+00> : vector<1x1000xf32>
    %391 = tpu.matmul %388, %390, %cst_418 {dimension_numbers = #tpu.dot_dimension_numbers<[1], [0], [0], [1], [0, 0, 1, 1], [], []>} : vector<1x16xf32>, vector<16x1000xf32>, vector<1x1000xf32> -> vector<1x1000xf32>
    %392 = arith.addf %386, %391 : vector<1x1000xf32>
    %393 = vector.extract_strided_slice %381 {offsets = [1, 0, 0], sizes = [1, 1, 16], strides = [1, 1, 1]} : vector<2x2x16xf32> to vector<1x1x16xf32>
    %394 = vector.shape_cast %393 : vector<1x1x16xf32> to vector<1x16xf32>
    %c1_419 = arith.constant 1 : index
    %c0_420 = arith.constant 0 : index
    %c0_421 = arith.constant 0 : index
    %c0_422 = arith.constant 0 : index
    %395 = vector.load %arg8[%c1_419, %c0_420, %c0_421, %c0_422] : memref<2x2x16x1000xf32, #tpu.memory_space<vmem>>, vector<1x1x16x1000xf32>
    %396 = vector.shape_cast %395 : vector<1x1x16x1000xf32> to vector<16x1000xf32>
    %cst_423 = arith.constant dense<0.000000e+00> : vector<1x1000xf32>
    %397 = tpu.matmul %394, %396, %cst_423 {dimension_numbers = #tpu.dot_dimension_numbers<[1], [0], [0], [1], [0, 0, 1, 1], [], []>} : vector<1x16xf32>, vector<16x1000xf32>, vector<1x1000xf32> -> vector<1x1000xf32>
    %398 = arith.addf %392, %397 : vector<1x1000xf32>
    %399 = vector.extract_strided_slice %381 {offsets = [1, 1, 0], sizes = [1, 1, 16], strides = [1, 1, 1]} : vector<2x2x16xf32> to vector<1x1x16xf32>
    %400 = vector.shape_cast %399 : vector<1x1x16xf32> to vector<1x16xf32>
    %c1_424 = arith.constant 1 : index
    %c1_425 = arith.constant 1 : index
    %c0_426 = arith.constant 0 : index
    %c0_427 = arith.constant 0 : index
    %401 = vector.load %arg8[%c1_424, %c1_425, %c0_426, %c0_427] : memref<2x2x16x1000xf32, #tpu.memory_space<vmem>>, vector<1x1x16x1000xf32>
    %402 = vector.shape_cast %401 : vector<1x1x16x1000xf32> to vector<16x1000xf32>
    %cst_428 = arith.constant dense<0.000000e+00> : vector<1x1000xf32>
    %403 = tpu.matmul %400, %402, %cst_428 {dimension_numbers = #tpu.dot_dimension_numbers<[1], [0], [0], [1], [0, 0, 1, 1], [], []>} : vector<1x16xf32>, vector<16x1000xf32>, vector<1x1000xf32> -> vector<1x1000xf32>
    %404 = arith.addf %398, %403 : vector<1x1000xf32>
    %c0_429 = arith.constant 0 : index
    %c0_430 = arith.constant 0 : index
    %405 = vector.load %arg9[%c0_429, %c0_430] : memref<1x1000xf32, #tpu.memory_space<vmem>>, vector<1x1000xf32>
    %406 = arith.addf %404, %405 : vector<1x1000xf32>
    %cst_431 = arith.constant 0.000000e+00 : f32
    %407 = vector.broadcast %cst_431 : f32 to vector<1x1000xf32>
    %408 = arith.maximumf %406, %407 : vector<1x1000xf32>
    %c0_432 = arith.constant 0 : index
    %c0_433 = arith.constant 0 : index
    %409 = vector.load %arg10[%c0_432, %c0_433] : memref<1000x10xf32, #tpu.memory_space<vmem>>, vector<1000x10xf32>
    %cst_434 = arith.constant dense<0.000000e+00> : vector<1x10xf32>
    %410 = tpu.matmul %408, %409, %cst_434 {dimension_numbers = #tpu.dot_dimension_numbers<[1], [0], [0], [1], [0, 0, 1, 1], [], []>} : vector<1x1000xf32>, vector<1000x10xf32>, vector<1x10xf32> -> vector<1x10xf32>
    %c0_435 = arith.constant 0 : index
    %c0_436 = arith.constant 0 : index
    %411 = vector.load %arg11[%c0_435, %c0_436] : memref<1x10xf32, #tpu.memory_space<vmem>>, vector<1x10xf32>
    %412 = arith.addf %410, %411 : vector<1x10xf32>
    %c0_437 = arith.constant 0 : index
    %c0_438 = arith.constant 0 : index
    %c0_439 = arith.constant 0 : index
    %413 = vector.load %arg12[%c0_437, %c0_438, %c0_439] : memref<1x1x10xf32, #tpu.memory_space<vmem>>, vector<1x1x10xf32>
    %414 = vector.shape_cast %413 : vector<1x1x10xf32> to vector<1x10xf32>
    %415 = vector.shape_cast %412 : vector<1x10xf32> to vector<1x1x10xf32>
    tpu.vector_store %arg12[%c0_437, %c0_438, %c0_439], %415 {strides = array<i32>} : memref<1x1x10xf32, #tpu.memory_space<vmem>>, vector<1x1x10xf32>,
    return
  }
  func.func @transform_0(%arg0: i32) -> (i32, i32, i32, i32) {
    %c0_i32 = arith.constant 0 : i32
    %c0_i32_0 = arith.constant 0 : i32
    %c0_i32_1 = arith.constant 0 : i32
    %c0_i32_2 = arith.constant 0 : i32
    return %arg0, %c0_i32, %c0_i32_0, %c0_i32_1 : i32, i32, i32, i32
  }
  func.func @transform_1(%arg0: i32) -> (i32, i32, i32, i32) {
    %c0_i32 = arith.constant 0 : i32
    %c0_i32_0 = arith.constant 0 : i32
    %c0_i32_1 = arith.constant 0 : i32
    %c0_i32_2 = arith.constant 0 : i32
    %c0_i32_3 = arith.constant 0 : i32
    return %c0_i32, %c0_i32_0, %c0_i32_1, %c0_i32_2 : i32, i32, i32, i32
  }
  func.func @transform_2(%arg0: i32) -> (i32, i32) {
    %c0_i32 = arith.constant 0 : i32
    %c0_i32_0 = arith.constant 0 : i32
    %c0_i32_1 = arith.constant 0 : i32
    return %c0_i32, %c0_i32_0 : i32, i32
  }
  func.func @transform_3(%arg0: i32) -> (i32, i32, i32, i32) {
    %c0_i32 = arith.constant 0 : i32
    %c0_i32_0 = arith.constant 0 : i32
    %c0_i32_1 = arith.constant 0 : i32
    %c0_i32_2 = arith.constant 0 : i32
    %c0_i32_3 = arith.constant 0 : i32
    return %c0_i32, %c0_i32_0, %c0_i32_1, %c0_i32_2 : i32, i32, i32, i32
  }
  func.func @transform_4(%arg0: i32) -> (i32, i32) {
    %c0_i32 = arith.constant 0 : i32
    %c0_i32_0 = arith.constant 0 : i32
    %c0_i32_1 = arith.constant 0 : i32
    return %c0_i32, %c0_i32_0 : i32, i32
  }
  func.func @transform_5(%arg0: i32) -> (i32, i32, i32, i32) {
    %c0_i32 = arith.constant 0 : i32
    %c0_i32_0 = arith.constant 0 : i32
    %c0_i32_1 = arith.constant 0 : i32
    %c0_i32_2 = arith.constant 0 : i32
    %c0_i32_3 = arith.constant 0 : i32
    return %c0_i32, %c0_i32_0, %c0_i32_1, %c0_i32_2 : i32, i32, i32, i32
  }
  func.func @transform_6(%arg0: i32) -> (i32, i32) {
    %c0_i32 = arith.constant 0 : i32
    %c0_i32_0 = arith.constant 0 : i32
    %c0_i32_1 = arith.constant 0 : i32
    return %c0_i32, %c0_i32_0 : i32, i32
  }
  func.func @transform_7(%arg0: i32) -> (i32, i32, i32, i32) {
    %c0_i32 = arith.constant 0 : i32
    %c0_i32_0 = arith.constant 0 : i32
    %c0_i32_1 = arith.constant 0 : i32
    %c0_i32_2 = arith.constant 0 : i32
    %c0_i32_3 = arith.constant 0 : i32
    return %c0_i32, %c0_i32_0, %c0_i32_1, %c0_i32_2 : i32, i32, i32, i32
  }
  func.func @transform_8(%arg0: i32) -> (i32, i32) {
    %c0_i32 = arith.constant 0 : i32
    %c0_i32_0 = arith.constant 0 : i32
    %c0_i32_1 = arith.constant 0 : i32
    return %c0_i32, %c0_i32_0 : i32, i32
  }
  func.func @transform_9(%arg0: i32) -> (i32, i32) {
    %c0_i32 = arith.constant 0 : i32
    %c0_i32_0 = arith.constant 0 : i32
    %c0_i32_1 = arith.constant 0 : i32
    return %c0_i32, %c0_i32_0 : i32, i32
  }
  func.func @transform_10(%arg0: i32) -> (i32, i32) {
    %c0_i32 = arith.constant 0 : i32
    %c0_i32_0 = arith.constant 0 : i32
    %c0_i32_1 = arith.constant 0 : i32
    return %c0_i32, %c0_i32_0 : i32, i32
  }
  func.func @transform_11(%arg0: i32) -> (i32, i32, i32) {
    %c0_i32 = arith.constant 0 : i32
    %c0_i32_0 = arith.constant 0 : i32
    %c0_i32_1 = arith.constant 0 : i32
    return %arg0, %c0_i32, %c0_i32_0 : i32, i32, i32
  }
}

</mosaic_0001>

<bundles_post_ra>
// kernel: my_model_forward.1
= control target key start
LH: loop header
LB: loop body
LE: loop exit
PB: predicated region body
PF: predicated region fallthrough
CT: control target
= control target key end

     0   :  { %s15171_s0 = inlined_call_operand.vmem [shape: f32[2,16,16,3], index: 0, kind: input, shape index: {}]   ;;  %s15172_s1 = inlined_call_operand.vmem [shape: f32[3,3,3,16], index: 1, kind: input, shape index: {}]   ;;  %s15173_s2 = inlined_call_operand.vmem [shape: f32[1,16], index: 2, kind: input, shape index: {}]   ;;  %s15174_s3 = inlined_call_operand.vmem [shape: f32[3,3,16,16], index: 3, kind: input, shape index: {}]   ;;  %s15175_s4 = inlined_call_operand.vmem [shape: f32[1,16], index: 4, kind: input, shape index: {}]   ;;  %s15176_s5 = inlined_call_operand.vmem [shape: f32[3,3,16,16], index: 5, kind: input, shape index: {}]   ;;  %s15177_s6 = inlined_call_operand.vmem [shape: f32[1,16], index: 6, kind: input, shape index: {}]   ;;  %s15178_s7 = inlined_call_operand.vmem [shape: f32[2,2,16,1000], index: 7, kind: input, shape index: {}]   ;;  %s15179_s8 = inlined_call_operand.vmem [shape: f32[1,1000], index: 8, kind: input, shape index: {}]   ;;  %s15180_s9 = inlined_call_operand.vmem [shape: f32[1000,10], index: 9, kind: input, shape index: {}]   ;;  %s15181_s10 = inlined_call_operand.vmem [shape: f32[1,10], index: 10, kind: input, shape index: {}]   ;;  %s15182_s11 = inlined_call_operand.hbm [shape: f32[2,1,10], index: 11, kind: output, shape index: {}]  }
   0x1   :  { %15247 = sst [smem:[#allocation47_spill]] %s15171_s0 }
   0x2   :  { %16 = vsyncpa [#allocation9], 0 }
   0x3   :  { %18 = vsyncpa [#allocation9 + $0x1], 0  ;;  %s12797_s17 = smov 0   ;;  %s12799_s18 = smov 0  }
   0x4   :  { %s12801_s19 = smov 0   ;;  %s12803_s20 = smov 0  }
   0x5 LB: > { %s12818_s21 = sadd.s32 4294967295, %s12731_s20   ;;  %s9902_s22 = sadd.s32 4294967294, %s12731_s20   ;;  %s12731_s20 = sphi %s12803_s20, %s15347_s20   ;;  %s12727_s19 = sphi %s12801_s19, %s15346_s19   ;;  %s12723_s18 = sphi %s12799_s18, %s15345_s18   ;;  %s12719_s17 = sphi %s12797_s17, %s15344_s17  }
   0x6   : > { %s12822_s23 = sadd.s32 1, %s12731_s20   ;;  %s267_s24 = sadd.s32 1, %s12727_s19 }
   0x7   : > { %s264_s25 = ssub.s32 %s12731_s20, %s12822_s23  ;;  %p277_p0 = scmp.ne.s32.totalorder %s12727_s19, %s12723_s18 }
   0x8   : > { %p265_p1 = scmp.eq.s32.totalorder %s264_s25, 0  ;;  %p278_p2 = scmp.eq.s32.totalorder %s12818_s21, 1 }
   0x9   : > { %p283_p3 = scmp.ne.s32.totalorder %s12723_s18, %s12719_s17  ;;  %p284_p4 = scmp.eq.s32.totalorder %s9902_s22, 1 }
   0xa   : > { %s12833_s26 = scalar_select %p265_p1, %s12727_s19, %s267_s24  }
   0xb   : > { %p12835_p5 = por %p278_p2, %p277_p0  ;;  %p12839_p6 = por %p284_p4, %p283_p3 }
   0xc   : > { %p9905_p7 = scmp.ge.s32.totalorder %s12731_s20, 1  ;;  %p340_p8 = scmp.lt.s32.totalorder %s12731_s20, 3 }
   0xe   : > { %p341_p9 = pnand %p9905_p7, %p340_p8 }
  0x10   : > { %344 = sbr.rel (%p341_p9) target bundleno = 2236 (0x8bc), region = 64 }
  0x17   : > { %v12848_v0 = vld [vmem:[%s15172_s1 + $0x4] sm:$0x7]  ;;  %vm682_vm0 = vcmask 1042432   ;;  %vm416_vm1 = vcmask 23552   ;;  %vm419_vm2 = vcmask 17408   ;;  %v15183_v1 = vmov 0.0  }
  0x18   : > { %11025 = vmatprep.subr.msk.mxu0 %vm682_vm0, %v12848_v0  ;;  %417 = vst.msk [vmem:[#allocation2] sm:$0xff] %vm416_vm1, %v15183_v1  ;;  %418 = vst.msk [vmem:[#allocation2 + $0x8] sm:$0xff] %vm416_vm1, %v15183_v1  ;;  %v505_v2 = vld [vmem:[%s15172_s1] sm:$0x7]  ;;  %p379_p10 = scmp.lt.s32.totalorder %s12818_s21, 1  ;;  %12217 = vmatprep.subr.msk.mxu1 %vm682_vm0, %v12848_v0  ;;  %s15250_s0 = sld [smem:[#allocation47_spill]] }
  0x19   : > { %421 = vst.msk [vmem:[#allocation2 + $0x18] sm:$0xff] %vm416_vm1, %v15183_v1  ;;  %422 = vst.msk [vmem:[#allocation2 + $0x20] sm:$0xff] %vm416_vm1, %v15183_v1  ;;  %11026 = vmatpush3.msk.msra.mxu0 %vm682_vm0, %v12848_v0  ;;  %12218 = vmatpush3.msk.msra.mxu1 %vm682_vm0, %v12848_v0  ;;  %v12983_v6 = vld [vmem:[%s15172_s1 + $0x8] sm:$0x7]  ;;  %v13109_v53 = vld [vmem:[%s15172_s1 + $0xc] sm:$0x7] }
  0x1a   : > { %424 = vst.msk [vmem:[#allocation2 + $0x30] sm:$0xff] %vm416_vm1, %v15183_v1  ;;  %425 = vst.msk [vmem:[#allocation2 + $0x38] sm:$0xff] %vm416_vm1, %v15183_v1  ;;  %11075 = vmatprep.subr.msk.mxu0 %vm682_vm0, %v505_v2  ;;  %s380_s14 = scalar_select %p379_p10, %s12818_s21, 1  ;;  %vm3954_vm3 = vcmask 130048   ;;  %vm4055_vm4 = vcmask 123904   ;;  %vm5445_vm5 = vcmask 128000  }
  0x1b   : > { %427 = vst.msk [vmem:[#allocation2 + $0x48] sm:$0xff] %vm416_vm1, %v15183_v1  ;;  %428 = vst.msk [vmem:[#allocation2 + $0x50] sm:$0xff] %vm416_vm1, %v15183_v1  ;;  %vm12735_vm6 = vmmov 0   ;;  %vm5453_vm7 = vcmask 125952   ;;  %vm9548_vm8 = vcmask 850944   ;;  %s377_s13 = sand.u32 1, %s12723_s18  }
  0x1c   : > { %430 = vst.msk [vmem:[#allocation2 + $0x60] sm:$0xff] %vm416_vm1, %v15183_v1  ;;  %431 = vst.msk [vmem:[#allocation2 + $0x68] sm:$0xff] %vm416_vm1, %v15183_v1  ;;  %s10424_s15 = sshll.u32 %s380_s14, 8  ;;  %s10421_s14 = sshll.u32 %s12818_s21, 4  ;;  %vm9832_vm9 = vcmask 73728  }
  0x1d   : > { %433 = vst.msk [vmem:[#allocation2 + $0x78] sm:$0xff] %vm416_vm1, %v15183_v1  ;;  %434 = vst.msk [vmem:[#allocation2 + $0x80] sm:$0xff] %vm416_vm1, %v15183_v1  ;;  %s15129_s25 = scalar_lea.hbm %s15182_s11, %s10421_s14  ;;  %s9835_s29 = scalar_lea.sflag [#allocation9], %s377_s13 }
  0x1e   : > { %436 = vst.msk [vmem:[#allocation2 + $0x90] sm:$0xff] %vm416_vm1, %v15183_v1  ;;  %437 = vst.msk [vmem:[#allocation2 + $0x98] sm:$0xff] %vm416_vm1, %v15183_v1  ;;  %s12975_s24 = scalar_lea.vmem %s15250_s0, %s10424_s15  ;;  %s378_s15 = scalar_lea.vmem [#allocation8], %s377_s13 }
  0x1f   : > { %439 = vst.msk [vmem:[#allocation2 + $0xa8] sm:$0xff] %vm416_vm1, %v15183_v1  ;;  %440 = vst.msk [vmem:[#allocation2 + $0xb0] sm:$0xff] %vm416_vm1, %v15183_v1  ;;  %v384_v3 = vld [vmem:[%s12975_s24] sm:$0xff]  ;;  %v385_v4 = vld [vmem:[%s12975_s24 + $0x8] sm:$0xff]  ;;  %s9847_s16 = sshll.u32 %s378_s15, 4  ;;  %s12736_s21 = smov [#allocation8]   ;;  %s15131_s16 = int_to_ptr.vmem [resolvable:$true] %s9847_s16 }
  0x20   : > { %442 = vst.msk [vmem:[#allocation2 + $0xc0] sm:$0xff] %vm416_vm1, %v15183_v1  ;;  %443 = vst.msk [vmem:[#allocation2 + $0xc8] sm:$0xff] %vm416_vm1, %v15183_v1  ;;  %v386_v5 = vld [vmem:[%s12975_s24 + $0x10] sm:$0xff]  ;;  %v554_v7 = vld [vmem:[#allocation2 + $0x1] sm:$0xff]  ;;  %s12669_s30 = scalar_lea.vmem %s15131_s16, 16  ;;  %s12673_s12 = sshll.u32 %s12736_s21, 4  ;;  %s12674_s12 = int_to_ptr.vmem [resolvable:$false] %s12673_s12 }
  0x21   : > { %445 = vst.msk [vmem:[#allocation2 + $0xd8] sm:$0xff] %vm416_vm1, %v15183_v1  ;;  %446 = vst.msk [vmem:[#allocation2 + $0xe0] sm:$0xff] %vm416_vm1, %v15183_v1  ;;  %v387_v9 = vld [vmem:[%s12975_s24 + $0x18] sm:$0xff]  ;;  %11027 = vmatprep.mubr.msk.f32.mxu0 %vm416_vm1, %v554_v7  ;;  %v388_v10 = vld [vmem:[%s12975_s24 + $0x20] sm:$0xff]  ;;  %p12670_p11 = scmp.ne.s32.totalorder %s15131_s16, %s12669_s30  ;;  %s12675_s0 = scalar_lea.vmem %s12674_s12, 32 }
  0x22   : > { %448 = vst.msk [vmem:[#allocation2 + $0xf0] sm:$0xff] %vm416_vm1, %v15183_v1  ;;  %449 = vst.msk [vmem:[#allocation2 + $0xf8] sm:$0xff] %vm416_vm1, %v15183_v1  ;;  %v389_v11 = vld [vmem:[%s12975_s24 + $0x28] sm:$0xff]  ;;  %v390_v12 = vld [vmem:[%s12975_s24 + $0x30] sm:$0xff]  ;;  %p12676_p0 = scmp.lt.s32.totalorder %s15131_s16, %s12674_s12  ;;  %p12677_p1 = scmp.lt.s32.totalorder %s12675_s0, %s12669_s30 }
  0x23   : > { %451 = vst.msk [vmem:[#allocation2 + $0x108] sm:$0xff] %vm416_vm1, %v15183_v1  ;;  %452 = vst.msk [vmem:[#allocation2 + $0x110] sm:$0xff] %vm416_vm1, %v15183_v1  ;;  %v391_v13 = vld [vmem:[%s12975_s24 + $0x38] sm:$0xff]  ;;  %v392_v14 = vld [vmem:[%s12975_s24 + $0x40] sm:$0xff]  ;;  %p12671_p12 = pnand %p12670_p11, %p12835_p5 }
  0x24   : > { %454 = vst.msk [vmem:[#allocation2 + $0x120] sm:$0xff] %vm416_vm1, %v15183_v1  ;;  %455 = vst.msk [vmem:[#allocation2 + $0x128] sm:$0xff] %vm416_vm1, %v15183_v1  ;;  %v393_v15 = vld [vmem:[%s12975_s24 + $0x48] sm:$0xff]  ;;  %v394_v16 = vld [vmem:[%s12975_s24 + $0x50] sm:$0xff]  ;;  %p12678_p2 = por %p12677_p1, %p12676_p0 }
  0x25   : > { %457 = vst.msk [vmem:[#allocation2 + $0x138] sm:$0xff] %vm416_vm1, %v15183_v1  ;;  %458 = vst.msk [vmem:[#allocation2 + $0x140] sm:$0xff] %vm416_vm1, %v15183_v1  ;;  %v395_v17 = vld [vmem:[%s12975_s24 + $0x58] sm:$0xff]  ;;  %v396_v18 = vld [vmem:[%s12975_s24 + $0x60] sm:$0xff]  ;;  %p12672_p13 = pneg %p12671_p12 }
  0x26   : > { %460 = vst.msk [vmem:[#allocation2 + $0x150] sm:$0xff] %vm416_vm1, %v15183_v1  ;;  %461 = vst.msk [vmem:[#allocation2 + $0x158] sm:$0xff] %vm416_vm1, %v15183_v1  ;;  %v397_v19 = vld [vmem:[%s12975_s24 + $0x68] sm:$0xff]  ;;  %v398_v20 = vld [vmem:[%s12975_s24 + $0x70] sm:$0xff] }
  0x27   : > { %463 = vst.msk [vmem:[#allocation2 + $0x168] sm:$0xff] %vm416_vm1, %v15183_v1  ;;  %464 = vst.msk [vmem:[#allocation2 + $0x170] sm:$0xff] %vm416_vm1, %v15183_v1  ;;  %v399_v21 = vld [vmem:[%s12975_s24 + $0x78] sm:$0xff]  ;;  %v400_v22 = vld [vmem:[%s12975_s24 + $0x80] sm:$0xff]  ;;  %p12679_p3 = pnand %p12678_p2, %p12672_p13 }
  0x28   : > { %466 = vst.msk [vmem:[#allocation2 + $0x180] sm:$0xff] %vm416_vm1, %v15183_v1  ;;  %467 = vst.msk [vmem:[#allocation2 + $0x188] sm:$0xff] %vm416_vm1, %v15183_v1  ;;  %v401_v23 = vld [vmem:[%s12975_s24 + $0x88] sm:$0xff]  ;;  %v402_v24 = vld [vmem:[%s12975_s24 + $0x90] sm:$0xff] }
  0x29   : > { %469 = vst.msk [vmem:[#allocation2 + $0x198] sm:$0xff] %vm416_vm1, %v15183_v1  ;;  %470 = vst.msk [vmem:[#allocation2 + $0x1a0] sm:$0xff] %vm416_vm1, %v15183_v1  ;;  %v403_v25 = vld [vmem:[%s12975_s24 + $0x98] sm:$0xff]  ;;  %v404_v35 = vld [vmem:[%s12975_s24 + $0xa0] sm:$0xff] }
  0x2a   : > { %420 = vst.msk [vmem:[#allocation2 + $0x10] sm:$0x3] %vm419_vm2, %v15183_v1  ;;  %423 = vst.msk [vmem:[#allocation2 + $0x28] sm:$0x3] %vm419_vm2, %v15183_v1  ;;  %v405_v36 = vld [vmem:[%s12975_s24 + $0xa8] sm:$0xff]  ;;  %v406_v37 = vld [vmem:[%s12975_s24 + $0xb0] sm:$0xff] }
  0x2b   : > { %426 = vst.msk [vmem:[#allocation2 + $0x40] sm:$0x3] %vm419_vm2, %v15183_v1  ;;  %429 = vst.msk [vmem:[#allocation2 + $0x58] sm:$0x3] %vm419_vm2, %v15183_v1  ;;  %v407_v38 = vld [vmem:[%s12975_s24 + $0xb8] sm:$0xff]  ;;  %v408_v39 = vld [vmem:[%s12975_s24 + $0xc0] sm:$0xff] }
  0x2c   : > { %432 = vst.msk [vmem:[#allocation2 + $0x70] sm:$0x3] %vm419_vm2, %v15183_v1  ;;  %435 = vst.msk [vmem:[#allocation2 + $0x88] sm:$0x3] %vm419_vm2, %v15183_v1  ;;  %v409_v40 = vld [vmem:[%s12975_s24 + $0xc8] sm:$0xff]  ;;  %v410_v41 = vld [vmem:[%s12975_s24 + $0xd0] sm:$0xff] }
  0x2d   : > { %438 = vst.msk [vmem:[#allocation2 + $0xa0] sm:$0x3] %vm419_vm2, %v15183_v1  ;;  %441 = vst.msk [vmem:[#allocation2 + $0xb8] sm:$0x3] %vm419_vm2, %v15183_v1  ;;  %v411_v42 = vld [vmem:[%s12975_s24 + $0xd8] sm:$0xff]  ;;  %v412_v43 = vld [vmem:[%s12975_s24 + $0xe0] sm:$0xff] }
  0x2e   : > { %444 = vst.msk [vmem:[#allocation2 + $0xd0] sm:$0x3] %vm419_vm2, %v15183_v1  ;;  %447 = vst.msk [vmem:[#allocation2 + $0xe8] sm:$0x3] %vm419_vm2, %v15183_v1  ;;  %v413_v44 = vld [vmem:[%s12975_s24 + $0xe8] sm:$0xff]  ;;  %v522_v50 = vld [vmem:[#allocation2] sm:$0xff] }
  0x2f   : > { %450 = vst.msk [vmem:[#allocation2 + $0x100] sm:$0x3] %vm419_vm2, %v15183_v1  ;;  %453 = vst.msk [vmem:[#allocation2 + $0x118] sm:$0x3] %vm419_vm2, %v15183_v1  ;;  %v523_v51 = vld [vmem:[#allocation2 + $0x8] sm:$0xff] }
  0x30   : > { %456 = vst.msk [vmem:[#allocation2 + $0x130] sm:$0x3] %vm419_vm2, %v15183_v1  ;;  %459 = vst.msk [vmem:[#allocation2 + $0x148] sm:$0x3] %vm419_vm2, %v15183_v1 }
  0x31   : > { %462 = vst.msk [vmem:[#allocation2 + $0x160] sm:$0x3] %vm419_vm2, %v15183_v1  ;;  %465 = vst.msk [vmem:[#allocation2 + $0x178] sm:$0x3] %vm419_vm2, %v15183_v1  ;;  %v555_v8 = vld [vmem:[#allocation2 + $0x9] sm:$0xff] }
  0x32   : > { %468 = vst.msk [vmem:[#allocation2 + $0x190] sm:$0x3] %vm419_vm2, %v15183_v1  ;;  %471 = vst.msk [vmem:[#allocation2 + $0x1a8] sm:$0x3] %vm419_vm2, %v15183_v1  ;;  %11028 = vmatmul.mubr.msk.f32.vlgmr.msra.gmra.mrb[0].mxu0 %vm416_vm1, %v555_v8 }
  0x33   : > { %473 = vst.msk [vmem:[#allocation2 + $0x19] sm:$0xff] %vm416_vm1, %v384_v3  ;;  %474 = vst.msk [vmem:[#allocation2 + $0x21] sm:$0xff] %vm416_vm1, %v385_v4  ;;  %11076 = vmatpush3.msk.msra.mxu0 %vm682_vm0, %v505_v2 }
  0x34   : > { %475 = vst.msk [vmem:[#allocation2 + $0x31] sm:$0xff] %vm416_vm1, %v386_v5  ;;  %476 = vst.msk [vmem:[#allocation2 + $0x39] sm:$0xff] %vm416_vm1, %v387_v9  ;;  %11125 = vmatprep.subr.msk.mxu0 %vm682_vm0, %v12983_v6 }
  0x35   : > { %477 = vst.msk [vmem:[#allocation2 + $0x49] sm:$0xff] %vm416_vm1, %v388_v10  ;;  %478 = vst.msk [vmem:[#allocation2 + $0x51] sm:$0xff] %vm416_vm1, %v389_v11 }
  0x36   : > { %479 = vst.msk [vmem:[#allocation2 + $0x61] sm:$0xff] %vm416_vm1, %v390_v12  ;;  %480 = vst.msk [vmem:[#allocation2 + $0x69] sm:$0xff] %vm416_vm1, %v391_v13 }
  0x37   : > { %481 = vst.msk [vmem:[#allocation2 + $0x79] sm:$0xff] %vm416_vm1, %v392_v14  ;;  %482 = vst.msk [vmem:[#allocation2 + $0x81] sm:$0xff] %vm416_vm1, %v393_v15 }
  0x38   : > { %483 = vst.msk [vmem:[#allocation2 + $0x91] sm:$0xff] %vm416_vm1, %v394_v16  ;;  %484 = vst.msk [vmem:[#allocation2 + $0x99] sm:$0xff] %vm416_vm1, %v395_v17  ;;  %v414_v17 = vld [vmem:[%s12975_s24 + $0xf0] sm:$0xff] }
  0x39   : > { %485 = vst.msk [vmem:[#allocation2 + $0xa9] sm:$0xff] %vm416_vm1, %v396_v18  ;;  %486 = vst.msk [vmem:[#allocation2 + $0xb1] sm:$0xff] %vm416_vm1, %v397_v19  ;;  %v415_v18 = vld [vmem:[%s12975_s24 + $0xf8] sm:$0xff] }
  0x3a   : > { %487 = vst.msk [vmem:[#allocation2 + $0xc1] sm:$0xff] %vm416_vm1, %v398_v20  ;;  %488 = vst.msk [vmem:[#allocation2 + $0xc9] sm:$0xff] %vm416_vm1, %v399_v21  ;;  %v13024_v26 = vld [vmem:[#allocation2 + $0x19] sm:$0xff]  ;;  %v13026_v27 = vld [vmem:[#allocation2 + $0x21] sm:$0xff] }
  0x3b   : > { %489 = vst.msk [vmem:[#allocation2 + $0xd9] sm:$0xff] %vm416_vm1, %v400_v22  ;;  %v13028_v28 = vld [vmem:[#allocation2 + $0x31] sm:$0xff]  ;;  %490 = vst.msk [vmem:[#allocation2 + $0xe1] sm:$0xff] %vm416_vm1, %v401_v23  ;;  %11030 = vmatprep.mubr.msk.f32.mxu0 %vm416_vm1, %v13024_v26  ;;  %v13039_v29 = vld [vmem:[#allocation2 + $0x39] sm:$0xff] }
  0x3c   : > { %491 = vst.msk [vmem:[#allocation2 + $0xf1] sm:$0xff] %vm416_vm1, %v402_v24  ;;  %492 = vst.msk [vmem:[#allocation2 + $0xf9] sm:$0xff] %vm416_vm1, %v403_v25  ;;  %11031 = vmatmul.mubr.msk.f32.gmra.mrb[2].mxu0 %vm416_vm1, %v13026_v27  ;;  %v13041_v30 = vld [vmem:[#allocation2 + $0x49] sm:$0xff]  ;;  %v13047_v31 = vld [vmem:[#allocation2 + $0x51] sm:$0xff] }
  0x3d   : > { %11033 = vmatprep.mubr.msk.f32.mxu0 %vm416_vm1, %v13028_v28  ;;  %v13049_v32 = vld [vmem:[#allocation2 + $0x61] sm:$0xff]  ;;  %v13053_v33 = vld [vmem:[#allocation2 + $0x69] sm:$0xff]  ;;  %493 = vst.msk [vmem:[#allocation2 + $0x109] sm:$0xff] %vm416_vm1, %v404_v35  ;;  %494 = vst.msk [vmem:[#allocation2 + $0x111] sm:$0xff] %vm416_vm1, %v405_v36 }
  0x3e   : > { %v13057_v34 = vld [vmem:[#allocation2 + $0x79] sm:$0xff]  ;;  %495 = vst.msk [vmem:[#allocation2 + $0x121] sm:$0xff] %vm416_vm1, %v406_v37  ;;  %496 = vst.msk [vmem:[#allocation2 + $0x129] sm:$0xff] %vm416_vm1, %v407_v38  ;;  %v13081_v45 = vld [vmem:[#allocation2 + $0x81] sm:$0xff] }
  0x3f   : > { %497 = vst.msk [vmem:[#allocation2 + $0x139] sm:$0xff] %vm416_vm1, %v408_v39  ;;  %498 = vst.msk [vmem:[#allocation2 + $0x141] sm:$0xff] %vm416_vm1, %v409_v40  ;;  %v13085_v46 = vld [vmem:[#allocation2 + $0x91] sm:$0xff]  ;;  %v13091_v47 = vld [vmem:[#allocation2 + $0x99] sm:$0xff] }
  0x40   : > { %11034 = vmatmul.mubr.msk.f32.gmra.mrb[4].mxu0 %vm416_vm1, %v13039_v29  ;;  %499 = vst.msk [vmem:[#allocation2 + $0x151] sm:$0xff] %vm416_vm1, %v410_v41  ;;  %500 = vst.msk [vmem:[#allocation2 + $0x159] sm:$0xff] %vm416_vm1, %v411_v42  ;;  %v13093_v48 = vld [vmem:[#allocation2 + $0xa9] sm:$0xff]  ;;  %v13099_v49 = vld [vmem:[#allocation2 + $0xb1] sm:$0xff] }
  0x41   : > { %11036 = vmatprep.mubr.msk.f32.mxu0 %vm416_vm1, %v13041_v30  ;;  %501 = vst.msk [vmem:[#allocation2 + $0x169] sm:$0xff] %vm416_vm1, %v412_v43  ;;  %502 = vst.msk [vmem:[#allocation2 + $0x171] sm:$0xff] %vm416_vm1, %v413_v44  ;;  %v13104_v52 = vld [vmem:[#allocation2 + $0x18] sm:$0xff]  ;;  %v13116_v54 = vld [vmem:[#allocation2 + $0x20] sm:$0xff] }
  0x42   : > { %v13118_v55 = vld [vmem:[#allocation2 + $0x30] sm:$0xff]  ;;  %v13126_v56 = vld [vmem:[#allocation2 + $0x38] sm:$0xff]  ;;  %v13128_v57 = vld [vmem:[#allocation2 + $0x48] sm:$0xff]  ;;  %503 = vst.msk [vmem:[#allocation2 + $0x181] sm:$0xff] %vm416_vm1, %v414_v17 }
  0x43   : > { %v13134_v58 = vld [vmem:[#allocation2 + $0x50] sm:$0xff]  ;;  %v13136_v59 = vld [vmem:[#allocation2 + $0x60] sm:$0xff]  ;;  %v13142_v60 = vld [vmem:[#allocation2 + $0x68] sm:$0xff]  ;;  %504 = vst.msk [vmem:[#allocation2 + $0x189] sm:$0xff] %vm416_vm1, %v415_v18 }
  0x44   : > { %11037 = vmatmul.mubr.msk.f32.gmra.mrb[6].mxu0 %vm416_vm1, %v13047_v31  ;;  %v13144_v61 = vld [vmem:[#allocation2 + $0x78] sm:$0xff]  ;;  %v13150_v62 = vld [vmem:[#allocation2 + $0x80] sm:$0xff]  ;;  %v13152_v63 = vld [vmem:[#allocation2 + $0x90] sm:$0xff] }
  0x45   : > { %11039 = vmatprep.mubr.msk.f32.mxu0 %vm416_vm1, %v13049_v32  ;;  %v13158_v0 = vld [vmem:[#allocation2 + $0x98] sm:$0xff]  ;;  %v13160_v2 = vld [vmem:[#allocation2 + $0xa8] sm:$0xff]  ;;  %v13166_v3 = vld [vmem:[#allocation2 + $0xb0] sm:$0xff] }
  0x46   : > { %v13168_v4 = vld [vmem:[#allocation2 + $0xc0] sm:$0xff]  ;;  %v13174_v5 = vld [vmem:[#allocation2 + $0xc8] sm:$0xff]  ;;  %v13184_v8 = vld [vmem:[#allocation2 + $0xf0] sm:$0xff] }
  0x47   : > { %v13182_v7 = vld [vmem:[#allocation2 + $0xe0] sm:$0xff]  ;;  %v13190_v9 = vld [vmem:[#allocation2 + $0xf8] sm:$0xff]  ;;  %v13192_v10 = vld [vmem:[#allocation2 + $0x108] sm:$0xff] }
  0x48   : > { %11040 = vmatmul.mubr.msk.f32.gmra.mrb[8].mxu0 %vm416_vm1, %v13053_v33  ;;  %v13198_v11 = vld [vmem:[#allocation2 + $0x110] sm:$0xff]  ;;  %v13200_v12 = vld [vmem:[#allocation2 + $0x120] sm:$0xff]  ;;  %v13206_v13 = vld [vmem:[#allocation2 + $0x128] sm:$0xff] }
  0x49   : > { %11042 = vmatprep.mubr.msk.f32.mxu0 %vm416_vm1, %v13057_v34  ;;  %v13208_v14 = vld [vmem:[#allocation2 + $0x138] sm:$0xff]  ;;  %v13214_v15 = vld [vmem:[#allocation2 + $0x140] sm:$0xff]  ;;  %v13216_v16 = vld [vmem:[#allocation2 + $0x150] sm:$0xff] }
  0x4a   : > { %v13226_v19 = vld [vmem:[#allocation2 + $0x158] sm:$0xff]  ;;  %v13228_v20 = vld [vmem:[#allocation2 + $0x168] sm:$0xff]  ;;  %v13234_v21 = vld [vmem:[#allocation2 + $0x170] sm:$0xff] }
  0x4b   : > { %v1235_v22 = vld [vmem:[#allocation2 + $0x2] sm:$0xff]  ;;  %v1236_v23 = vld [vmem:[#allocation2 + $0xa] sm:$0xff]  ;;  %v13239_v24 = vld [vmem:[#allocation2 + $0x1a] sm:$0xff] }
  0x4c   : > { %11043 = vmatmul.mubr.msk.f32.gmra.mrb[10].mxu0 %vm416_vm1, %v13081_v45  ;;  %15251 = vst [vmem:[#allocation11_spill] sm:$0xff] %v13239_v24  ;;  %v13244_v25 = vld [vmem:[%s15172_s1 + $0x10] sm:$0x7]  ;;  %v13251_v35 = vld [vmem:[#allocation2 + $0x22] sm:$0xff]  ;;  %v13261_v37 = vld [vmem:[#allocation2 + $0x3a] sm:$0xff] }
  0x4d   : > { %11045 = vmatprep.mubr.msk.f32.mxu0 %vm416_vm1, %v13085_v46  ;;  %15252 = vst [vmem:[#allocation12_spill] sm:$0xff] %v13251_v35  ;;  %v13253_v36 = vld [vmem:[#allocation2 + $0x32] sm:$0xff]  ;;  %15254 = vst [vmem:[#allocation14_spill] sm:$0xff] %v13261_v37  ;;  %v13263_v38 = vld [vmem:[#allocation2 + $0x4a] sm:$0xff] }
  0x4e   : > { %15253 = vst [vmem:[#allocation13_spill] sm:$0xff] %v13253_v36  ;;  %15255 = vst [vmem:[#allocation15_spill] sm:$0xff] %v13263_v38  ;;  %v13269_v39 = vld [vmem:[#allocation2 + $0x52] sm:$0xff]  ;;  %v13271_v40 = vld [vmem:[#allocation2 + $0x62] sm:$0xff] }
  0x4f   : > { %15256 = vst [vmem:[#allocation16_spill] sm:$0xff] %v13269_v39  ;;  %15257 = vst [vmem:[#allocation17_spill] sm:$0xff] %v13271_v40  ;;  %v13277_v41 = vld [vmem:[#allocation2 + $0x6a] sm:$0xff]  ;;  %v13279_v42 = vld [vmem:[#allocation2 + $0x7a] sm:$0xff] }
  0x50   : > { %11046 = vmatmul.mubr.msk.f32.gmra.mrb[12].mxu0 %vm416_vm1, %v13091_v47  ;;  %15258 = vst [vmem:[#allocation18_spill] sm:$0xff] %v13277_v41  ;;  %15259 = vst [vmem:[#allocation19_spill] sm:$0xff] %v13279_v42  ;;  %v13285_v43 = vld [vmem:[#allocation2 + $0x82] sm:$0xff]  ;;  %v13287_v44 = vld [vmem:[#allocation2 + $0x92] sm:$0xff] }
  0x51   : > { %11048 = vmatprep.mubr.msk.f32.mxu0 %vm416_vm1, %v13093_v48  ;;  %15260 = vst [vmem:[#allocation20_spill] sm:$0xff] %v13285_v43  ;;  %15261 = vst [vmem:[#allocation21_spill] sm:$0xff] %v13287_v44  ;;  %v13303_v17 = vld [vmem:[#allocation2 + $0xb2] sm:$0xff]  ;;  %v13305_v18 = vld [vmem:[#allocation2 + $0xc9] sm:$0xff] }
  0x52   : > { %15264 = vst [vmem:[#allocation24_spill] sm:$0xff] %v13303_v17  ;;  %v13319_v1 = vld [vmem:[#allocation2 + $0xca] sm:$0xff] }
  0x53   : > { %15266 = vst [vmem:[#allocation26_spill] sm:$0xff] %v13319_v1 }
  0x54   : > { %11049 = vmatmul.mubr.msk.f32.gmra.mrb[14].mxu0 %vm416_vm1, %v13099_v49 }
  0x55   : > { %11077 = vmatprep.mubr.msk.f32.mxu0 %vm416_vm1, %v522_v50  ;;  %v13293_v50 = vld [vmem:[#allocation2 + $0x9a] sm:$0xff] }
  0x56   : > { %15262 = vst [vmem:[#allocation22_spill] sm:$0xff] %v13293_v50 }
  0x58   : > { %11078 = vmatmul.mubr.msk.f32.vlgmr.msra.gmra.mrb[0].mxu0 %vm416_vm1, %v523_v51  ;;  %v13295_v51 = vld [vmem:[#allocation2 + $0xaa] sm:$0xff] }
  0x59   : > { %11126 = vmatpush3.msk.msra.mxu0 %vm682_vm0, %v12983_v6  ;;  %11080 = vmatprep.mubr.msk.f32.mxu0 %vm416_vm1, %v13104_v52  ;;  %v13176_v6 = vld [vmem:[#allocation2 + $0xd8] sm:$0xff]  ;;  %15263 = vst [vmem:[#allocation23_spill] sm:$0xff] %v13295_v51 }
  0x5a   : > { %11175 = vmatprep.subr.msk.mxu0 %vm682_vm0, %v13109_v53 }
  0x5c   : > { %11081 = vmatmul.mubr.msk.f32.gmra.mrb[2].mxu0 %vm416_vm1, %v13116_v54 }
  0x5d   : > { %11083 = vmatprep.mubr.msk.f32.mxu0 %vm416_vm1, %v13118_v55 }
  0x60   : > { %11084 = vmatmul.mubr.msk.f32.gmra.mrb[4].mxu0 %vm416_vm1, %v13126_v56 }
  0x61   : > { %11086 = vmatprep.mubr.msk.f32.mxu0 %vm416_vm1, %v13128_v57 }
  0x64   : > { %11087 = vmatmul.mubr.msk.f32.gmra.mrb[6].mxu0 %vm416_vm1, %v13134_v58 }
  0x65   : > { %11089 = vmatprep.mubr.msk.f32.mxu0 %vm416_vm1, %v13136_v59 }
  0x68   : > { %11090 = vmatmul.mubr.msk.f32.gmra.mrb[8].mxu0 %vm416_vm1, %v13142_v60 }
  0x69   : > { %11092 = vmatprep.mubr.msk.f32.mxu0 %vm416_vm1, %v13144_v61 }
  0x6c   : > { %11093 = vmatmul.mubr.msk.f32.gmra.mrb[10].mxu0 %vm416_vm1, %v13150_v62 }
  0x6d   : > { %11095 = vmatprep.mubr.msk.f32.mxu0 %vm416_vm1, %v13152_v63 }
  0x70   : > { %11096 = vmatmul.mubr.msk.f32.gmra.mrb[12].mxu0 %vm416_vm1, %v13158_v0 }
  0x71   : > { %11098 = vmatprep.mubr.msk.f32.mxu0 %vm416_vm1, %v13160_v2 }
  0x74   : > { %11099 = vmatmul.mubr.msk.f32.gmra.mrb[14].mxu0 %vm416_vm1, %v13166_v3 }
  0x75   : > { %11101 = vmatprep.mubr.msk.f32.mxu0 %vm416_vm1, %v13168_v4 }
  0x78   : > { %11102 = vmatmul.mubr.msk.f32.gmra.mrb[16].mxu0 %vm416_vm1, %v13174_v5 }
  0x79   : > { %11104 = vmatprep.mubr.msk.f32.mxu0 %vm416_vm1, %v13176_v6 }
  0x7c   : > { %11105 = vmatmul.mubr.msk.f32.gmra.mrb[18].mxu0 %vm416_vm1, %v13182_v7 }
  0x7d   : > { %11107 = vmatprep.mubr.msk.f32.mxu0 %vm416_vm1, %v13184_v8 }
  0x80   : > { %11108 = vmatmul.mubr.msk.f32.gmra.mrb[20].mxu0 %vm416_vm1, %v13190_v9 }
  0x81   : > { %11110 = vmatprep.mubr.msk.f32.mxu0 %vm416_vm1, %v13192_v10 }
  0x84   : > { %11111 = vmatmul.mubr.msk.f32.gmra.mrb[22].mxu0 %vm416_vm1, %v13198_v11 }
  0x85   : > { %11113 = vmatprep.mubr.msk.f32.mxu0 %vm416_vm1, %v13200_v12 }
  0x88   : > { %11114 = vmatmul.mubr.msk.f32.gmra.mrb[24].mxu0 %vm416_vm1, %v13206_v13 }
  0x89   : > { %11116 = vmatprep.mubr.msk.f32.mxu0 %vm416_vm1, %v13208_v14 }
  0x8c   : > { %11117 = vmatmul.mubr.msk.f32.gmra.mrb[26].mxu0 %vm416_vm1, %v13214_v15 }
  0x8d   : > { %11119 = vmatprep.mubr.msk.f32.mxu0 %vm416_vm1, %v13216_v16 }
  0x90   : > { %11120 = vmatmul.mubr.msk.f32.gmra.mrb[28].mxu0 %vm416_vm1, %v13226_v19 }
  0x91   : > { %11122 = vmatprep.mubr.msk.f32.mxu0 %vm416_vm1, %v13228_v20 }
  0x94   : > { %11123 = vmatmul.mubr.msk.f32.gmra.mrb[30].mxu0 %vm416_vm1, %v13234_v21 }
  0x95   : > { %11127 = vmatprep.mubr.msk.f32.mxu0 %vm416_vm1, %v1235_v22  ;;  %v13309_v22 = vld [vmem:[#allocation2 + $0xc2] sm:$0xff] }
  0x96   : > { %15265 = vst [vmem:[#allocation25_spill] sm:$0xff] %v13309_v22 }
  0x98   : > { %11128 = vmatmul.mubr.msk.f32.vlgmr.msra.gmra.mrb[0].mxu0 %vm416_vm1, %v1236_v23  ;;  %v13315_v23 = vld [vmem:[#allocation2 + $0xd9] sm:$0xff] }
  0x99   : > { %11176 = vmatpush3.msk.msra.mxu0 %vm682_vm0, %v13109_v53  ;;  %11130 = vmatprep.mubr.msk.f32.mxu0 %vm416_vm1, %v13239_v24  ;;  %v13299_v53 = vld [vmem:[#allocation2 + $0xc1] sm:$0xff]  ;;  %v13417_v24 = vld [vmem:[#allocation2 + $0x171] sm:$0xff] }
  0x9a   : > { %11225 = vmatprep.subr.msk.mxu0 %vm682_vm0, %v13244_v25  ;;  %11051 = vmatprep.mubr.msk.f32.mxu1 %vm416_vm1, %v13299_v53  ;;  %15283 = vst [vmem:[#allocation43_spill] sm:$0xff] %v13417_v24 }
  0x9b   : > { %11052 = vmatmul.mubr.msk.f32.vlgmr.msra.gmra.mrb[0].mxu1 %vm416_vm1, %v13305_v18 }
  0x9c   : > { %11131 = vmatmul.mubr.msk.f32.gmra.mrb[2].mxu0 %vm416_vm1, %v13251_v35  ;;  %11054 = vmatprep.mubr.msk.f32.mxu1 %vm416_vm1, %v13315_v23  ;;  %v13405_v35 = vld [vmem:[#allocation2 + $0x152] sm:$0xff] }
  0x9d   : > { %11133 = vmatprep.mubr.msk.f32.mxu0 %vm416_vm1, %v13253_v36  ;;  %v13401_v36 = vld [vmem:[#allocation2 + $0x159] sm:$0xff]  ;;  %15281 = vst [vmem:[#allocation41_spill] sm:$0xff] %v13405_v35 }
  0x9e   : > { %15280 = vst [vmem:[#allocation40_spill] sm:$0xff] %v13401_v36 }
  0xa0   : > { %11134 = vmatmul.mubr.msk.f32.gmra.mrb[4].mxu0 %vm416_vm1, %v13261_v37  ;;  %v13389_v37 = vld [vmem:[#allocation2 + $0x13a] sm:$0xff] }
  0xa1   : > { %11136 = vmatprep.mubr.msk.f32.mxu0 %vm416_vm1, %v13263_v38  ;;  %v13385_v38 = vld [vmem:[#allocation2 + $0x141] sm:$0xff]  ;;  %15277 = vst [vmem:[#allocation37_spill] sm:$0xff] %v13389_v37 }
  0xa2   : > { %15276 = vst [vmem:[#allocation36_spill] sm:$0xff] %v13385_v38 }
  0xa4   : > { %11137 = vmatmul.mubr.msk.f32.gmra.mrb[6].mxu0 %vm416_vm1, %v13269_v39  ;;  %v13373_v39 = vld [vmem:[#allocation2 + $0x122] sm:$0xff] }
  0xa5   : > { %11139 = vmatprep.mubr.msk.f32.mxu0 %vm416_vm1, %v13271_v40  ;;  %v13369_v40 = vld [vmem:[#allocation2 + $0x129] sm:$0xff]  ;;  %15273 = vst [vmem:[#allocation33_spill] sm:$0xff] %v13373_v39 }
  0xa8   : > { %11140 = vmatmul.mubr.msk.f32.gmra.mrb[8].mxu0 %vm416_vm1, %v13277_v41  ;;  %v13357_v41 = vld [vmem:[#allocation2 + $0x10a] sm:$0xff] }
  0xa9   : > { %11142 = vmatprep.mubr.msk.f32.mxu0 %vm416_vm1, %v13279_v42  ;;  %v13353_v42 = vld [vmem:[#allocation2 + $0x111] sm:$0xff]  ;;  %15271 = vst [vmem:[#allocation31_spill] sm:$0xff] %v13357_v41 }
  0xac   : > { %11143 = vmatmul.mubr.msk.f32.gmra.mrb[10].mxu0 %vm416_vm1, %v13285_v43  ;;  %v13341_v43 = vld [vmem:[#allocation2 + $0xf2] sm:$0xff] }
  0xad   : > { %11145 = vmatprep.mubr.msk.f32.mxu0 %vm416_vm1, %v13287_v44  ;;  %v13337_v44 = vld [vmem:[#allocation2 + $0xf9] sm:$0xff]  ;;  %15269 = vst [vmem:[#allocation29_spill] sm:$0xff] %v13341_v43 }
  0xb0   : > { %11146 = vmatmul.mubr.msk.f32.gmra.mrb[12].mxu0 %vm416_vm1, %v13293_v50  ;;  %v13325_v50 = vld [vmem:[#allocation2 + $0xda] sm:$0xff] }
  0xb1   : > { %11148 = vmatprep.mubr.msk.f32.mxu0 %vm416_vm1, %v13295_v51  ;;  %v13321_v51 = vld [vmem:[#allocation2 + $0xe1] sm:$0xff]  ;;  %15267 = vst [vmem:[#allocation27_spill] sm:$0xff] %v13325_v50 }
  0xb2   : > { %11055 = vmatmul.mubr.msk.f32.gmra.mrb[2].mxu1 %vm416_vm1, %v13321_v51 }
  0xb4   : > { %11149 = vmatmul.mubr.msk.f32.gmra.mrb[14].mxu0 %vm416_vm1, %v13303_v17  ;;  %v13331_v17 = vld [vmem:[#allocation2 + $0xf1] sm:$0xff] }
  0xb5   : > { %11151 = vmatprep.mubr.msk.f32.mxu0 %vm416_vm1, %v13309_v22  ;;  %v13335_v22 = vld [vmem:[#allocation2 + $0xe2] sm:$0xff]  ;;  %11057 = vmatprep.mubr.msk.f32.mxu1 %vm416_vm1, %v13331_v17 }
  0xb6   : > { %15268 = vst [vmem:[#allocation28_spill] sm:$0xff] %v13335_v22  ;;  %11058 = vmatmul.mubr.msk.f32.gmra.mrb[4].mxu1 %vm416_vm1, %v13337_v44 }
  0xb8   : > { %11152 = vmatmul.mubr.msk.f32.gmra.mrb[16].mxu0 %vm416_vm1, %v13319_v1  ;;  %v13347_v1 = vld [vmem:[#allocation2 + $0x109] sm:$0xff] }
  0xb9   : > { %11154 = vmatprep.mubr.msk.f32.mxu0 %vm416_vm1, %v13325_v50  ;;  %v13351_v50 = vld [vmem:[#allocation2 + $0xfa] sm:$0xff]  ;;  %11060 = vmatprep.mubr.msk.f32.mxu1 %vm416_vm1, %v13347_v1 }
  0xba   : > { %15270 = vst [vmem:[#allocation30_spill] sm:$0xff] %v13351_v50  ;;  %11061 = vmatmul.mubr.msk.f32.gmra.mrb[6].mxu1 %vm416_vm1, %v13353_v42 }
  0xbc   : > { %11155 = vmatmul.mubr.msk.f32.gmra.mrb[18].mxu0 %vm416_vm1, %v13335_v22  ;;  %v13363_v22 = vld [vmem:[#allocation2 + $0x121] sm:$0xff] }
  0xbd   : > { %11157 = vmatprep.mubr.msk.f32.mxu0 %vm416_vm1, %v13341_v43  ;;  %v13367_v43 = vld [vmem:[#allocation2 + $0x112] sm:$0xff]  ;;  %11063 = vmatprep.mubr.msk.f32.mxu1 %vm416_vm1, %v13363_v22 }
  0xbe   : > { %15272 = vst [vmem:[#allocation32_spill] sm:$0xff] %v13367_v43  ;;  %11064 = vmatmul.mubr.msk.f32.gmra.mrb[8].mxu1 %vm416_vm1, %v13369_v40 }
  0xc0   : > { %11158 = vmatmul.mubr.msk.f32.gmra.mrb[20].mxu0 %vm416_vm1, %v13351_v50  ;;  %v13379_v50 = vld [vmem:[#allocation2 + $0x139] sm:$0xff] }
  0xc1   : > { %11160 = vmatprep.mubr.msk.f32.mxu0 %vm416_vm1, %v13357_v41  ;;  %15274 = vst [vmem:[#allocation34_spill] sm:$0xff] %v13379_v50  ;;  %v13383_v41 = vld [vmem:[#allocation2 + $0x12a] sm:$0xff]  ;;  %11066 = vmatprep.mubr.msk.f32.mxu1 %vm416_vm1, %v13379_v50 }
  0xc2   : > { %15275 = vst [vmem:[#allocation35_spill] sm:$0xff] %v13383_v41  ;;  %11067 = vmatmul.mubr.msk.f32.gmra.mrb[10].mxu1 %vm416_vm1, %v13385_v38 }
  0xc4   : > { %11161 = vmatmul.mubr.msk.f32.gmra.mrb[22].mxu0 %vm416_vm1, %v13367_v43  ;;  %v13395_v43 = vld [vmem:[#allocation2 + $0x151] sm:$0xff] }
  0xc5   : > { %11163 = vmatprep.mubr.msk.f32.mxu0 %vm416_vm1, %v13373_v39  ;;  %15278 = vst [vmem:[#allocation38_spill] sm:$0xff] %v13395_v43  ;;  %v13399_v39 = vld [vmem:[#allocation2 + $0x142] sm:$0xff]  ;;  %11069 = vmatprep.mubr.msk.f32.mxu1 %vm416_vm1, %v13395_v43  ;;  %v13421_v43 = vld [vmem:[#allocation2 + $0x16a] sm:$0xff] }
  0xc6   : > { %15279 = vst [vmem:[#allocation39_spill] sm:$0xff] %v13399_v39  ;;  %11070 = vmatmul.mubr.msk.f32.gmra.mrb[12].mxu1 %vm416_vm1, %v13401_v36  ;;  %15284 = vst [vmem:[#allocation44_spill] sm:$0xff] %v13421_v43 }
  0xc8   : > { %11164 = vmatmul.mubr.msk.f32.gmra.mrb[24].mxu0 %vm416_vm1, %v13383_v41  ;;  %v13411_v41 = vld [vmem:[#allocation2 + $0x169] sm:$0xff] }
  0xc9   : > { %11166 = vmatprep.mubr.msk.f32.mxu0 %vm416_vm1, %v13389_v37  ;;  %15282 = vst [vmem:[#allocation42_spill] sm:$0xff] %v13411_v41  ;;  %v13415_v37 = vld [vmem:[#allocation2 + $0x15a] sm:$0xff]  ;;  %11072 = vmatprep.mubr.msk.f32.mxu1 %vm416_vm1, %v13411_v41 }
  0xca   : > { %11073 = vmatmul.mubr.msk.f32.gmra.mrb[14].mxu1 %vm416_vm1, %v13417_v24 }
  0xcc   : > { %11167 = vmatmul.mubr.msk.f32.gmra.mrb[26].mxu0 %vm416_vm1, %v13399_v39  ;;  %v13429_v39 = vld [vmem:[#allocation2 + $0x172] sm:$0xff] }
  0xcd   : > { %11169 = vmatprep.mubr.msk.f32.mxu0 %vm416_vm1, %v13405_v35  ;;  %v9912_v35 = vld [vmem:[%s15172_s1 + $0x14] sm:$0x7] }
  0xd0   : > { %11170 = vmatmul.mubr.msk.f32.gmra.mrb[28].mxu0 %vm416_vm1, %v13415_v37 }
  0xd1   : > { %11172 = vmatprep.mubr.msk.f32.mxu0 %vm416_vm1, %v13421_v43 }
  0xd4   : > { %11173 = vmatmul.mubr.msk.f32.gmra.mrb[30].mxu0 %vm416_vm1, %v13429_v39 }
  0xd5   : > { %11177 = vmatprep.mubr.msk.f32.mxu0 %vm416_vm1, %v13104_v52  ;;  %v13497_v52 = vld [vmem:[#allocation2 + $0x180] sm:$0xff] }
  0xd8   : > { %11178 = vmatmul.mubr.msk.f32.vlgmr.msra.gmra.mrb[0].mxu0 %vm416_vm1, %v13116_v54  ;;  %v13503_v54 = vld [vmem:[#allocation2 + $0x188] sm:$0xff] }
  0xd9   : > { %11226 = vmatpush3.msk.msra.mxu0 %vm682_vm0, %v13244_v25  ;;  %11180 = vmatprep.mubr.msk.f32.mxu0 %vm416_vm1, %v13118_v55  ;;  %v9913_v25 = vld [vmem:[%s15172_s1 + $0x18] sm:$0x7] }
  0xda   : > { %11275 = vmatprep.subr.msk.mxu0 %vm682_vm0, %v9912_v35 }
  0xdc   : > { %11181 = vmatmul.mubr.msk.f32.gmra.mrb[2].mxu0 %vm416_vm1, %v13126_v56 }
  0xdd   : > { %11183 = vmatprep.mubr.msk.f32.mxu0 %vm416_vm1, %v13128_v57 }
  0xe0   : > { %11184 = vmatmul.mubr.msk.f32.gmra.mrb[4].mxu0 %vm416_vm1, %v13134_v58 }
  0xe1   : > { %11186 = vmatprep.mubr.msk.f32.mxu0 %vm416_vm1, %v13136_v59 }
  0xe4   : > { %11187 = vmatmul.mubr.msk.f32.gmra.mrb[6].mxu0 %vm416_vm1, %v13142_v60 }
  0xe5   : > { %11189 = vmatprep.mubr.msk.f32.mxu0 %vm416_vm1, %v13144_v61 }
  0xe8   : > { %11190 = vmatmul.mubr.msk.f32.gmra.mrb[8].mxu0 %vm416_vm1, %v13150_v62 }
  0xe9   : > { %11192 = vmatprep.mubr.msk.f32.mxu0 %vm416_vm1, %v13152_v63 }
  0xec   : > { %11193 = vmatmul.mubr.msk.f32.gmra.mrb[10].mxu0 %vm416_vm1, %v13158_v0 }
  0xed   : > { %11195 = vmatprep.mubr.msk.f32.mxu0 %vm416_vm1, %v13160_v2 }
  0xf0   : > { %11196 = vmatmul.mubr.msk.f32.gmra.mrb[12].mxu0 %vm416_vm1, %v13166_v3 }
  0xf1   : > { %11198 = vmatprep.mubr.msk.f32.mxu0 %vm416_vm1, %v13168_v4 }
  0xf4   : > { %11199 = vmatmul.mubr.msk.f32.gmra.mrb[14].mxu0 %vm416_vm1, %v13174_v5 }
  0xf5   : > { %11201 = vmatprep.mubr.msk.f32.mxu0 %vm416_vm1, %v13176_v6 }
  0xf8   : > { %11202 = vmatmul.mubr.msk.f32.gmra.mrb[16].mxu0 %vm416_vm1, %v13182_v7 }
  0xf9   : > { %11204 = vmatprep.mubr.msk.f32.mxu0 %vm416_vm1, %v13184_v8 }
  0xfc   : > { %11205 = vmatmul.mubr.msk.f32.gmra.mrb[18].mxu0 %vm416_vm1, %v13190_v9 }
  0xfd   : > { %11207 = vmatprep.mubr.msk.f32.mxu0 %vm416_vm1, %v13192_v10 }
 0x100   : > { %11208 = vmatmul.mubr.msk.f32.gmra.mrb[20].mxu0 %vm416_vm1, %v13198_v11 }
 0x101   : > { %11210 = vmatprep.mubr.msk.f32.mxu0 %vm416_vm1, %v13200_v12 }
 0x104   : > { %11211 = vmatmul.mubr.msk.f32.gmra.mrb[22].mxu0 %vm416_vm1, %v13206_v13 }
 0x105   : > { %11213 = vmatprep.mubr.msk.f32.mxu0 %vm416_vm1, %v13208_v14 }
 0x108   : > { %11214 = vmatmul.mubr.msk.f32.gmra.mrb[24].mxu0 %vm416_vm1, %v13214_v15 }
 0x109   : > { %11216 = vmatprep.mubr.msk.f32.mxu0 %vm416_vm1, %v13216_v16 }
 0x10c   : > { %11217 = vmatmul.mubr.msk.f32.gmra.mrb[26].mxu0 %vm416_vm1, %v13226_v19 }
 0x10d   : > { %11219 = vmatprep.mubr.msk.f32.mxu0 %vm416_vm1, %v13228_v20 }
 0x110   : > { %11220 = vmatmul.mubr.msk.f32.gmra.mrb[28].mxu0 %vm416_vm1, %v13234_v21 }
 0x111   : > { %11222 = vmatprep.mubr.msk.f32.mxu0 %vm416_vm1, %v13497_v52 }
 0x114   : > { %11223 = vmatmul.mubr.msk.f32.gmra.mrb[30].mxu0 %vm416_vm1, %v13503_v54 }
 0x115   : > { %11227 = vmatprep.mubr.msk.f32.mxu0 %vm416_vm1, %v13024_v26  ;;  %v15285_v26 = vld [vmem:[#allocation38_spill] sm:$0xff] }
 0x118   : > { %11228 = vmatmul.mubr.msk.f32.vlgmr.msra.gmra.mrb[0].mxu0 %vm416_vm1, %v13026_v27  ;;  %v13570_v27 = vld [vmem:[#allocation2 + $0x181] sm:$0xff] }
 0x119   : > { %11276 = vmatpush3.msk.msra.mxu0 %vm682_vm0, %v9912_v35  ;;  %11230 = vmatprep.mubr.msk.f32.mxu0 %vm416_vm1, %v13028_v28  ;;  %15286 = vst [vmem:[#allocation45_spill] sm:$0xff] %v13570_v27  ;;  %v13576_v35 = vld [vmem:[#allocation2 + $0x189] sm:$0xff] }
 0x11a   : > { %11325 = vmatprep.subr.msk.mxu0 %vm682_vm0, %v9913_v25  ;;  %15287 = vst [vmem:[#allocation46_spill] sm:$0xff] %v13576_v35 }
 0x11c   : > { %11231 = vmatmul.mubr.msk.f32.gmra.mrb[2].mxu0 %vm416_vm1, %v13039_v29 }
 0x11d   : > { %11233 = vmatprep.mubr.msk.f32.mxu0 %vm416_vm1, %v13041_v30 }
 0x120   : > { %11234 = vmatmul.mubr.msk.f32.gmra.mrb[4].mxu0 %vm416_vm1, %v13047_v31 }
 0x121   : > { %11236 = vmatprep.mubr.msk.f32.mxu0 %vm416_vm1, %v13049_v32 }
 0x124   : > { %11237 = vmatmul.mubr.msk.f32.gmra.mrb[6].mxu0 %vm416_vm1, %v13053_v33 }
 0x125   : > { %11239 = vmatprep.mubr.msk.f32.mxu0 %vm416_vm1, %v13057_v34 }
 0x128   : > { %11240 = vmatmul.mubr.msk.f32.gmra.mrb[8].mxu0 %vm416_vm1, %v13081_v45 }
 0x129   : > { %11242 = vmatprep.mubr.msk.f32.mxu0 %vm416_vm1, %v13085_v46 }
 0x12c   : > { %11243 = vmatmul.mubr.msk.f32.gmra.mrb[10].mxu0 %vm416_vm1, %v13091_v47 }
 0x12d   : > { %11245 = vmatprep.mubr.msk.f32.mxu0 %vm416_vm1, %v13093_v48 }
 0x130   : > { %11246 = vmatmul.mubr.msk.f32.gmra.mrb[12].mxu0 %vm416_vm1, %v13099_v49 }
 0x131   : > { %11248 = vmatprep.mubr.msk.f32.mxu0 %vm416_vm1, %v13299_v53 }
 0x134   : > { %11249 = vmatmul.mubr.msk.f32.gmra.mrb[14].mxu0 %vm416_vm1, %v13305_v18 }
 0x135   : > { %11251 = vmatprep.mubr.msk.f32.mxu0 %vm416_vm1, %v13315_v23 }
 0x138   : > { %11252 = vmatmul.mubr.msk.f32.gmra.mrb[16].mxu0 %vm416_vm1, %v13321_v51 }
 0x139   : > { %11254 = vmatprep.mubr.msk.f32.mxu0 %vm416_vm1, %v13331_v17 }
 0x13c   : > { %11255 = vmatmul.mubr.msk.f32.gmra.mrb[18].mxu0 %vm416_vm1, %v13337_v44 }
 0x13d   : > { %11257 = vmatprep.mubr.msk.f32.mxu0 %vm416_vm1, %v13347_v1 }
 0x140   : > { %11258 = vmatmul.mubr.msk.f32.gmra.mrb[20].mxu0 %vm416_vm1, %v13353_v42 }
 0x141   : > { %11260 = vmatprep.mubr.msk.f32.mxu0 %vm416_vm1, %v13363_v22 }
 0x144   : > { %11261 = vmatmul.mubr.msk.f32.gmra.mrb[22].mxu0 %vm416_vm1, %v13369_v40 }
 0x145   : > { %11263 = vmatprep.mubr.msk.f32.mxu0 %vm416_vm1, %v13379_v50  ;;  %v15298_v50 = vld [vmem:[#allocation21_spill] sm:$0xff] }
 0x148   : > { %11264 = vmatmul.mubr.msk.f32.gmra.mrb[24].mxu0 %vm416_vm1, %v13385_v38  ;;  %v15294_v38 = vld [vmem:[#allocation17_spill] sm:$0xff] }
 0x149   : > { %11266 = vmatprep.mubr.msk.f32.mxu0 %vm416_vm1, %v15285_v26  ;;  %v15288_v26 = vld [vmem:[#allocation11_spill] sm:$0xff] }
 0x14c   : > { %11267 = vmatmul.mubr.msk.f32.gmra.mrb[26].mxu0 %vm416_vm1, %v13401_v36  ;;  %v15289_v36 = vld [vmem:[#allocation12_spill] sm:$0xff] }
 0x14d   : > { %11269 = vmatprep.mubr.msk.f32.mxu0 %vm416_vm1, %v13411_v41  ;;  %v9914_v41 = vld [vmem:[%s15172_s1 + $0x1c] sm:$0x7] }
 0x150   : > { %11270 = vmatmul.mubr.msk.f32.gmra.mrb[28].mxu0 %vm416_vm1, %v13417_v24  ;;  %v15290_v24 = vld [vmem:[#allocation13_spill] sm:$0xff] }
 0x151   : > { %11272 = vmatprep.mubr.msk.f32.mxu0 %vm416_vm1, %v13570_v27  ;;  %v15291_v27 = vld [vmem:[#allocation14_spill] sm:$0xff] }
 0x154   : > { %11273 = vmatmul.mubr.msk.f32.gmra.mrb[30].mxu0 %vm416_vm1, %v13576_v35  ;;  %v15292_v35 = vld [vmem:[#allocation15_spill] sm:$0xff] }
 0x155   : > { %11277 = vmatprep.mubr.msk.f32.mxu0 %vm416_vm1, %v15288_v26  ;;  %v15293_v26 = vld [vmem:[#allocation16_spill] sm:$0xff] }
 0x158   : > { %11278 = vmatmul.mubr.msk.f32.vlgmr.msra.gmra.mrb[0].mxu0 %vm416_vm1, %v15289_v36  ;;  %v15295_v36 = vld [vmem:[#allocation18_spill] sm:$0xff] }
 0x159   : > { %11326 = vmatpush3.msk.msra.mxu0 %vm682_vm0, %v9913_v25  ;;  %11280 = vmatprep.mubr.msk.f32.mxu0 %vm416_vm1, %v15290_v24  ;;  %v15296_v25 = vld [vmem:[#allocation19_spill] sm:$0xff]  ;;  %v15297_v24 = vld [vmem:[#allocation20_spill] sm:$0xff] }
 0x15a   : > { %11375 = vmatprep.subr.msk.mxu0 %vm682_vm0, %v9914_v41 }
 0x15c   : > { %11281 = vmatmul.mubr.msk.f32.gmra.mrb[2].mxu0 %vm416_vm1, %v15291_v27  ;;  %v15299_v27 = vld [vmem:[#allocation22_spill] sm:$0xff] }
 0x15d   : > { %11283 = vmatprep.mubr.msk.f32.mxu0 %vm416_vm1, %v15292_v35  ;;  %v15300_v35 = vld [vmem:[#allocation23_spill] sm:$0xff] }
 0x160   : > { %11284 = vmatmul.mubr.msk.f32.gmra.mrb[4].mxu0 %vm416_vm1, %v15293_v26  ;;  %v15301_v26 = vld [vmem:[#allocation24_spill] sm:$0xff] }
 0x161   : > { %11286 = vmatprep.mubr.msk.f32.mxu0 %vm416_vm1, %v15294_v38  ;;  %v15302_v38 = vld [vmem:[#allocation25_spill] sm:$0xff] }
 0x164   : > { %11287 = vmatmul.mubr.msk.f32.gmra.mrb[6].mxu0 %vm416_vm1, %v15295_v36  ;;  %v15303_v36 = vld [vmem:[#allocation26_spill] sm:$0xff] }
 0x165   : > { %11289 = vmatprep.mubr.msk.f32.mxu0 %vm416_vm1, %v15296_v25  ;;  %v15304_v25 = vld [vmem:[#allocation27_spill] sm:$0xff] }
 0x168   : > { %11290 = vmatmul.mubr.msk.f32.gmra.mrb[8].mxu0 %vm416_vm1, %v15297_v24  ;;  %v15305_v24 = vld [vmem:[#allocation28_spill] sm:$0xff] }
 0x169   : > { %11292 = vmatprep.mubr.msk.f32.mxu0 %vm416_vm1, %v15298_v50  ;;  %v15306_v50 = vld [vmem:[#allocation29_spill] sm:$0xff] }
 0x16c   : > { %11293 = vmatmul.mubr.msk.f32.gmra.mrb[10].mxu0 %vm416_vm1, %v15299_v27  ;;  %v15307_v27 = vld [vmem:[#allocation30_spill] sm:$0xff] }
 0x16d   : > { %11295 = vmatprep.mubr.msk.f32.mxu0 %vm416_vm1, %v15300_v35  ;;  %v15308_v35 = vld [vmem:[#allocation31_spill] sm:$0xff] }
 0x170   : > { %11296 = vmatmul.mubr.msk.f32.gmra.mrb[12].mxu0 %vm416_vm1, %v15301_v26  ;;  %v15309_v26 = vld [vmem:[#allocation32_spill] sm:$0xff] }
 0x171   : > { %11298 = vmatprep.mubr.msk.f32.mxu0 %vm416_vm1, %v15302_v38  ;;  %v15310_v38 = vld [vmem:[#allocation33_spill] sm:$0xff] }
 0x174   : > { %11299 = vmatmul.mubr.msk.f32.gmra.mrb[14].mxu0 %vm416_vm1, %v15303_v36  ;;  %v15311_v36 = vld [vmem:[#allocation35_spill] sm:$0xff] }
 0x175   : > { %11301 = vmatprep.mubr.msk.f32.mxu0 %vm416_vm1, %v15304_v25  ;;  %v15312_v25 = vld [vmem:[#allocation37_spill] sm:$0xff] }
 0x178   : > { %11302 = vmatmul.mubr.msk.f32.gmra.mrb[16].mxu0 %vm416_vm1, %v15305_v24  ;;  %v15313_v24 = vld [vmem:[#allocation39_spill] sm:$0xff] }
 0x179   : > { %11304 = vmatprep.mubr.msk.f32.mxu0 %vm416_vm1, %v15306_v50  ;;  %v15314_v50 = vld [vmem:[#allocation41_spill] sm:$0xff] }
 0x17c   : > { %11305 = vmatmul.mubr.msk.f32.gmra.mrb[18].mxu0 %vm416_vm1, %v15307_v27 }
 0x17d   : > { %11307 = vmatprep.mubr.msk.f32.mxu0 %vm416_vm1, %v15308_v35 }
 0x180   : > { %11308 = vmatmul.mubr.msk.f32.gmra.mrb[20].mxu0 %vm416_vm1, %v15309_v26  ;;  %v13643_v26 = vld [vmem:[#allocation2 + $0x182] sm:$0xff] }
 0x181   : > { %11310 = vmatprep.mubr.msk.f32.mxu0 %vm416_vm1, %v15310_v38 }
 0x184   : > { %11311 = vmatmul.mubr.msk.f32.gmra.mrb[22].mxu0 %vm416_vm1, %v15311_v36 }
 0x185   : > { %11313 = vmatprep.mubr.msk.f32.mxu0 %vm416_vm1, %v15312_v25  ;;  %v13649_v25 = vld [vmem:[#allocation2 + $0x18a] sm:$0xff] }
 0x188   : > { %11314 = vmatmul.mubr.msk.f32.gmra.mrb[24].mxu0 %vm416_vm1, %v15313_v24 }
 0x189   : > { %11316 = vmatprep.mubr.msk.f32.mxu0 %vm416_vm1, %v15314_v50 }
 0x18c   : > { %11317 = vmatmul.mubr.msk.f32.gmra.mrb[26].mxu0 %vm416_vm1, %v13415_v37 }
 0x18d   : > { %11319 = vmatprep.mubr.msk.f32.mxu0 %vm416_vm1, %v13421_v43  ;;  %v9915_v43 = vld [vmem:[%s15172_s1 + $0x20] sm:$0x7] }
 0x190   : > { %11320 = vmatmul.mubr.msk.f32.gmra.mrb[28].mxu0 %vm416_vm1, %v13429_v39 }
 0x191   : > { %11322 = vmatprep.mubr.msk.f32.mxu0 %vm416_vm1, %v13643_v26 }
 0x194   : > { %11323 = vmatmul.mubr.msk.f32.gmra.mrb[30].mxu0 %vm416_vm1, %v13649_v25 }
 0x195   : > { %11327 = vmatprep.mubr.msk.f32.mxu0 %vm416_vm1, %v13118_v55  ;;  %v2818_v55 = vld [vmem:[#allocation2 + $0x198] sm:$0xff] }
 0x198   : > { %11328 = vmatmul.mubr.msk.f32.vlgmr.msra.gmra.mrb[0].mxu0 %vm416_vm1, %v13126_v56  ;;  %v2819_v56 = vld [vmem:[#allocation2 + $0x1a0] sm:$0xff] }
 0x199   : > { %11376 = vmatpush3.msk.msra.mxu0 %vm682_vm0, %v9914_v41  ;;  %11330 = vmatprep.mubr.msk.f32.mxu0 %vm416_vm1, %v13128_v57  ;;  %v15326_v57 = vld [vmem:[#allocation16_spill] sm:$0xff] }
 0x19a   : > { %11425 = vmatprep.subr.msk.mxu0 %vm682_vm0, %v9915_v43 }
 0x19c   : > { %11331 = vmatmul.mubr.msk.f32.gmra.mrb[2].mxu0 %vm416_vm1, %v13134_v58  ;;  %v15327_v58 = vld [vmem:[#allocation17_spill] sm:$0xff] }
 0x19d   : > { %11333 = vmatprep.mubr.msk.f32.mxu0 %vm416_vm1, %v13136_v59  ;;  %v15328_v59 = vld [vmem:[#allocation18_spill] sm:$0xff] }
 0x1a0   : > { %11334 = vmatmul.mubr.msk.f32.gmra.mrb[4].mxu0 %vm416_vm1, %v13142_v60  ;;  %v15329_v60 = vld [vmem:[#allocation19_spill] sm:$0xff] }
 0x1a1   : > { %11336 = vmatprep.mubr.msk.f32.mxu0 %vm416_vm1, %v13144_v61  ;;  %v15330_v61 = vld [vmem:[#allocation20_spill] sm:$0xff] }
 0x1a4   : > { %11337 = vmatmul.mubr.msk.f32.gmra.mrb[6].mxu0 %vm416_vm1, %v13150_v62  ;;  %v15331_v62 = vld [vmem:[#allocation21_spill] sm:$0xff] }
 0x1a5   : > { %11339 = vmatprep.mubr.msk.f32.mxu0 %vm416_vm1, %v13152_v63  ;;  %v15332_v63 = vld [vmem:[#allocation22_spill] sm:$0xff] }
 0x1a8   : > { %11340 = vmatmul.mubr.msk.f32.gmra.mrb[8].mxu0 %vm416_vm1, %v13158_v0  ;;  %v15333_v0 = vld [vmem:[#allocation23_spill] sm:$0xff] }
 0x1a9   : > { %11342 = vmatprep.mubr.msk.f32.mxu0 %vm416_vm1, %v13160_v2  ;;  %v15334_v2 = vld [vmem:[#allocation24_spill] sm:$0xff] }
 0x1ac   : > { %11343 = vmatmul.mubr.msk.f32.gmra.mrb[10].mxu0 %vm416_vm1, %v13166_v3  ;;  %v15335_v3 = vld [vmem:[#allocation25_spill] sm:$0xff] }
 0x1ad   : > { %11345 = vmatprep.mubr.msk.f32.mxu0 %vm416_vm1, %v13168_v4  ;;  %v15336_v4 = vld [vmem:[#allocation26_spill] sm:$0xff] }
 0x1b0   : > { %11346 = vmatmul.mubr.msk.f32.gmra.mrb[12].mxu0 %vm416_vm1, %v13174_v5  ;;  %v15337_v5 = vld [vmem:[#allocation27_spill] sm:$0xff] }
 0x1b1   : > { %11348 = vmatprep.mubr.msk.f32.mxu0 %vm416_vm1, %v13176_v6  ;;  %v15338_v6 = vld [vmem:[#allocation28_spill] sm:$0xff] }
 0x1b4   : > { %11349 = vmatmul.mubr.msk.f32.gmra.mrb[14].mxu0 %vm416_vm1, %v13182_v7  ;;  %v15339_v7 = vld [vmem:[#allocation29_spill] sm:$0xff] }
 0x1b5   : > { %11351 = vmatprep.mubr.msk.f32.mxu0 %vm416_vm1, %v13184_v8  ;;  %v15340_v8 = vld [vmem:[#allocation32_spill] sm:$0xff] }
 0x1b8   : > { %11352 = vmatmul.mubr.msk.f32.gmra.mrb[16].mxu0 %vm416_vm1, %v13190_v9  ;;  %v15341_v9 = vld [vmem:[#allocation37_spill] sm:$0xff] }
 0x1b9   : > { %11354 = vmatprep.mubr.msk.f32.mxu0 %vm416_vm1, %v13192_v10  ;;  %v15342_v10 = vld [vmem:[#allocation44_spill] sm:$0xff] }
 0x1bc   : > { %11355 = vmatmul.mubr.msk.f32.gmra.mrb[18].mxu0 %vm416_vm1, %v13198_v11  ;;  %v3594_v11 = vld [vmem:[#allocation2 + $0x19a] sm:$0xff] }
 0x1bd   : > { %11357 = vmatprep.mubr.msk.f32.mxu0 %vm416_vm1, %v13200_v12  ;;  %v3595_v12 = vld [vmem:[#allocation2 + $0x1a2] sm:$0xff] }
 0x1c0   : > { %11358 = vmatmul.mubr.msk.f32.gmra.mrb[20].mxu0 %vm416_vm1, %v13206_v13  ;;  %v15343_v13 = vmov 0.0  }
 0x1c1   : > { %11360 = vmatprep.mubr.msk.f32.mxu0 %vm416_vm1, %v13208_v14  ;;  %4054 = vst.msk [vmem:[#allocation3] sm:$0xff] %vm3954_vm3, %v15343_v13  ;;  %4057 = vst.msk [vmem:[#allocation3 + $0x10] sm:$0xff] %vm3954_vm3, %v15343_v13  ;;  %v10214_v14 = vld [vmem:[%s15174_s3 + $0x10] sm:$0xff] }
 0x1c2   : > { %4059 = vst.msk [vmem:[#allocation3 + $0x20] sm:$0xff] %vm3954_vm3, %v15343_v13  ;;  %4061 = vst.msk [vmem:[#allocation3 + $0x30] sm:$0xff] %vm3954_vm3, %v15343_v13 }
 0x1c3   : > { %4063 = vst.msk [vmem:[#allocation3 + $0x40] sm:$0xff] %vm3954_vm3, %v15343_v13  ;;  %4065 = vst.msk [vmem:[#allocation3 + $0x50] sm:$0xff] %vm3954_vm3, %v15343_v13 }
 0x1c4   : > { %11361 = vmatmul.mubr.msk.f32.gmra.mrb[22].mxu0 %vm416_vm1, %v13214_v15  ;;  %4067 = vst.msk [vmem:[#allocation3 + $0x60] sm:$0xff] %vm3954_vm3, %v15343_v13  ;;  %4069 = vst.msk [vmem:[#allocation3 + $0x70] sm:$0xff] %vm3954_vm3, %v15343_v13  ;;  %v10215_v15 = vld [vmem:[%s15174_s3 + $0x18] sm:$0xff] }
 0x1c5   : > { %11363 = vmatprep.mubr.msk.f32.mxu0 %vm416_vm1, %v13216_v16  ;;  %4071 = vst.msk [vmem:[#allocation3 + $0x80] sm:$0xff] %vm3954_vm3, %v15343_v13  ;;  %4073 = vst.msk [vmem:[#allocation3 + $0x90] sm:$0xff] %vm3954_vm3, %v15343_v13  ;;  %v11871_v16 = vpack.c.bf16 %v10215_v15, %v10214_v14 }
 0x1c6   : > { %4056 = vst.msk [vmem:[#allocation3 + $0x8] sm:$0x3] %vm4055_vm4, %v15343_v13  ;;  %4058 = vst.msk [vmem:[#allocation3 + $0x18] sm:$0x3] %vm4055_vm4, %v15343_v13 }
 0x1c7   : > { %4060 = vst.msk [vmem:[#allocation3 + $0x28] sm:$0x3] %vm4055_vm4, %v15343_v13  ;;  %4062 = vst.msk [vmem:[#allocation3 + $0x38] sm:$0x3] %vm4055_vm4, %v15343_v13  ;;  %11872 = vmatprep.subr.bf16.mxu1 %v11871_v16 }
 0x1c8   : > { %11364 = vmatmul.mubr.msk.f32.gmra.mrb[24].mxu0 %vm416_vm1, %v13226_v19  ;;  %4064 = vst.msk [vmem:[#allocation3 + $0x48] sm:$0x3] %vm4055_vm4, %v15343_v13  ;;  %4066 = vst.msk [vmem:[#allocation3 + $0x58] sm:$0x3] %vm4055_vm4, %v15343_v13  ;;  %11874 = vmatpush3.bf16.msra.mxu1 %v11871_v16 }
 0x1c9   : > { %11366 = vmatprep.mubr.msk.f32.mxu0 %vm416_vm1, %v13228_v20  ;;  %4068 = vst.msk [vmem:[#allocation3 + $0x68] sm:$0x3] %vm4055_vm4, %v15343_v13  ;;  %4070 = vst.msk [vmem:[#allocation3 + $0x78] sm:$0x3] %vm4055_vm4, %v15343_v13  ;;  %v13882_v20 = vpop.f32.mrb[0].mxu1 }
 0x1ca   : > { %4072 = vst.msk [vmem:[#allocation3 + $0x88] sm:$0x3] %vm4055_vm4, %v15343_v13  ;;  %4074 = vst.msk [vmem:[#allocation3 + $0x98] sm:$0x3] %vm4055_vm4, %v15343_v13 }
 0x1cb   : > { %5446 = vst.msk [vmem:[#allocation4] sm:$0x3f] %vm5445_vm5, %v15343_v13  ;;  %5447 = vst.msk [vmem:[#allocation4 + $0x8] sm:$0x3f] %vm5445_vm5, %v15343_v13 }
 0x1cc   : > { %11367 = vmatmul.mubr.msk.f32.gmra.mrb[26].mxu0 %vm416_vm1, %v13234_v21  ;;  %v13884_v21 = vpop.f32.mrb[1].mxu1  ;;  %5448 = vst.msk [vmem:[#allocation4 + $0x10] sm:$0x3f] %vm5445_vm5, %v15343_v13  ;;  %5449 = vst.msk [vmem:[#allocation4 + $0x18] sm:$0x3f] %vm5445_vm5, %v15343_v13 }
 0x1cd   : > { %11369 = vmatprep.mubr.msk.f32.mxu0 %vm416_vm1, %v13497_v52  ;;  %v4118_v19 = vld [vmem:[#allocation3 + $0x1] sm:$0xff]  ;;  %5450 = vst.msk [vmem:[#allocation4 + $0x20] sm:$0x3f] %vm5445_vm5, %v15343_v13  ;;  %5451 = vst.msk [vmem:[#allocation4 + $0x28] sm:$0x3f] %vm5445_vm5, %v15343_v13 }
 0x1ce   : > { %11479 = vmatprep.mubr.msk.f32.mxu1 %vm3954_vm3, %v4118_v19 }
 0x1d0   : > { %11370 = vmatmul.mubr.msk.f32.gmra.mrb[28].mxu0 %vm416_vm1, %v13503_v54 }
 0x1d1   : > { %11372 = vmatprep.mubr.msk.f32.mxu0 %vm416_vm1, %v2818_v55 }
 0x1d4   : > { %11373 = vmatmul.mubr.msk.f32.gmra.mrb[30].mxu0 %vm416_vm1, %v2819_v56 }
 0x1d5   : > { %11377 = vmatprep.mubr.msk.f32.mxu0 %vm416_vm1, %v13028_v28  ;;  %v15315_v28 = vld [vmem:[#allocation34_spill] sm:$0xff] }
 0x1d8   : > { %11378 = vmatmul.mubr.msk.f32.vlgmr.msra.gmra.mrb[0].mxu0 %vm416_vm1, %v13039_v29  ;;  %v15316_v29 = vld [vmem:[#allocation36_spill] sm:$0xff] }
 0x1d9   : > { %11426 = vmatpush3.msk.msra.mxu0 %vm682_vm0, %v9915_v43  ;;  %11380 = vmatprep.mubr.msk.f32.mxu0 %vm416_vm1, %v13041_v30  ;;  %v15317_v30 = vld [vmem:[#allocation38_spill] sm:$0xff] }
 0x1dc   : > { %11381 = vmatmul.mubr.msk.f32.gmra.mrb[2].mxu0 %vm416_vm1, %v13047_v31  ;;  %v15318_v31 = vld [vmem:[#allocation40_spill] sm:$0xff] }
 0x1dd   : > { %11383 = vmatprep.mubr.msk.f32.mxu0 %vm416_vm1, %v13049_v32  ;;  %v15320_v32 = vld [vmem:[#allocation43_spill] sm:$0xff] }
 0x1e0   : > { %11384 = vmatmul.mubr.msk.f32.gmra.mrb[4].mxu0 %vm416_vm1, %v13053_v33  ;;  %v15321_v33 = vld [vmem:[#allocation45_spill] sm:$0xff] }
 0x1e1   : > { %11386 = vmatprep.mubr.msk.f32.mxu0 %vm416_vm1, %v13057_v34  ;;  %v3206_v34 = vld [vmem:[#allocation2 + $0x199] sm:$0xff] }
 0x1e4   : > { %11387 = vmatmul.mubr.msk.f32.gmra.mrb[6].mxu0 %vm416_vm1, %v13081_v45  ;;  %v15322_v45 = vld [vmem:[#allocation46_spill] sm:$0xff] }
 0x1e5   : > { %11389 = vmatprep.mubr.msk.f32.mxu0 %vm416_vm1, %v13085_v46  ;;  %v3207_v46 = vld [vmem:[#allocation2 + $0x1a1] sm:$0xff] }
 0x1e8   : > { %11390 = vmatmul.mubr.msk.f32.gmra.mrb[8].mxu0 %vm416_vm1, %v13091_v47  ;;  %v15323_v47 = vld [vmem:[#allocation13_spill] sm:$0xff] }
 0x1e9   : > { %11392 = vmatprep.mubr.msk.f32.mxu0 %vm416_vm1, %v13093_v48  ;;  %v15324_v48 = vld [vmem:[#allocation14_spill] sm:$0xff] }
 0x1ec   : > { %11393 = vmatmul.mubr.msk.f32.gmra.mrb[10].mxu0 %vm416_vm1, %v13099_v49  ;;  %v15325_v49 = vld [vmem:[#allocation15_spill] sm:$0xff] }
 0x1ed   : > { %11395 = vmatprep.mubr.msk.f32.mxu0 %vm416_vm1, %v13299_v53 }
 0x1f0   : > { %11396 = vmatmul.mubr.msk.f32.gmra.mrb[12].mxu0 %vm416_vm1, %v13305_v18 }
 0x1f1   : > { %11398 = vmatprep.mubr.msk.f32.mxu0 %vm416_vm1, %v13315_v23  ;;  %v4085_v23 = vld [vmem:[%s15174_s3 + $0x8] sm:$0xff] }
 0x1f4   : > { %11399 = vmatmul.mubr.msk.f32.gmra.mrb[14].mxu0 %vm416_vm1, %v13321_v51 }
 0x1f5   : > { %11401 = vmatprep.mubr.msk.f32.mxu0 %vm416_vm1, %v13331_v17 }
 0x1f8   : > { %11402 = vmatmul.mubr.msk.f32.gmra.mrb[16].mxu0 %vm416_vm1, %v13337_v44 }
 0x1f9   : > { %11404 = vmatprep.mubr.msk.f32.mxu0 %vm416_vm1, %v13347_v1  ;;  %v15319_v1 = vld [vmem:[#allocation42_spill] sm:$0xff] }
 0x1fc   : > { %11405 = vmatmul.mubr.msk.f32.gmra.mrb[18].mxu0 %vm416_vm1, %v13353_v42 }
 0x1fd   : > { %11407 = vmatprep.mubr.msk.f32.mxu0 %vm416_vm1, %v13363_v22  ;;  %v4084_v22 = vld [vmem:[%s15174_s3] sm:$0xff] }
 0x1fe   : > { %v11875_v52 = vpack.c.bf16 %v4085_v23, %v4084_v22 }
 0x200   : > { %11408 = vmatmul.mubr.msk.f32.gmra.mrb[20].mxu0 %vm416_vm1, %v13369_v40  ;;  %11876 = vmatprep.subr.bf16.mxu1 %v11875_v52 }
 0x201   : > { %11410 = vmatprep.mubr.msk.f32.mxu0 %vm416_vm1, %v15315_v28 }
 0x204   : > { %11411 = vmatmul.mubr.msk.f32.gmra.mrb[22].mxu0 %vm416_vm1, %v15316_v29 }
 0x205   : > { %11413 = vmatprep.mubr.msk.f32.mxu0 %vm416_vm1, %v15317_v30 }
 0x208   : > { %11414 = vmatmul.mubr.msk.f32.gmra.mrb[24].mxu0 %vm416_vm1, %v15318_v31 }
 0x209   : > { %11416 = vmatprep.mubr.msk.f32.mxu0 %vm416_vm1, %v15319_v1 }
 0x20c   : > { %11417 = vmatmul.mubr.msk.f32.gmra.mrb[26].mxu0 %vm416_vm1, %v15320_v32 }
 0x20d   : > { %11419 = vmatprep.mubr.msk.f32.mxu0 %vm416_vm1, %v15321_v33  ;;  %v13925_v33 = vld [vmem:[%s15173_s2] ss:$0 sm:$0xff] }
 0x210   : > { %11420 = vmatmul.mubr.msk.f32.gmra.mrb[28].mxu0 %vm416_vm1, %v15322_v45 }
 0x211   : > { %11422 = vmatprep.mubr.msk.f32.mxu0 %vm416_vm1, %v3206_v34 }
 0x214   : > { %11423 = vmatmul.mubr.msk.f32.gmra.mrb[30].mxu0 %vm416_vm1, %v3207_v46 }
 0x215   : > { %11427 = vmatprep.mubr.msk.f32.mxu0 %vm416_vm1, %v15323_v47 }
 0x218   : > { %11428 = vmatmul.mubr.msk.f32.vlgmr.msra.gmra.mrb[0].mxu0 %vm416_vm1, %v15324_v48 }
 0x219   : > { %11430 = vmatprep.mubr.msk.f32.mxu0 %vm416_vm1, %v15325_v49 }
 0x21c   : > { %11431 = vmatmul.mubr.msk.f32.gmra.mrb[2].mxu0 %vm416_vm1, %v15326_v57 }
 0x21d   : > { %11433 = vmatprep.mubr.msk.f32.mxu0 %vm416_vm1, %v15327_v58 }
 0x220   : > { %11434 = vmatmul.mubr.msk.f32.gmra.mrb[4].mxu0 %vm416_vm1, %v15328_v59 }
 0x221   : > { %11436 = vmatprep.mubr.msk.f32.mxu0 %vm416_vm1, %v15329_v60 }
 0x224   : > { %11437 = vmatmul.mubr.msk.f32.gmra.mrb[6].mxu0 %vm416_vm1, %v15330_v61 }
 0x225   : > { %11439 = vmatprep.mubr.msk.f32.mxu0 %vm416_vm1, %v15331_v62 }
 0x228   : > { %11440 = vmatmul.mubr.msk.f32.gmra.mrb[8].mxu0 %vm416_vm1, %v15332_v63 }
 0x229   : > { %11442 = vmatprep.mubr.msk.f32.mxu0 %vm416_vm1, %v15333_v0 }
 0x22c   : > { %11443 = vmatmul.mubr.msk.f32.gmra.mrb[10].mxu0 %vm416_vm1, %v15334_v2  ;;  %v10216_v2 = vld [vmem:[%s15174_s3 + $0x20] sm:$0xff] }
 0x22d   : > { %11445 = vmatprep.mubr.msk.f32.mxu0 %vm416_vm1, %v15335_v3  ;;  %v10217_v3 = vld [vmem:[%s15174_s3 + $0x28] sm:$0xff] }
 0x230   : > { %11446 = vmatmul.mubr.msk.f32.gmra.mrb[12].mxu0 %vm416_vm1, %v15336_v4 }
 0x231   : > { %11448 = vmatprep.mubr.msk.f32.mxu0 %vm416_vm1, %v15337_v5 }
 0x234   : > { %11449 = vmatmul.mubr.msk.f32.gmra.mrb[14].mxu0 %vm416_vm1, %v15338_v6 }
 0x235   : > { %11451 = vmatprep.mubr.msk.f32.mxu0 %vm416_vm1, %v15339_v7  ;;  %v13940_v7 = vpack.c.bf16 %v10217_v3, %v10216_v2 }
 0x238   : > { %11452 = vmatmul.mubr.msk.f32.gmra.mrb[16].mxu0 %vm416_vm1, %v15307_v27 }
 0x239   : > { %11454 = vmatprep.mubr.msk.f32.mxu0 %vm416_vm1, %v15308_v35 }
 0x23c   : > { %11455 = vmatmul.mubr.msk.f32.gmra.mrb[18].mxu0 %vm416_vm1, %v15340_v8 }
 0x23d   : > { %11457 = vmatprep.mubr.msk.f32.mxu0 %vm416_vm1, %v15310_v38 }
 0x240   : > { %11458 = vmatmul.mubr.msk.f32.gmra.mrb[20].mxu0 %vm416_vm1, %v15311_v36 }
 0x241   : > { %11460 = vmatprep.mubr.msk.f32.mxu0 %vm416_vm1, %v15341_v9 }
 0x244   : > { %11461 = vmatmul.mubr.msk.f32.gmra.mrb[22].mxu0 %vm416_vm1, %v15313_v24  ;;  %v13886_v24 = vpop.f32.mrb[2].mxu1 }
 0x245   : > { %11463 = vmatprep.mubr.msk.f32.mxu0 %vm416_vm1, %v15314_v50 }
 0x248   : > { %11464 = vmatmul.mubr.msk.f32.gmra.mrb[24].mxu0 %vm416_vm1, %v13415_v37  ;;  %v13888_v37 = vpop.f32.mrb[3].mxu1 }
 0x249   : > { %11466 = vmatprep.mubr.msk.f32.mxu0 %vm416_vm1, %v15342_v10  ;;  %v13890_v38 = vpop.f32.mrb[4].mxu1 }
 0x24c   : > { %11467 = vmatmul.mubr.msk.f32.gmra.mrb[26].mxu0 %vm416_vm1, %v13429_v39  ;;  %v13892_v39 = vpop.f32.mrb[5].mxu1 }
 0x24d   : > { %11469 = vmatprep.mubr.msk.f32.mxu0 %vm416_vm1, %v13643_v26  ;;  %v13894_v40 = vpop.f32.mrb[6].mxu1 }
 0x24e   : > { %v13896_v41 = vpop.f32.mrb[7].mxu1 }
 0x24f   : > { %v13898_v42 = vpop.f32.mrb[8].mxu1 }
 0x250   : > { %11470 = vmatmul.mubr.msk.f32.gmra.mrb[28].mxu0 %vm416_vm1, %v13649_v25  ;;  %v13900_v43 = vpop.f32.mrb[9].mxu1 }
 0x251   : > { %11472 = vmatprep.mubr.msk.f32.mxu0 %vm416_vm1, %v3594_v11  ;;  %v13902_v44 = vpop.f32.mrb[10].mxu1 }
 0x252   : > { %v13904_v50 = vpop.f32.mrb[11].mxu1 }
 0x253   : > { %v13906_v51 = vpop.f32.mrb[12].mxu1 }
 0x254   : > { %11473 = vmatmul.mubr.msk.f32.gmra.mrb[30].mxu0 %vm416_vm1, %v3595_v12  ;;  %v13908_v53 = vpop.f32.mrb[13].mxu1 }
 0x255   : > { %v13910_v17 = vpop.f32.mrb[14].mxu1 }
 0x256   : > { %v13912_v18 = vpop.f32.mrb[15].mxu1 }
 0x2eb   : > { %v11429_v54 = vpop.f32.mrb[0].mxu0 }
 0x2ec   : > { %v3761_v27 = vpop.f32.mrb[1].mxu0 }
 0x2ef   : > { %v11432_v35 = vpop.f32.mrb[2].mxu0 }
 0x2f0   : > { %v3953_v26 = vmax.f32 %v11429_v54, %v11432_v35  ;;  %v3771_v36 = vpop.f32.mrb[3].mxu0 }
 0x2f1   : > { %v3952_v25 = vmax.f32 %v3761_v27, %v3771_v36 }
 0x2f2   : > { %3956 = vst.msk [vmem:[#allocation5 + $0x8] sm:$0xff] %vm3954_vm3, %v3953_v26 }
 0x2f3   : > { %3955 = vst.msk [vmem:[#allocation5] sm:$0xff] %vm3954_vm3, %v3952_v25  ;;  %v11435_v55 = vpop.f32.mrb[4].mxu0 }
 0x2f4   : > { %v3781_v56 = vpop.f32.mrb[5].mxu0 }
 0x2f7   : > { %v11438_v28 = vpop.f32.mrb[6].mxu0 }
 0x2f8   : > { %v3958_v29 = vmax.f32 %v11435_v55, %v11438_v28  ;;  %v3791_v30 = vpop.f32.mrb[7].mxu0 }
 0x2f9   : > { %v3957_v31 = vmax.f32 %v3781_v56, %v3791_v30 }
 0x2fa   : > { %v3992_v1 = vld [vmem:[#allocation5] ss:$2 sm:$0xff]  ;;  %v4008_v32 = vld [vmem:[#allocation5 + $0x1] ss:$2 sm:$0xff]  ;;  %3961 = vst.msk [vmem:[#allocation5 + $0x18] sm:$0xff] %vm3954_vm3, %v3958_v29 }
 0x2fb   : > { %v4023_v34 = vmax.f32 %v3992_v1, %v4008_v32  ;;  %3960 = vst.msk [vmem:[#allocation5 + $0x10] sm:$0xff] %vm3954_vm3, %v3957_v31  ;;  %v11441_v45 = vpop.f32.mrb[8].mxu0 }
 0x2fc   : > { %v3801_v46 = vpop.f32.mrb[9].mxu0 }
 0x2fd   : > { %v4038_v47 = vadd.f32 %v13925_v33, %v4023_v34 }
 0x2ff   : > { %v4046_v48 = vmax.f32 %v4038_v47, 0.0  ;;  %v11444_v49 = vpop.f32.mrb[10].mxu0 }
 0x300   : > { %v3963_v57 = vmax.f32 %v11441_v45, %v11444_v49  ;;  %v3811_v58 = vpop.f32.mrb[11].mxu0 }
 0x301   : > { %v3962_v59 = vmax.f32 %v3801_v46, %v3811_v58  ;;  %4076 = vst.msk [vmem:[#allocation3 + $0x11] sm:$0xff] %vm3954_vm3, %v4046_v48 }
 0x302   : > { %v3994_v60 = vld [vmem:[#allocation5 + $0x10] ss:$2 sm:$0xff]  ;;  %v4010_v61 = vld [vmem:[#allocation5 + $0x11] ss:$2 sm:$0xff]  ;;  %3966 = vst.msk [vmem:[#allocation5 + $0x28] sm:$0xff] %vm3954_vm3, %v3963_v57 }
 0x303   : > { %v4024_v62 = vmax.f32 %v3994_v60, %v4010_v61  ;;  %3965 = vst.msk [vmem:[#allocation5 + $0x20] sm:$0xff] %vm3954_vm3, %v3962_v59  ;;  %v11447_v63 = vpop.f32.mrb[12].mxu0 }
 0x304   : > { %v3821_v0 = vpop.f32.mrb[13].mxu0 }
 0x305   : > { %v4039_v4 = vadd.f32 %v13925_v33, %v4024_v62 }
 0x307   : > { %v4047_v5 = vmax.f32 %v4039_v4, 0.0  ;;  %v11450_v6 = vpop.f32.mrb[14].mxu0 }
 0x308   : > { %v3968_v8 = vmax.f32 %v11447_v63, %v11450_v6  ;;  %v3831_v9 = vpop.f32.mrb[15].mxu0  ;;  %v13942_v10 = vld [vmem:[#allocation3 + $0x11] sm:$0xff] }
 0x309   : > { %v3967_v11 = vmax.f32 %v3821_v0, %v3831_v9  ;;  %11480 = vmatmul.mubr.msk.f32.vlgmr.msra.gmra.mrb[16].mxu1 %vm3954_vm3, %v13942_v10  ;;  %4077 = vst.msk [vmem:[#allocation3 + $0x21] sm:$0xff] %vm3954_vm3, %v4047_v5 }
 0x30a   : > { %v3996_v12 = vld [vmem:[#allocation5 + $0x20] ss:$2 sm:$0xff]  ;;  %v4012_v14 = vld [vmem:[#allocation5 + $0x21] ss:$2 sm:$0xff]  ;;  %3971 = vst.msk [vmem:[#allocation5 + $0x38] sm:$0xff] %vm3954_vm3, %v3968_v8  ;;  %11878 = vmatpush3.bf16.msra.mxu1 %v11875_v52 }
 0x30b   : > { %v4025_v15 = vmax.f32 %v3996_v12, %v4012_v14  ;;  %3970 = vst.msk [vmem:[#allocation5 + $0x30] sm:$0xff] %vm3954_vm3, %v3967_v11  ;;  %v11453_v16 = vpop.f32.mrb[16].mxu0  ;;  %11880 = vmatprep.subr.bf16.mxu1 %v13940_v7 }
 0x30c   : > { %v12219_v19 = vadd.f32 %v11453_v16, %v13882_v20  ;;  %v3841_v22 = vpop.f32.mrb[17].mxu0 }
 0x30d   : > { %v4040_v23 = vadd.f32 %v13925_v33, %v4025_v15  ;;  %v12220_v54 = vadd.f32 %v3841_v22, %v13884_v21 }
 0x30f   : > { %v4048_v27 = vmax.f32 %v4040_v23, 0.0  ;;  %v11456_v35 = vpop.f32.mrb[18].mxu0 }
 0x310   : > { %v12221_v26 = vadd.f32 %v11456_v35, %v13886_v24  ;;  %v3851_v36 = vpop.f32.mrb[19].mxu0  ;;  %v13954_v25 = vld [vmem:[#allocation3 + $0x21] sm:$0xff] }
 0x311   : > { %4078 = vst.msk [vmem:[#allocation3 + $0x31] sm:$0xff] %vm3954_vm3, %v4048_v27  ;;  %v12222_v52 = vadd.f32 %v3851_v36, %v13888_v37  ;;  %11482 = vmatprep.mubr.msk.f32.mxu1 %vm3954_vm3, %v13954_v25 }
 0x312   : > { %v3998_v20 = vld [vmem:[#allocation5 + $0x30] ss:$2 sm:$0xff]  ;;  %v4014_v55 = vld [vmem:[#allocation5 + $0x31] ss:$2 sm:$0xff]  ;;  %v3973_v56 = vmax.f32 %v12219_v19, %v12221_v26 }
 0x313   : > { %v4026_v28 = vmax.f32 %v3998_v20, %v4014_v55  ;;  %v3972_v29 = vmax.f32 %v12220_v54, %v12222_v52  ;;  %v11459_v21 = vpop.f32.mrb[20].mxu0 }
 0x314   : > { %3976 = vst.msk [vmem:[#allocation5 + $0x48] sm:$0xff] %vm3954_vm3, %v3973_v56  ;;  %v12223_v24 = vadd.f32 %v11459_v21, %v13890_v38  ;;  %v3861_v30 = vpop.f32.mrb[21].mxu0  ;;  %v4110_v56 = vld [vmem:[#allocation3] sm:$0xff]  ;;  %v10219_v21 = vld [vmem:[%s15174_s3 + $0x38] sm:$0xff] }
 0x315   : > { %v4041_v31 = vadd.f32 %v13925_v33, %v4026_v28  ;;  %3975 = vst.msk [vmem:[#allocation5 + $0x40] sm:$0xff] %vm3954_vm3, %v3972_v29  ;;  %v12224_v37 = vadd.f32 %v3861_v30, %v13892_v39  ;;  %v10218_v29 = vld [vmem:[%s15174_s3 + $0x30] sm:$0xff] }
 0x316   : > { %v14018_v30 = vld [vmem:[#allocation3 + $0x20] sm:$0xff] }
 0x317   : > { %v4049_v1 = vmax.f32 %v4041_v31, 0.0  ;;  %v11462_v32 = vpop.f32.mrb[22].mxu0 }
 0x318   : > { %v12225_v34 = vadd.f32 %v11462_v32, %v13894_v40  ;;  %v3871_v45 = vpop.f32.mrb[23].mxu0  ;;  %v13966_v46 = vld [vmem:[#allocation3 + $0x31] sm:$0xff]  ;;  %v4384_v32 = vld [vmem:[#allocation3 + $0x2] sm:$0xff] }
 0x319   : > { %4079 = vst.msk [vmem:[#allocation3 + $0x41] sm:$0xff] %vm3954_vm3, %v4049_v1  ;;  %v12226_v47 = vadd.f32 %v3871_v45, %v13896_v41  ;;  %11483 = vmatmul.mubr.msk.f32.gmra.mrb[18].mxu1 %vm3954_vm3, %v13966_v46  ;;  %v14023_v31 = vld [vmem:[#allocation3 + $0x30] sm:$0xff] }
 0x31a   : > { %v3978_v38 = vmax.f32 %v12223_v24, %v12225_v34  ;;  %v4111_v24 = vld [vmem:[#allocation3 + $0x10] sm:$0xff] }
 0x31b   : > { %v3977_v48 = vmax.f32 %v12224_v37, %v12226_v47  ;;  %v11465_v49 = vpop.f32.mrb[24].mxu0  ;;  %v10220_v45 = vld [vmem:[%s15174_s3 + $0x40] sm:$0xff]  ;;  %v10221_v47 = vld [vmem:[%s15174_s3 + $0x48] sm:$0xff] }
 0x31c   : > { %v4000_v57 = vld [vmem:[#allocation5 + $0x40] ss:$2 sm:$0xff]  ;;  %v4016_v58 = vld [vmem:[#allocation5 + $0x41] ss:$2 sm:$0xff]  ;;  %3981 = vst.msk [vmem:[#allocation5 + $0x58] sm:$0xff] %vm3954_vm3, %v3978_v38  ;;  %v12227_v39 = vadd.f32 %v11465_v49, %v13898_v42  ;;  %v3881_v40 = vpop.f32.mrb[25].mxu0  ;;  %v11887_v38 = vpack.c.bf16 %v10221_v47, %v10220_v45 }
 0x31d   : > { %v4027_v59 = vmax.f32 %v4000_v57, %v4016_v58  ;;  %3980 = vst.msk [vmem:[#allocation5 + $0x50] sm:$0xff] %vm3954_vm3, %v3977_v48  ;;  %v12228_v60 = vadd.f32 %v3881_v40, %v13900_v43  ;;  %v4385_v48 = vld [vmem:[#allocation3 + $0x12] sm:$0xff]  ;;  %v14051_v49 = vld [vmem:[#allocation3 + $0x22] sm:$0xff] }
 0x31e   : > { %v14055_v57 = vld [vmem:[#allocation3 + $0x32] sm:$0xff] }
 0x31f   : > { %v4042_v41 = vadd.f32 %v13925_v33, %v4027_v59  ;;  %v11468_v61 = vpop.f32.mrb[26].mxu0 }
 0x320   : > { %v12229_v62 = vadd.f32 %v11468_v61, %v13902_v44  ;;  %v3891_v63 = vpop.f32.mrb[27].mxu0  ;;  %v13978_v0 = vld [vmem:[#allocation3 + $0x41] sm:$0xff] }
 0x321   : > { %v4050_v2 = vmax.f32 %v4042_v41, 0.0  ;;  %v12230_v3 = vadd.f32 %v3891_v63, %v13904_v50  ;;  %11485 = vmatprep.mubr.msk.f32.mxu1 %vm3954_vm3, %v13978_v0  ;;  %v14027_v37 = vld [vmem:[#allocation3 + $0x40] sm:$0xff]  ;;  %v10223_v41 = vld [vmem:[%s15174_s3 + $0x58] sm:$0xff]  ;;  %v10224_v63 = vld [vmem:[%s15174_s3 + $0x60] sm:$0xff] }
 0x322   : > { %v3983_v42 = vmax.f32 %v12227_v39, %v12229_v62  ;;  %v14059_v58 = vld [vmem:[#allocation3 + $0x42] sm:$0xff] }
 0x323   : > { %4080 = vst.msk [vmem:[#allocation3 + $0x51] sm:$0xff] %vm3954_vm3, %v4050_v2  ;;  %v3982_v4 = vmax.f32 %v12228_v60, %v12230_v3  ;;  %v11471_v5 = vpop.f32.mrb[28].mxu0  ;;  %v10222_v60 = vld [vmem:[%s15174_s3 + $0x50] sm:$0xff]  ;;  %v10225_v2 = vld [vmem:[%s15174_s3 + $0x68] sm:$0xff] }
 0x324   : > { %v4002_v43 = vld [vmem:[#allocation5 + $0x50] ss:$2 sm:$0xff]  ;;  %v4018_v6 = vld [vmem:[#allocation5 + $0x51] ss:$2 sm:$0xff]  ;;  %3986 = vst.msk [vmem:[#allocation5 + $0x68] sm:$0xff] %vm3954_vm3, %v3983_v42  ;;  %v12231_v44 = vadd.f32 %v11471_v5, %v13906_v51  ;;  %v3901_v8 = vpop.f32.mrb[29].mxu0  ;;  %v11891_v61 = vpack.c.bf16 %v10223_v41, %v10222_v60  ;;  %v11895_v3 = vpack.c.bf16 %v10225_v2, %v10224_v63 }
 0x325   : > { %v4028_v9 = vmax.f32 %v4002_v43, %v4018_v6  ;;  %3985 = vst.msk [vmem:[#allocation5 + $0x60] sm:$0xff] %vm3954_vm3, %v3982_v4  ;;  %v12232_v50 = vadd.f32 %v3901_v8, %v13908_v53  ;;  %v10226_v42 = vld [vmem:[%s15174_s3 + $0x70] sm:$0xff]  ;;  %v10227_v4 = vld [vmem:[%s15174_s3 + $0x78] sm:$0xff]  ;;  %v10228_v6 = vld [vmem:[%s15174_s3 + $0x80] sm:$0xff] }
 0x326   : > { %v11899_v5 = vpack.c.bf16 %v10227_v4, %v10226_v42  ;;  %v10311_v42 = vld [vmem:[%s15176_s5 + $0x50] sm:$0xff]  ;;  %v10312_v4 = vld [vmem:[%s15176_s5 + $0x58] sm:$0xff] }
 0x327   : > { %v4043_v11 = vadd.f32 %v13925_v33, %v4028_v9  ;;  %v11474_v12 = vpop.f32.mrb[30].mxu0  ;;  %v4972_v9 = vld [vmem:[#allocation3 + $0x90] sm:$0xff] }
 0x328   : > { %v12233_v14 = vadd.f32 %v11474_v12, %v13910_v17  ;;  %v3911_v15 = vpop.f32.mrb[31].mxu0  ;;  %v5262_v12 = vld [vmem:[#allocation3 + $0x92] sm:$0xff] }
 0x329   : > { %v4051_v16 = vmax.f32 %v4043_v11, 0.0  ;;  %v12234_v19 = vadd.f32 %v3911_v15, %v13912_v18  ;;  %v5458_v15 = vld [vmem:[%s15176_s5] sm:$0xff] }
 0x32a   : > { %v3988_v22 = vmax.f32 %v12231_v44, %v12233_v14  ;;  %v13991_v23 = vld [vmem:[#allocation3 + $0x51] sm:$0xff]  ;;  %v5485_v14 = vld [vmem:[#allocation4 + $0x1] sm:$0xf] }
 0x32b   : > { %4081 = vst.msk [vmem:[#allocation3 + $0x61] sm:$0xff] %vm3954_vm3, %v4051_v16  ;;  %v3987_v51 = vmax.f32 %v12232_v50, %v12234_v19  ;;  %11486 = vmatmul.mubr.msk.f32.gmra.mrb[20].mxu1 %vm3954_vm3, %v13991_v23  ;;  %v14031_v1 = vld [vmem:[#allocation3 + $0x50] sm:$0xff]  ;;  %v10229_v44 = vld [vmem:[%s15174_s3 + $0x88] sm:$0xff]  ;;  %v12734_v50 = vmov 0.0|0.0  }
 0x32c   : > { %v4004_v54 = vld [vmem:[#allocation5 + $0x60] ss:$2 sm:$0xff]  ;;  %v4020_v53 = vld [vmem:[#allocation5 + $0x61] ss:$2 sm:$0xff]  ;;  %3991 = vst.msk [vmem:[#allocation5 + $0x78] sm:$0xff] %vm3954_vm3, %v3988_v22  ;;  %v11903_v8 = vpack.c.bf16 %v10229_v44, %v10228_v6 }
 0x32d   : > { %v4029_v27 = vmax.f32 %v4004_v54, %v4020_v53  ;;  %3990 = vst.msk [vmem:[#allocation5 + $0x70] sm:$0xff] %vm3954_vm3, %v3987_v51  ;;  %v14063_v39 = vld [vmem:[#allocation3 + $0x52] sm:$0xff]  ;;  %v5484_v22 = vld [vmem:[#allocation4] sm:$0xf] }
 0x32e   : > { %v5459_v16 = vld [vmem:[%s15176_s5 + $0x8] sm:$0xff]  ;;  %v5632_v53 = vld [vmem:[#allocation4 + $0x2] sm:$0xf]  ;;  %v10313_v6 = vld [vmem:[%s15176_s5 + $0x60] sm:$0xff] }
 0x32f   : > { %v4044_v17 = vadd.f32 %v13925_v33, %v4029_v27  ;;  %v14212_v19 = vpack.c.bf16 %v5459_v16, %v5458_v15  ;;  %v10306_v51 = vld [vmem:[%s15176_s5 + $0x28] sm:$0xff]  ;;  %v10307_v27 = vld [vmem:[%s15176_s5 + $0x30] sm:$0xff] }
 0x330   : > { %v10314_v44 = vld [vmem:[%s15176_s5 + $0x68] sm:$0xff] }
 0x331   : > { %v4052_v35 = vmax.f32 %v4044_v17, 0.0  ;;  %v10308_v17 = vld [vmem:[%s15176_s5 + $0x38] sm:$0xff]  ;;  %v10318_v15 = vld [vmem:[%s15176_s5 + $0x88] sm:$0xff] }
 0x332   : > { %v13999_v18 = vld [vmem:[#allocation3 + $0x61] sm:$0xff] }
 0x333   : > { %4082 = vst.msk [vmem:[#allocation3 + $0x71] sm:$0xff] %vm3954_vm3, %v4052_v35  ;;  %11488 = vmatprep.mubr.msk.f32.mxu1 %vm3954_vm3, %v13999_v18  ;;  %v14067_v40 = vld [vmem:[#allocation3 + $0x62] sm:$0xff]  ;;  %v14238_v35 = vpack.c.bf16 %v10308_v17, %v10307_v27 }
 0x334   : > { %v4006_v26 = vld [vmem:[#allocation5 + $0x70] ss:$2 sm:$0xff]  ;;  %v4022_v36 = vld [vmem:[#allocation5 + $0x71] ss:$2 sm:$0xff] }
 0x335   : > { %v4030_v52 = vmax.f32 %v4006_v26, %v4022_v36 }
 0x337   : > { %v4045_v20 = vadd.f32 %v13925_v33, %v4030_v52  ;;  %v11883_v33 = vpack.c.bf16 %v10219_v21, %v10218_v29  ;;  %v10302_v29 = vld [vmem:[%s15175_s4] ss:$0 sm:$0xff] }
 0x339   : > { %v4053_v55 = vmax.f32 %v4045_v20, 0.0 }
 0x33a   : > { %v14005_v28 = vld [vmem:[#allocation3 + $0x71] sm:$0xff] }
 0x33b   : > { %4083 = vst.msk [vmem:[#allocation3 + $0x81] sm:$0xff] %vm3954_vm3, %v4053_v55  ;;  %11489 = vmatmul.mubr.msk.f32.gmra.mrb[22].mxu1 %vm3954_vm3, %v14005_v28  ;;  %v14039_v34 = vld [vmem:[#allocation3 + $0x70] sm:$0xff] }
 0x33c   : > { %11495 = vmatprep.mubr.msk.f32.mxu1 %vm3954_vm3, %v4110_v56  ;;  %v14071_v59 = vld [vmem:[#allocation3 + $0x72] sm:$0xff] }
 0x33f   : > { %11496 = vmatmul.mubr.msk.f32.vlgmr.msra.gmra.mrb[16].mxu1 %vm3954_vm3, %v4111_v24 }
 0x340   : > { %11882 = vmatpush3.bf16.msra.mxu1 %v13940_v7  ;;  %11498 = vmatprep.mubr.msk.f32.mxu1 %vm3954_vm3, %v14018_v30  ;;  %v14035_v7 = vld [vmem:[#allocation3 + $0x60] sm:$0xff] }
 0x341   : > { %11884 = vmatprep.subr.bf16.mxu1 %v11883_v33 }
 0x342   : > { %v4536_v62 = vld [vmem:[#allocation3 + $0x80] sm:$0xff] }
 0x343   : > { %11499 = vmatmul.mubr.msk.f32.gmra.mrb[18].mxu1 %vm3954_vm3, %v14023_v31  ;;  %v4826_v43 = vld [vmem:[#allocation3 + $0x82] sm:$0xff] }
 0x344   : > { %11501 = vmatprep.mubr.msk.f32.mxu1 %vm3954_vm3, %v14027_v37 }
 0x347   : > { %11502 = vmatmul.mubr.msk.f32.gmra.mrb[20].mxu1 %vm3954_vm3, %v14031_v1 }
 0x348   : > { %11504 = vmatprep.mubr.msk.f32.mxu1 %vm3954_vm3, %v14035_v7 }
 0x34b   : > { %11505 = vmatmul.mubr.msk.f32.gmra.mrb[22].mxu1 %vm3954_vm3, %v14039_v34 }
 0x34c   : > { %11511 = vmatprep.mubr.msk.f32.mxu1 %vm3954_vm3, %v4384_v32 }
 0x34f   : > { %11512 = vmatmul.mubr.msk.f32.vlgmr.msra.gmra.mrb[16].mxu1 %vm3954_vm3, %v4385_v48 }
 0x350   : > { %11886 = vmatpush3.bf16.msra.mxu1 %v11883_v33  ;;  %11514 = vmatprep.mubr.msk.f32.mxu1 %vm3954_vm3, %v14051_v49 }
 0x351   : > { %11888 = vmatprep.subr.bf16.mxu1 %v11887_v38 }
 0x353   : > { %11515 = vmatmul.mubr.msk.f32.gmra.mrb[18].mxu1 %vm3954_vm3, %v14055_v57 }
 0x354   : > { %11517 = vmatprep.mubr.msk.f32.mxu1 %vm3954_vm3, %v14059_v58 }
 0x357   : > { %11518 = vmatmul.mubr.msk.f32.gmra.mrb[20].mxu1 %vm3954_vm3, %v14063_v39 }
 0x358   : > { %11520 = vmatprep.mubr.msk.f32.mxu1 %vm3954_vm3, %v14067_v40 }
 0x35b   : > { %11521 = vmatmul.mubr.msk.f32.gmra.mrb[22].mxu1 %vm3954_vm3, %v14071_v59 }
 0x35c   : > { %11527 = vmatprep.mubr.msk.f32.mxu1 %vm3954_vm3, %v4111_v24 }
 0x35f   : > { %11528 = vmatmul.mubr.msk.f32.vlgmr.msra.gmra.mrb[16].mxu1 %vm3954_vm3, %v14018_v30 }
 0x360   : > { %11890 = vmatpush3.bf16.msra.mxu1 %v11887_v38  ;;  %11530 = vmatprep.mubr.msk.f32.mxu1 %vm3954_vm3, %v14023_v31 }
 0x361   : > { %11892 = vmatprep.subr.bf16.mxu1 %v11891_v61 }
 0x363   : > { %11531 = vmatmul.mubr.msk.f32.gmra.mrb[18].mxu1 %vm3954_vm3, %v14027_v37 }
 0x364   : > { %11533 = vmatprep.mubr.msk.f32.mxu1 %vm3954_vm3, %v14031_v1 }
 0x367   : > { %11534 = vmatmul.mubr.msk.f32.gmra.mrb[20].mxu1 %vm3954_vm3, %v14035_v7 }
 0x368   : > { %11536 = vmatprep.mubr.msk.f32.mxu1 %vm3954_vm3, %v14039_v34 }
 0x36b   : > { %11537 = vmatmul.mubr.msk.f32.gmra.mrb[22].mxu1 %vm3954_vm3, %v4536_v62 }
 0x36c   : > { %11543 = vmatprep.mubr.msk.f32.mxu1 %vm3954_vm3, %v13942_v10  ;;  %v4681_v10 = vld [vmem:[#allocation3 + $0x81] sm:$0xff] }
 0x36f   : > { %11544 = vmatmul.mubr.msk.f32.vlgmr.msra.gmra.mrb[16].mxu1 %vm3954_vm3, %v13954_v25 }
 0x370   : > { %11894 = vmatpush3.bf16.msra.mxu1 %v11891_v61  ;;  %11546 = vmatprep.mubr.msk.f32.mxu1 %vm3954_vm3, %v13966_v46 }
 0x371   : > { %11896 = vmatprep.subr.bf16.mxu1 %v11895_v3 }
 0x373   : > { %11547 = vmatmul.mubr.msk.f32.gmra.mrb[18].mxu1 %vm3954_vm3, %v13978_v0 }
 0x374   : > { %11549 = vmatprep.mubr.msk.f32.mxu1 %vm3954_vm3, %v13991_v23 }
 0x377   : > { %11550 = vmatmul.mubr.msk.f32.gmra.mrb[20].mxu1 %vm3954_vm3, %v13999_v18 }
 0x378   : > { %11552 = vmatprep.mubr.msk.f32.mxu1 %vm3954_vm3, %v14005_v28 }
 0x37b   : > { %11553 = vmatmul.mubr.msk.f32.gmra.mrb[22].mxu1 %vm3954_vm3, %v4681_v10 }
 0x37c   : > { %11559 = vmatprep.mubr.msk.f32.mxu1 %vm3954_vm3, %v4385_v48 }
 0x37f   : > { %11560 = vmatmul.mubr.msk.f32.vlgmr.msra.gmra.mrb[16].mxu1 %vm3954_vm3, %v14051_v49 }
 0x380   : > { %11898 = vmatpush3.bf16.msra.mxu1 %v11895_v3  ;;  %11562 = vmatprep.mubr.msk.f32.mxu1 %vm3954_vm3, %v14055_v57 }
 0x381   : > { %11900 = vmatprep.subr.bf16.mxu1 %v11899_v5 }
 0x383   : > { %11563 = vmatmul.mubr.msk.f32.gmra.mrb[18].mxu1 %vm3954_vm3, %v14059_v58 }
 0x384   : > { %11565 = vmatprep.mubr.msk.f32.mxu1 %vm3954_vm3, %v14063_v39 }
 0x387   : > { %11566 = vmatmul.mubr.msk.f32.gmra.mrb[20].mxu1 %vm3954_vm3, %v14067_v40 }
 0x388   : > { %11568 = vmatprep.mubr.msk.f32.mxu1 %vm3954_vm3, %v14071_v59 }
 0x38b   : > { %11569 = vmatmul.mubr.msk.f32.gmra.mrb[22].mxu1 %vm3954_vm3, %v4826_v43 }
 0x38c   : > { %11575 = vmatprep.mubr.msk.f32.mxu1 %vm3954_vm3, %v14018_v30 }
 0x38f   : > { %11576 = vmatmul.mubr.msk.f32.vlgmr.msra.gmra.mrb[16].mxu1 %vm3954_vm3, %v14023_v31 }
 0x390   : > { %11902 = vmatpush3.bf16.msra.mxu1 %v11899_v5  ;;  %11578 = vmatprep.mubr.msk.f32.mxu1 %vm3954_vm3, %v14027_v37  ;;  %v14272_v5 = vpack.c.bf16 %v10312_v4, %v10311_v42  ;;  %v8142_v42 = vld [vmem:[%s15178_s7 + $0x48] sm:$0xff] }
 0x391   : > { %11904 = vmatprep.subr.bf16.mxu1 %v11903_v8 }
 0x393   : > { %11579 = vmatmul.mubr.msk.f32.gmra.mrb[18].mxu1 %vm3954_vm3, %v14031_v1 }
 0x394   : > { %11581 = vmatprep.mubr.msk.f32.mxu1 %vm3954_vm3, %v14035_v7 }
 0x397   : > { %11582 = vmatmul.mubr.msk.f32.gmra.mrb[20].mxu1 %vm3954_vm3, %v14039_v34 }
 0x398   : > { %11584 = vmatprep.mubr.msk.f32.mxu1 %vm3954_vm3, %v4536_v62 }
 0x39b   : > { %11585 = vmatmul.mubr.msk.f32.gmra.mrb[22].mxu1 %vm3954_vm3, %v4972_v9 }
 0x39c   : > { %11591 = vmatprep.mubr.msk.f32.mxu1 %vm3954_vm3, %v13954_v25  ;;  %v5117_v25 = vld [vmem:[#allocation3 + $0x91] sm:$0xff] }
 0x39f   : > { %11592 = vmatmul.mubr.msk.f32.vlgmr.msra.gmra.mrb[16].mxu1 %vm3954_vm3, %v13966_v46  ;;  %v10303_v46 = vld [vmem:[%s15176_s5 + $0x10] sm:$0xff] }
 0x3a0   : > { %11906 = vmatpush3.bf16.msra.mxu1 %v11903_v8  ;;  %11594 = vmatprep.mubr.msk.f32.mxu1 %vm3954_vm3, %v13978_v0  ;;  %v10304_v0 = vld [vmem:[%s15176_s5 + $0x18] sm:$0xff]  ;;  %v14285_v8 = vpack.c.bf16 %v10314_v44, %v10313_v6  ;;  %v8141_v6 = vld [vmem:[%s15178_s7 + $0x40] sm:$0xff] }
 0x3a1   : > { %11907 = vmatprep.subr.bf16.mxu1 %v12734_v50  ;;  %v14179_v11 = vpack.c.bf16 %v10304_v0, %v10303_v46  ;;  %v10316_v46 = vld [vmem:[%s15176_s5 + $0x78] sm:$0xff] }
 0x3a2   : > { %v8136_v44 = vld [vmem:[%s15178_s7 + $0x18] sm:$0xff] }
 0x3a3   : > { %11595 = vmatmul.mubr.msk.f32.gmra.mrb[18].mxu1 %vm3954_vm3, %v13991_v23  ;;  %v10305_v23 = vld [vmem:[%s15176_s5 + $0x20] sm:$0xff] }
 0x3a4   : > { %11597 = vmatprep.mubr.msk.f32.mxu1 %vm3954_vm3, %v13999_v18  ;;  %v14225_v54 = vpack.c.bf16 %v10306_v51, %v10305_v23 }
 0x3a7   : > { %11598 = vmatmul.mubr.msk.f32.gmra.mrb[20].mxu1 %vm3954_vm3, %v14005_v28 }
 0x3a8   : > { %11600 = vmatprep.mubr.msk.f32.mxu1 %vm3954_vm3, %v4681_v10 }
 0x3ab   : > { %11601 = vmatmul.mubr.msk.f32.gmra.mrb[22].mxu1 %vm3954_vm3, %v5117_v25  ;;  %v10315_v25 = vld [vmem:[%s15176_s5 + $0x70] sm:$0xff] }
 0x3ac   : > { %11607 = vmatprep.mubr.msk.f32.mxu1 %vm3954_vm3, %v14051_v49  ;;  %v14298_v0 = vpack.c.bf16 %v10316_v46, %v10315_v25  ;;  %v8135_v46 = vld [vmem:[%s15178_s7 + $0x10] sm:$0xff] }
 0x3af   : > { %11608 = vmatmul.mubr.msk.f32.vlgmr.msra.gmra.mrb[16].mxu1 %vm3954_vm3, %v14055_v57 }
 0x3b0   : > { %11610 = vmatprep.mubr.msk.f32.mxu1 %vm3954_vm3, %v14059_v58  ;;  %11909 = vmatpush3.bf16.msra.mxu1 %v14179_v11 }
 0x3b1   : > { %11910 = vmatprep.subr.bf16.mxu1 %v12734_v50 }
 0x3b3   : > { %11611 = vmatmul.mubr.msk.f32.gmra.mrb[18].mxu1 %vm3954_vm3, %v14063_v39  ;;  %v10309_v39 = vld [vmem:[%s15176_s5 + $0x40] sm:$0xff] }
 0x3b4   : > { %11613 = vmatprep.mubr.msk.f32.mxu1 %vm3954_vm3, %v14067_v40  ;;  %v10310_v40 = vld [vmem:[%s15176_s5 + $0x48] sm:$0xff] }
 0x3b5   : > { %v14257_v61 = vpack.c.bf16 %v10310_v40, %v10309_v39 }
 0x3b7   : > { %11614 = vmatmul.mubr.msk.f32.gmra.mrb[20].mxu1 %vm3954_vm3, %v14071_v59 }
 0x3b8   : > { %11616 = vmatprep.mubr.msk.f32.mxu1 %vm3954_vm3, %v4826_v43 }
 0x3bb   : > { %11617 = vmatmul.mubr.msk.f32.gmra.mrb[22].mxu1 %vm3954_vm3, %v5262_v12 }
 0x3bc   : > { %11623 = vmatprep.mubr.msk.f32.mxu1 %vm12735_vm6, %v15343_v13 }
 0x3bf   : > { %11624 = vmatmul.mubr.msk.f32.vlgmr.msra.gmra.mrb[24].mxu1 %vm3954_vm3, %v5485_v14  ;;  %v10317_v14 = vld [vmem:[%s15176_s5 + $0x80] sm:$0xff] }
 0x3c0   : > { %11630 = vmatprep.mubr.msk.f32.mxu1 %vm12735_vm6, %v15343_v13  ;;  %11912 = vmatpush3.bf16.msra.mxu1 %v14212_v19  ;;  %v14311_v16 = vpack.c.bf16 %v10318_v15, %v10317_v14  ;;  %v8146_v14 = vld [vmem:[%s15178_s7 + $0x68] sm:$0xff] }
 0x3c1   : > { %11913 = vmatprep.subr.bf16.mxu1 %v12734_v50 }
 0x3c7   : > { %11631 = vmatmul.mubr.msk.f32.vlgmr.msra.gmra.mrb[24].mxu1 %vm3954_vm3, %v5484_v22 }
 0x3c8   : > { %11637 = vmatprep.mubr.msk.f32.mxu1 %vm12735_vm6, %v15343_v13  ;;  %11915 = vmatpush3.bf16.msra.mxu1 %v14225_v54 }
 0x3c9   : > { %11916 = vmatprep.subr.bf16.mxu1 %v12734_v50 }
 0x3cf   : > { %11638 = vmatmul.mubr.msk.f32.vlgmr.msra.gmra.mrb[24].mxu1 %vm3954_vm3, %v5632_v53 }
 0x3d0   : > { %11644 = vmatprep.mubr.msk.f32.mxu1 %vm12735_vm6, %v15343_v13  ;;  %11918 = vmatpush3.bf16.msra.mxu1 %v14238_v35 }
 0x3d1   : > { %11919 = vmatprep.subr.bf16.mxu1 %v12734_v50 }
 0x482   : > { %v11609_v18 = vpop.f32.mrb[16].mxu1 }
 0x483   : > { %v5353_v26 = vpop.f32.mrb[17].mxu1 }
 0x484   : > { %v5400_v36 = vmax.f32 %v5353_v26, %v11609_v18 }
 0x486   : > { %5401 = vst.msk [vmem:[#allocation6] sm:$0xff] %vm3954_vm3, %v5400_v36  ;;  %v11612_v52 = vpop.f32.mrb[18].mxu1 }
 0x487   : > { %v5363_v20 = vpop.f32.mrb[19].mxu1 }
 0x488   : > { %v5402_v55 = vmax.f32 %v5363_v20, %v11612_v52  ;;  %v10356_v52 = vld [vmem:[%s15178_s7 + $0x80] sm:$0xff] }
 0x489   : > { %v10364_v20 = vld [vmem:[%s15178_s7 + $0xc0] sm:$0xff] }
 0x48a   : > { %5404 = vst.msk [vmem:[#allocation6 + $0x8] sm:$0xff] %vm3954_vm3, %v5402_v55  ;;  %v11615_v56 = vpop.f32.mrb[20].mxu1  ;;  %v10359_v55 = vld [vmem:[%s15178_s7 + $0x98] sm:$0xff] }
 0x48b   : > { %v5373_v28 = vpop.f32.mrb[21].mxu1 }
 0x48c   : > { %v5405_v21 = vmax.f32 %v5373_v28, %v11615_v56  ;;  %v10367_v56 = vld [vmem:[%s15178_s7 + $0xd8] sm:$0xff] }
 0x48d   : > { %v5411_v33 = vld [vmem:[#allocation6] ss:$2 sm:$0xf]  ;;  %v5419_v24 = vld [vmem:[#allocation6 + $0x1] ss:$2 sm:$0xf] }
 0x48e   : > { %v5426_v30 = vmax.f32 %v5411_v33, %v5419_v24  ;;  %5407 = vst.msk [vmem:[#allocation6 + $0x10] sm:$0xff] %vm3954_vm3, %v5405_v21  ;;  %v11618_v31 = vpop.f32.mrb[22].mxu1  ;;  %v8033_v28 = vld [vmem:[#allocation4 + $0x2a] sm:$0xf]  ;;  %v12019_v21 = vpack.c.bf16 %v10367_v56, %v10359_v55 }
 0x48f   : > { %v5383_v37 = vpop.f32.mrb[23].mxu1  ;;  %v10391_v55 = vld [vmem:[%s15178_s7 + $0x158] sm:$0xff] }
 0x490   : > { %v5437_v1 = vadd.f32 %v10302_v29, %v5426_v30  ;;  %v5408_v7 = vmax.f32 %v5383_v37, %v11618_v31 }
 0x491   : > { %v5413_v32 = vld [vmem:[#allocation6 + $0x8] ss:$2 sm:$0xf]  ;;  %v5421_v34 = vld [vmem:[#allocation6 + $0x9] ss:$2 sm:$0xf] }
 0x492   : > { %v5441_v45 = vmax.f32 %v5437_v1, 0.0  ;;  %v5427_v47 = vmax.f32 %v5413_v32, %v5421_v34  ;;  %5410 = vst.msk [vmem:[#allocation6 + $0x18] sm:$0xff] %vm3954_vm3, %v5408_v7  ;;  %v14476_v1 = vld [vmem:[%s15177_s6] ss:$0 sm:$0xff] }
 0x494   : > { %v5438_v38 = vadd.f32 %v10302_v29, %v5427_v47  ;;  %5454 = vst.msk [vmem:[#allocation4 + $0x9] sm:$0xf] %vm5453_vm7, %v5441_v45  ;;  %v10358_v47 = vld [vmem:[%s15178_s7 + $0x90] sm:$0xff] }
 0x495   : > { %v5415_v48 = vld [vmem:[#allocation6 + $0x10] ss:$2 sm:$0xf]  ;;  %v5423_v49 = vld [vmem:[#allocation6 + $0x11] ss:$2 sm:$0xf] }
 0x496   : > { %v5442_v57 = vmax.f32 %v5438_v38, 0.0  ;;  %v5428_v58 = vmax.f32 %v5415_v48, %v5423_v49  ;;  %v10366_v38 = vld [vmem:[%s15178_s7 + $0xd0] sm:$0xff]  ;;  %v10361_v48 = vld [vmem:[%s15178_s7 + $0xa8] sm:$0xff] }
 0x497   : > { %v10369_v49 = vld [vmem:[%s15178_s7 + $0xe8] sm:$0xff] }
 0x498   : > { %v5439_v59 = vadd.f32 %v10302_v29, %v5428_v58  ;;  %5455 = vst.msk [vmem:[#allocation4 + $0x11] sm:$0xf] %vm5453_vm7, %v5442_v57  ;;  %v12021_v58 = vpack.c.bf16 %v10366_v38, %v10358_v47  ;;  %v12023_v40 = vpack.c.bf16 %v10369_v49, %v10361_v48  ;;  %v10393_v47 = vld [vmem:[%s15178_s7 + $0x168] sm:$0xff] }
 0x499   : > { %v5417_v60 = vld [vmem:[#allocation6 + $0x18] ss:$2 sm:$0xf]  ;;  %v5425_v41 = vld [vmem:[#allocation6 + $0x19] ss:$2 sm:$0xf] }
 0x49a   : > { %v5443_v62 = vmax.f32 %v5439_v59, 0.0  ;;  %v5429_v63 = vmax.f32 %v5417_v60, %v5425_v41  ;;  %v10360_v59 = vld [vmem:[%s15178_s7 + $0xa0] sm:$0xff]  ;;  %v10363_v41 = vld [vmem:[%s15178_s7 + $0xb8] sm:$0xff] }
 0x49b   : > { %v5707_v2 = vld [vmem:[#allocation4 + $0x8] sm:$0xf]  ;;  %v10368_v60 = vld [vmem:[%s15178_s7 + $0xe0] sm:$0xff] }
 0x49c   : > { %v5440_v3 = vadd.f32 %v10302_v29, %v5429_v63  ;;  %11645 = vmatmul.mubr.msk.f32.vlgmr.msra.gmra.mrb[24].mxu1 %vm3954_vm3, %v5707_v2  ;;  %5456 = vst.msk [vmem:[#allocation4 + $0x19] sm:$0xf] %vm5453_vm7, %v5443_v62  ;;  %v5782_v43 = vld [vmem:[#allocation4 + $0x9] sm:$0xf]  ;;  %v12017_v29 = vpack.c.bf16 %v10364_v20, %v10356_v52  ;;  %v12025_v62 = vpack.c.bf16 %v10368_v60, %v10360_v59  ;;  %v10388_v52 = vld [vmem:[%s15178_s7 + $0x140] sm:$0xff] }
 0x49d   : > { %11921 = vmatpush3.bf16.msra.mxu1 %v14257_v61  ;;  %11651 = vmatprep.mubr.msk.f32.mxu1 %vm12735_vm6, %v15343_v13  ;;  %v5857_v9 = vld [vmem:[#allocation4 + $0xa] sm:$0xf] }
 0x49e   : > { %v5444_v10 = vmax.f32 %v5440_v3, 0.0  ;;  %11922 = vmatprep.subr.bf16.mxu1 %v12734_v50  ;;  %v10370_v3 = vld [vmem:[%s15178_s7 + $0xf0] sm:$0xff]  ;;  %v10383_v20 = vld [vmem:[%s15178_s7 + $0x118] sm:$0xff] }
 0x49f   : > { %v5933_v12 = vld [vmem:[#allocation4 + $0x10] sm:$0xf]  ;;  %v10395_v59 = vld [vmem:[%s15178_s7 + $0x178] sm:$0xff] }
 0x4a0   : > { %5457 = vst.msk [vmem:[#allocation4 + $0x21] sm:$0xf] %vm5453_vm7, %v5444_v10  ;;  %v6008_v22 = vld [vmem:[#allocation4 + $0x11] sm:$0xf]  ;;  %v8134_v10 = vld [vmem:[%s15178_s7 + $0x8] sm:$0xff] }
 0x4a1   : > { %v6083_v23 = vld [vmem:[#allocation4 + $0x12] sm:$0xf] }
 0x4a3   : > { %v6583_v51 = vld [vmem:[#allocation4 + $0x18] sm:$0xf] }
 0x4a4   : > { %11652 = vmatmul.mubr.msk.f32.vlgmr.msra.gmra.mrb[24].mxu1 %vm3954_vm3, %v5782_v43  ;;  %v6658_v53 = vld [vmem:[#allocation4 + $0x19] sm:$0xf] }
 0x4a5   : > { %11924 = vmatpush3.bf16.msra.mxu1 %v14272_v5  ;;  %11658 = vmatprep.mubr.msk.f32.mxu1 %vm12735_vm6, %v15343_v13  ;;  %v6733_v27 = vld [vmem:[#allocation4 + $0x1a] sm:$0xf] }
 0x4a6   : > { %11925 = vmatprep.subr.bf16.mxu1 %v12734_v50 }
 0x4a7   : > { %v7233_v17 = vld [vmem:[#allocation4 + $0x20] sm:$0xf] }
 0x4a8   : > { %v7308_v18 = vld [vmem:[#allocation4 + $0x21] sm:$0xf] }
 0x4a9   : > { %v7383_v26 = vld [vmem:[#allocation4 + $0x22] sm:$0xf] }
 0x4ac   : > { %11659 = vmatmul.mubr.msk.f32.vlgmr.msra.gmra.mrb[24].mxu1 %vm3954_vm3, %v5857_v9 }
 0x4ad   : > { %11927 = vmatpush3.bf16.msra.mxu1 %v14285_v8  ;;  %11665 = vmatprep.mubr.msk.f32.mxu1 %vm12735_vm6, %v15343_v13 }
 0x4ae   : > { %11928 = vmatprep.subr.bf16.mxu1 %v12734_v50 }
 0x4b4   : > { %11666 = vmatmul.mubr.msk.f32.vlgmr.msra.gmra.mrb[24].mxu1 %vm3954_vm3, %v5933_v12 }
 0x4b5   : > { %11930 = vmatpush3.bf16.msra.mxu1 %v14298_v0  ;;  %11672 = vmatprep.mubr.msk.f32.mxu1 %vm12735_vm6, %v15343_v13 }
 0x4b6   : > { %11931 = vmatprep.subr.bf16.mxu1 %v12734_v50 }
 0x4bc   : > { %11673 = vmatmul.mubr.msk.f32.vlgmr.msra.gmra.mrb[24].mxu1 %vm3954_vm3, %v6008_v22 }
 0x4bd   : > { %11933 = vmatpush3.bf16.msra.mxu1 %v14311_v16  ;;  %11679 = vmatprep.mubr.msk.f32.mxu1 %vm12735_vm6, %v15343_v13 }
 0x4be   : > { %11934 = vmatprep.subr.bf16.mxu1 %v12734_v50 }
 0x4c4   : > { %11680 = vmatmul.mubr.msk.f32.vlgmr.msra.gmra.mrb[24].mxu1 %vm3954_vm3, %v6083_v23 }
 0x4c5   : > { %11936 = vmatpush3.bf16.msra.mxu1 %v14179_v11  ;;  %11686 = vmatprep.mubr.msk.f32.mxu1 %vm12735_vm6, %v15343_v13 }
 0x4c6   : > { %11937 = vmatprep.subr.bf16.mxu1 %v12734_v50 }
 0x4c8   : > { %11687 = vmatmul.mubr.msk.f32.vlgmr.msra.gmra.mrb[26].mxu1 %vm3954_vm3, %v5782_v43  ;;  %v8133_v43 = vld [vmem:[%s15178_s7] sm:$0xff] }
 0x4c9   : > { %11939 = vmatpush3.bf16.msra.mxu1 %v14212_v19  ;;  %11693 = vmatprep.mubr.msk.f32.mxu1 %vm12735_vm6, %v15343_v13 }
 0x4ca   : > { %11940 = vmatprep.subr.bf16.mxu1 %v12734_v50 }
 0x4d0   : > { %11694 = vmatmul.mubr.msk.f32.vlgmr.msra.gmra.mrb[26].mxu1 %vm3954_vm3, %v5707_v2  ;;  %v10362_v2 = vld [vmem:[%s15178_s7 + $0xb0] sm:$0xff] }
 0x4d1   : > { %11942 = vmatpush3.bf16.msra.mxu1 %v14225_v54  ;;  %11700 = vmatprep.mubr.msk.f32.mxu1 %vm12735_vm6, %v15343_v13  ;;  %v12029_v4 = vpack.c.bf16 %v10370_v3, %v10362_v2 }
 0x4d2   : > { %11943 = vmatprep.subr.bf16.mxu1 %v12734_v50 }
 0x4d8   : > { %11701 = vmatmul.mubr.msk.f32.vlgmr.msra.gmra.mrb[26].mxu1 %vm3954_vm3, %v5857_v9  ;;  %v12033_v9 = vpack.c.bf16 %v8141_v6, %v8133_v43 }
 0x4d9   : > { %11945 = vmatpush3.bf16.msra.mxu1 %v14238_v35  ;;  %11707 = vmatprep.mubr.msk.f32.mxu1 %vm12735_vm6, %v15343_v13 }
 0x4da   : > { %11946 = vmatprep.subr.bf16.mxu1 %v12734_v50 }
 0x4e0   : > { %11708 = vmatmul.mubr.msk.f32.vlgmr.msra.gmra.mrb[26].mxu1 %vm3954_vm3, %v5933_v12 }
 0x4e1   : > { %11948 = vmatpush3.bf16.msra.mxu1 %v14257_v61  ;;  %11714 = vmatprep.mubr.msk.f32.mxu1 %vm12735_vm6, %v15343_v13 }
 0x4e2   : > { %11949 = vmatprep.subr.bf16.mxu1 %v12734_v50 }
 0x4e8   : > { %11715 = vmatmul.mubr.msk.f32.vlgmr.msra.gmra.mrb[26].mxu1 %vm3954_vm3, %v6008_v22 }
 0x4e9   : > { %11951 = vmatpush3.bf16.msra.mxu1 %v14272_v5  ;;  %11721 = vmatprep.mubr.msk.f32.mxu1 %vm12735_vm6, %v15343_v13 }
 0x4ea   : > { %11952 = vmatprep.subr.bf16.mxu1 %v12734_v50 }
 0x4f0   : > { %11722 = vmatmul.mubr.msk.f32.vlgmr.msra.gmra.mrb[26].mxu1 %vm3954_vm3, %v6083_v23 }
 0x4f1   : > { %11954 = vmatpush3.bf16.msra.mxu1 %v14285_v8  ;;  %11728 = vmatprep.mubr.msk.f32.mxu1 %vm12735_vm6, %v15343_v13 }
 0x4f2   : > { %11955 = vmatprep.subr.bf16.mxu1 %v12734_v50 }
 0x4f8   : > { %11729 = vmatmul.mubr.msk.f32.vlgmr.msra.gmra.mrb[26].mxu1 %vm3954_vm3, %v6583_v51 }
 0x4f9   : > { %11957 = vmatpush3.bf16.msra.mxu1 %v14298_v0  ;;  %11735 = vmatprep.mubr.msk.f32.mxu1 %vm12735_vm6, %v15343_v13 }
 0x4fa   : > { %11958 = vmatprep.subr.bf16.mxu1 %v12734_v50 }
 0x500   : > { %11736 = vmatmul.mubr.msk.f32.vlgmr.msra.gmra.mrb[26].mxu1 %vm3954_vm3, %v6658_v53 }
 0x501   : > { %11960 = vmatpush3.bf16.msra.mxu1 %v14311_v16  ;;  %11742 = vmatprep.mubr.msk.f32.mxu1 %vm12735_vm6, %v15343_v13 }
 0x502   : > { %11961 = vmatprep.subr.bf16.mxu1 %v12734_v50 }
 0x508   : > { %11743 = vmatmul.mubr.msk.f32.vlgmr.msra.gmra.mrb[26].mxu1 %vm3954_vm3, %v6733_v27 }
 0x509   : > { %11963 = vmatpush3.bf16.msra.mxu1 %v14179_v11  ;;  %11749 = vmatprep.mubr.msk.f32.mxu1 %vm12735_vm6, %v15343_v13 }
 0x50a   : > { %11964 = vmatprep.subr.bf16.mxu1 %v12734_v50 }
 0x50c   : > { %11750 = vmatmul.mubr.msk.f32.vlgmr.msra.gmra.mrb[28].mxu1 %vm3954_vm3, %v6008_v22  ;;  %v8137_v22 = vld [vmem:[%s15178_s7 + $0x20] sm:$0xff] }
 0x50d   : > { %11966 = vmatpush3.bf16.msra.mxu1 %v14212_v19  ;;  %11756 = vmatprep.mubr.msk.f32.mxu1 %vm12735_vm6, %v15343_v13 }
 0x50e   : > { %11967 = vmatprep.subr.bf16.mxu1 %v12734_v50 }
 0x514   : > { %11757 = vmatmul.mubr.msk.f32.vlgmr.msra.gmra.mrb[28].mxu1 %vm3954_vm3, %v5933_v12  ;;  %v8138_v12 = vld [vmem:[%s15178_s7 + $0x28] sm:$0xff] }
 0x515   : > { %11969 = vmatpush3.bf16.msra.mxu1 %v14225_v54  ;;  %11763 = vmatprep.mubr.msk.f32.mxu1 %vm12735_vm6, %v15343_v13 }
 0x516   : > { %11970 = vmatprep.subr.bf16.mxu1 %v12734_v50 }
 0x51c   : > { %11764 = vmatmul.mubr.msk.f32.vlgmr.msra.gmra.mrb[28].mxu1 %vm3954_vm3, %v6083_v23  ;;  %v8145_v23 = vld [vmem:[%s15178_s7 + $0x60] sm:$0xff] }
 0x51d   : > { %11972 = vmatpush3.bf16.msra.mxu1 %v14238_v35  ;;  %11770 = vmatprep.mubr.msk.f32.mxu1 %vm12735_vm6, %v15343_v13 }
 0x51e   : > { %11973 = vmatprep.subr.bf16.mxu1 %v12734_v50 }
 0x524   : > { %11771 = vmatmul.mubr.msk.f32.vlgmr.msra.gmra.mrb[28].mxu1 %vm3954_vm3, %v6583_v51 }
 0x525   : > { %11975 = vmatpush3.bf16.msra.mxu1 %v14257_v61  ;;  %11777 = vmatprep.mubr.msk.f32.mxu1 %vm12735_vm6, %v15343_v13 }
 0x526   : > { %11976 = vmatprep.subr.bf16.mxu1 %v12734_v50 }
 0x52c   : > { %11778 = vmatmul.mubr.msk.f32.vlgmr.msra.gmra.mrb[28].mxu1 %vm3954_vm3, %v6658_v53 }
 0x52d   : > { %11978 = vmatpush3.bf16.msra.mxu1 %v14272_v5  ;;  %11784 = vmatprep.mubr.msk.f32.mxu1 %vm12735_vm6, %v15343_v13 }
 0x52e   : > { %11979 = vmatprep.subr.bf16.mxu1 %v12734_v50 }
 0x534   : > { %11785 = vmatmul.mubr.msk.f32.vlgmr.msra.gmra.mrb[28].mxu1 %vm3954_vm3, %v6733_v27 }
 0x535   : > { %11981 = vmatpush3.bf16.msra.mxu1 %v14285_v8  ;;  %11791 = vmatprep.mubr.msk.f32.mxu1 %vm12735_vm6, %v15343_v13 }
 0x536   : > { %11982 = vmatprep.subr.bf16.mxu1 %v12734_v50 }
 0x53c   : > { %11792 = vmatmul.mubr.msk.f32.vlgmr.msra.gmra.mrb[28].mxu1 %vm3954_vm3, %v7233_v17 }
 0x53d   : > { %11984 = vmatpush3.bf16.msra.mxu1 %v14298_v0  ;;  %11798 = vmatprep.mubr.msk.f32.mxu1 %vm12735_vm6, %v15343_v13 }
 0x53e   : > { %11985 = vmatprep.subr.bf16.mxu1 %v12734_v50 }
 0x544   : > { %11799 = vmatmul.mubr.msk.f32.vlgmr.msra.gmra.mrb[28].mxu1 %vm3954_vm3, %v7308_v18 }
 0x545   : > { %11987 = vmatpush3.bf16.msra.mxu1 %v14311_v16  ;;  %11805 = vmatprep.mubr.msk.f32.mxu1 %vm12735_vm6, %v15343_v13 }
 0x546   : > { %11988 = vmatprep.subr.bf16.mxu1 %v12734_v50 }
 0x54c   : > { %11806 = vmatmul.mubr.msk.f32.vlgmr.msra.gmra.mrb[28].mxu1 %vm3954_vm3, %v7383_v26 }
 0x54d   : > { %11990 = vmatpush3.bf16.msra.mxu1 %v14179_v11  ;;  %11812 = vmatprep.mubr.msk.f32.mxu1 %vm12735_vm6, %v15343_v13  ;;  %v7883_v11 = vld [vmem:[#allocation4 + $0x28] sm:$0xf] }
 0x54e   : > { %11991 = vmatprep.subr.bf16.mxu1 %v12734_v50 }
 0x550   : > { %11813 = vmatmul.mubr.msk.f32.vlgmr.msra.gmra.mrb[30].mxu1 %vm3954_vm3, %v6658_v53  ;;  %v8148_v53 = vld [vmem:[%s15178_s7 + $0x78] sm:$0xff] }
 0x551   : > { %11993 = vmatpush3.bf16.msra.mxu1 %v14212_v19  ;;  %11819 = vmatprep.mubr.msk.f32.mxu1 %vm12735_vm6, %v15343_v13  ;;  %v10357_v19 = vld [vmem:[%s15178_s7 + $0x88] sm:$0xff] }
 0x552   : > { %11994 = vmatprep.subr.bf16.mxu1 %v12734_v50 }
 0x558   : > { %11820 = vmatmul.mubr.msk.f32.vlgmr.msra.gmra.mrb[30].mxu1 %vm3954_vm3, %v6583_v51  ;;  %v8140_v51 = vld [vmem:[%s15178_s7 + $0x38] sm:$0xff] }
 0x559   : > { %11996 = vmatpush3.bf16.msra.mxu1 %v14225_v54  ;;  %11826 = vmatprep.mubr.msk.f32.mxu1 %vm12735_vm6, %v15343_v13  ;;  %v10365_v54 = vld [vmem:[%s15178_s7 + $0xc8] sm:$0xff] }
 0x55a   : > { %11997 = vmatprep.subr.bf16.mxu1 %v12734_v50  ;;  %v12015_v36 = vpack.c.bf16 %v10365_v54, %v10357_v19  ;;  %v10389_v19 = vld [vmem:[%s15178_s7 + $0x148] sm:$0xff] }
 0x560   : > { %11827 = vmatmul.mubr.msk.f32.vlgmr.msra.gmra.mrb[30].mxu1 %vm3954_vm3, %v6733_v27  ;;  %v12041_v27 = vpack.c.bf16 %v8145_v23, %v8137_v22  ;;  %v10415_v22 = vld [vmem:[%s15178_s7 + $0x1f8] sm:$0xff] }
 0x561   : > { %11999 = vmatpush3.bf16.msra.mxu1 %v14238_v35  ;;  %11833 = vmatprep.mubr.msk.f32.mxu1 %vm12735_vm6, %v15343_v13  ;;  %v7958_v35 = vld [vmem:[#allocation4 + $0x29] sm:$0xf] }
 0x562   : > { %12000 = vmatprep.subr.bf16.mxu1 %v12734_v50 }
 0x568   : > { %11834 = vmatmul.mubr.msk.f32.vlgmr.msra.gmra.mrb[30].mxu1 %vm3954_vm3, %v7233_v17  ;;  %v12043_v17 = vpack.c.bf16 %v8148_v53, %v8140_v51  ;;  %v10406_v53 = vld [vmem:[%s15178_s7 + $0x1b0] sm:$0xff] }
 0x569   : > { %12002 = vmatpush3.bf16.msra.mxu1 %v14257_v61  ;;  %11840 = vmatprep.mubr.msk.f32.mxu1 %vm12735_vm6, %v15343_v13  ;;  %v10371_v61 = vld [vmem:[%s15178_s7 + $0xf8] sm:$0xff] }
 0x56a   : > { %12003 = vmatprep.subr.bf16.mxu1 %v12734_v50  ;;  %v12027_v63 = vpack.c.bf16 %v10371_v61, %v10363_v41  ;;  %v10386_v41 = vld [vmem:[%s15178_s7 + $0x130] sm:$0xff] }
 0x56b   : > { %v10394_v61 = vld [vmem:[%s15178_s7 + $0x170] sm:$0xff] }
 0x56c   : > { %v12061_v2 = vpack.c.bf16 %v10394_v61, %v10386_v41  ;;  %v9433_v41 = vld [vmem:[%s15180_s9 + $0x58] sm:$0xff]  ;;  %v9450_v61 = vld [vmem:[%s15180_s9 + $0xe0] sm:$0xff] }
 0x570   : > { %11841 = vmatmul.mubr.msk.f32.vlgmr.msra.gmra.mrb[30].mxu1 %vm3954_vm3, %v7308_v18  ;;  %v8139_v18 = vld [vmem:[%s15178_s7 + $0x30] sm:$0xff] }
 0x571   : > { %12005 = vmatpush3.bf16.msra.mxu1 %v14272_v5  ;;  %11847 = vmatprep.mubr.msk.f32.mxu1 %vm12735_vm6, %v15343_v13  ;;  %v12031_v5 = vpack.c.bf16 %v8142_v42, %v8134_v10  ;;  %v10400_v10 = vld [vmem:[%s15178_s7 + $0x180] sm:$0xff] }
 0x572   : > { %12006 = vmatprep.subr.bf16.mxu1 %v12734_v50  ;;  %v10408_v42 = vld [vmem:[%s15178_s7 + $0x1c0] sm:$0xff] }
 0x573   : > { %v12065_v43 = vpack.c.bf16 %v10408_v42, %v10400_v10  ;;  %v9435_v10 = vld [vmem:[%s15180_s9 + $0x68] sm:$0xff] }
 0x578   : > { %11848 = vmatmul.mubr.msk.f32.vlgmr.msra.gmra.mrb[30].mxu1 %vm3954_vm3, %v7383_v26  ;;  %v8147_v26 = vld [vmem:[%s15178_s7 + $0x70] sm:$0xff] }
 0x579   : > { %12008 = vmatpush3.bf16.msra.mxu1 %v14285_v8  ;;  %11854 = vmatprep.mubr.msk.f32.mxu1 %vm12735_vm6, %v15343_v13  ;;  %v8144_v8 = vld [vmem:[%s15178_s7 + $0x58] sm:$0xff]  ;;  %v12045_v54 = vpack.c.bf16 %v8147_v26, %v8139_v18  ;;  %v9439_v18 = vld [vmem:[%s15180_s9 + $0x88] sm:$0xff] }
 0x57a   : > { %12009 = vmatprep.subr.bf16.mxu1 %v12734_v50  ;;  %v12035_v25 = vpack.c.bf16 %v8144_v8, %v8136_v44  ;;  %v10402_v44 = vld [vmem:[%s15178_s7 + $0x190] sm:$0xff] }
 0x57b   : > { %v10410_v8 = vld [vmem:[%s15178_s7 + $0x1d0] sm:$0xff] }
 0x580   : > { %11855 = vmatmul.mubr.msk.f32.vlgmr.msra.gmra.mrb[30].mxu1 %vm3954_vm3, %v7883_v11  ;;  %v10381_v11 = vld [vmem:[%s15178_s7 + $0x108] sm:$0xff] }
 0x581   : > { %12011 = vmatpush3.bf16.msra.mxu1 %v14298_v0  ;;  %11861 = vmatprep.mubr.msk.f32.mxu1 %vm12735_vm6, %v15343_v13  ;;  %v8143_v0 = vld [vmem:[%s15178_s7 + $0x50] sm:$0xff] }
 0x582   : > { %12012 = vmatprep.subr.bf16.mxu1 %v12734_v50  ;;  %v12037_v15 = vpack.c.bf16 %v8143_v0, %v8135_v46  ;;  %v12069_v46 = vpack.c.bf16 %v10410_v8, %v10402_v44  ;;  %v9436_v44 = vld [vmem:[%s15180_s9 + $0x70] sm:$0xff]  ;;  %v9437_v8 = vld [vmem:[%s15180_s9 + $0x78] sm:$0xff] }
 0x588   : > { %11862 = vmatmul.mubr.msk.f32.vlgmr.msra.gmra.mrb[30].mxu1 %vm3954_vm3, %v7958_v35  ;;  %v12047_v35 = vpack.c.bf16 %v10389_v19, %v10381_v11  ;;  %v9422_v19 = vld [vmem:[%s15180_s9] sm:$0xff] }
 0x589   : > { %12014 = vmatpush3.bf16.msra.mxu1 %v14311_v16  ;;  %11868 = vmatprep.mubr.msk.f32.mxu1 %vm12735_vm6, %v15343_v13  ;;  %v12039_v16 = vpack.c.bf16 %v8146_v14, %v8138_v12  ;;  %v10404_v14 = vld [vmem:[%s15178_s7 + $0x1a0] sm:$0xff] }
 0x58a   : > { %12016 = vmatprep.subr.bf16.mxu1 %v12015_v36  ;;  %v10380_v36 = vld [vmem:[%s15178_s7 + $0x100] sm:$0xff] }
 0x58b   : > { %v12049_v56 = vpack.c.bf16 %v10388_v52, %v10380_v36  ;;  %v9441_v36 = vld [vmem:[%s15180_s9 + $0x98] sm:$0xff] }
 0x590   : > { %11869 = vmatmul.mubr.msk.f32.vlgmr.msra.gmra.mrb[30].mxu1 %vm3954_vm3, %v8033_v28  ;;  %v12051_v28 = vpack.c.bf16 %v10391_v55, %v10383_v20  ;;  %v9424_v55 = vld [vmem:[%s15180_s9 + $0x10] sm:$0xff] }
 0x591   : > { %12018 = vmatpush1.bf16.msra.mxu1 %v12017_v29  ;;  %8234 = vmatprep.mubr.f32.mxu1 %v15343_v13 }
 0x592   : > { %12020 = vmatprep.subr.bf16.mxu1 %v12019_v21 }
 0x597   : > { %v6153_v33 = vpop.f32.mrb[24].mxu1 }
 0x598   : > { %v11681_v24 = vpop.f32.mrb[25].mxu1 }
 0x5db   : > { %v6803_v30 = vpop.f32.mrb[26].mxu1 }
 0x5dc   : > { %v8108_v31 = vmax.f32 %v6153_v33, %v6803_v30  ;;  %v11744_v37 = vpop.f32.mrb[27].mxu1 }
 0x5de   : > { %8109 = vst.msk [vmem:[#allocation7] sm:$0xf] %vm5453_vm7, %v8108_v31 }
 0x5e5   : > { %v8113_v7 = vld [vmem:[#allocation7] ss:$2 sm:$0x3]  ;;  %v8117_v32 = vld [vmem:[#allocation7 + $0x1] ss:$2 sm:$0x3] }
 0x5e6   : > { %v8120_v34 = vmax.f32 %v8113_v7, %v8117_v32  ;;  %v10382_v32 = vld [vmem:[%s15178_s7 + $0x110] sm:$0xff] }
 0x5e8   : > { %v8129_v45 = vadd.f32 %v14476_v1, %v8120_v34  ;;  %v10390_v34 = vld [vmem:[%s15178_s7 + $0x150] sm:$0xff] }
 0x5e9   : > { %v12053_v48 = vpack.c.bf16 %v10390_v34, %v10382_v32  ;;  %v9428_v34 = vld [vmem:[%s15180_s9 + $0x30] sm:$0xff] }
 0x5ea   : > { %v14491_v57 = vmax.f32 %v8129_v45, 0.0  ;;  %v10385_v45 = vld [vmem:[%s15178_s7 + $0x128] sm:$0xff] }
 0x5ec   : > { %v8167_v39 = vrot.slane %v14491_v57, 1 }
 0x5ee   : > { %10372 = vmatmul.mubr.msk.f32.vlgmr.msra.gmra.mrb[32].mxu1 %vm3954_vm3, %v8167_v39 }
 0x5ef   : > { %12022 = vmatpush1.bf16.msra.mxu1 %v12021_v58  ;;  %8305 = vmatprep.mubr.f32.mxu1 %v15343_v13  ;;  %v10384_v58 = vld [vmem:[%s15178_s7 + $0x120] sm:$0xff] }
 0x5f0   : > { %12024 = vmatprep.subr.bf16.mxu1 %v12023_v40  ;;  %v10387_v40 = vld [vmem:[%s15178_s7 + $0x138] sm:$0xff] }
 0x5f1   : > { %v12059_v60 = vpack.c.bf16 %v10395_v59, %v10387_v40  ;;  %v9449_v40 = vld [vmem:[%s15180_s9 + $0xd8] sm:$0xff] }
 0x5f2   : > { %10373 = vmatmul.mubr.msk.f32.vlgmr.msra.gmra.mrb[34].mxu1 %vm3954_vm3, %v8167_v39 }
 0x5f3   : > { %12026 = vmatpush1.bf16.msra.mxu1 %v12025_v62  ;;  %8376 = vmatprep.mubr.f32.mxu1 %v15343_v13  ;;  %v10401_v62 = vld [vmem:[%s15178_s7 + $0x188] sm:$0xff] }
 0x5f4   : > { %12028 = vmatprep.subr.bf16.mxu1 %v12027_v63  ;;  %v10409_v63 = vld [vmem:[%s15178_s7 + $0x1c8] sm:$0xff] }
 0x5f5   : > { %v12063_v3 = vpack.c.bf16 %v10409_v63, %v10401_v62  ;;  %v9451_v62 = vld [vmem:[%s15180_s9 + $0xe8] sm:$0xff] }
 0x5f6   : > { %10374 = vmatmul.mubr.msk.f32.vlgmr.msra.gmra.mrb[36].mxu1 %vm3954_vm3, %v8167_v39 }
 0x5f7   : > { %12030 = vmatpush1.bf16.msra.mxu1 %v12029_v4  ;;  %8447 = vmatprep.mubr.f32.mxu1 %v15343_v13  ;;  %v10403_v4 = vld [vmem:[%s15178_s7 + $0x198] sm:$0xff] }
 0x5f8   : > { %12032 = vmatprep.subr.bf16.mxu1 %v12031_v5  ;;  %v10411_v5 = vld [vmem:[%s15178_s7 + $0x1d8] sm:$0xff] }
 0x5f9   : > { %v12067_v6 = vpack.c.bf16 %v10411_v5, %v10403_v4  ;;  %v9452_v4 = vld [vmem:[%s15180_s9 + $0xf0] sm:$0xff]  ;;  %v9453_v5 = vld [vmem:[%s15180_s9 + $0xf8] sm:$0xff] }
 0x5fa   : > { %10375 = vmatmul.mubr.msk.f32.vlgmr.msra.gmra.mrb[38].mxu1 %vm3954_vm3, %v8167_v39  ;;  %v10392_v39 = vld [vmem:[%s15178_s7 + $0x160] sm:$0xff] }
 0x5fb   : > { %12034 = vmatpush1.bf16.msra.mxu1 %v12033_v9  ;;  %8520 = vmatprep.mubr.f32.mxu1 %v15343_v13  ;;  %v10405_v9 = vld [vmem:[%s15178_s7 + $0x1a8] sm:$0xff] }
 0x5fc   : > { %12036 = vmatprep.subr.bf16.mxu1 %v12035_v25  ;;  %v10413_v25 = vld [vmem:[%s15178_s7 + $0x1e8] sm:$0xff] }
 0x5fd   : > { %v12071_v12 = vpack.c.bf16 %v10413_v25, %v10405_v9  ;;  %v12109_v9 = vpack.c.bf16 %v9437_v8, %v9436_v44  ;;  %v9470_v25 = vld [vmem:[%s15180_s9 + $0x180] sm:$0xff]  ;;  %v9463_v44 = vld [vmem:[%s15180_s9 + $0x148] sm:$0xff]  ;;  %v9480_v8 = vld [vmem:[%s15180_s9 + $0x1d0] sm:$0xff] }
 0x5fe   : > { %10376 = vmatmul.mubr.msk.f32.vlgmr.msra.gmra.mrb[32].mxu1 %vm3954_vm3, %v14491_v57 }
 0x5ff   : > { %12038 = vmatpush1.bf16.msra.mxu1 %v12037_v15  ;;  %8591 = vmatprep.mubr.f32.mxu1 %v15343_v13  ;;  %v10412_v15 = vld [vmem:[%s15178_s7 + $0x1e0] sm:$0xff] }
 0x600   : > { %12040 = vmatprep.subr.bf16.mxu1 %v12039_v16  ;;  %v10407_v16 = vld [vmem:[%s15178_s7 + $0x1b8] sm:$0xff]  ;;  %v12073_v23 = vpack.c.bf16 %v10412_v15, %v10404_v14  ;;  %v14801_v15 = vld [vmem:[%s15179_s8] sm:$0xff] }
 0x601   : > { %v12075_v51 = vpack.c.bf16 %v10415_v22, %v10407_v16 }
 0x602   : > { %10377 = vmatmul.mubr.msk.f32.vlgmr.msra.gmra.mrb[34].mxu1 %vm3954_vm3, %v14491_v57 }
 0x603   : > { %12042 = vmatpush1.bf16.msra.mxu1 %v12041_v27  ;;  %8662 = vmatprep.mubr.f32.mxu1 %v15343_v13  ;;  %v10414_v27 = vld [vmem:[%s15178_s7 + $0x1f0] sm:$0xff] }
 0x604   : > { %12044 = vmatprep.subr.bf16.mxu1 %v12043_v17  ;;  %v9438_v17 = vld [vmem:[%s15180_s9 + $0x80] sm:$0xff]  ;;  %v12077_v26 = vpack.c.bf16 %v10414_v27, %v10406_v53 }
 0x605   : > { %v12079_v11 = vpack.c.bf16 %v9439_v18, %v9438_v17 }
 0x606   : > { %10378 = vmatmul.mubr.msk.f32.vlgmr.msra.gmra.mrb[36].mxu1 %vm3954_vm3, %v14491_v57 }
 0x607   : > { %12046 = vmatpush1.bf16.msra.mxu1 %v12045_v54  ;;  %8733 = vmatprep.mubr.f32.mxu1 %v15343_v13  ;;  %v9423_v54 = vld [vmem:[%s15180_s9 + $0x8] sm:$0xff] }
 0x608   : > { %12048 = vmatprep.subr.bf16.mxu1 %v12047_v35  ;;  %v9440_v35 = vld [vmem:[%s15180_s9 + $0x90] sm:$0xff]  ;;  %v12081_v52 = vpack.c.bf16 %v9423_v54, %v9422_v19 }
 0x609   : > { %v12083_v20 = vpack.c.bf16 %v9441_v36, %v9440_v35  ;;  %v9454_v36 = vld [vmem:[%s15180_s9 + $0x100] sm:$0xff] }
 0x60a   : > { %10379 = vmatmul.mubr.msk.f32.vlgmr.msra.gmra.mrb[38].mxu1 %vm3954_vm3, %v14491_v57  ;;  %v12055_v57 = vpack.c.bf16 %v10393_v47, %v10385_v45  ;;  %v9429_v45 = vld [vmem:[%s15180_s9 + $0x38] sm:$0xff]  ;;  %v9446_v47 = vld [vmem:[%s15180_s9 + $0xc0] sm:$0xff] }
 0x60b   : > { %12050 = vmatpush1.bf16.msra.mxu1 %v12049_v56  ;;  %8824 = vmatprep.mubr.f32.mxu1 %v15343_v13  ;;  %v9425_v56 = vld [vmem:[%s15180_s9 + $0x18] sm:$0xff] }
 0x60c   : > { %12052 = vmatprep.subr.bf16.mxu1 %v12051_v28  ;;  %v9442_v28 = vld [vmem:[%s15180_s9 + $0xa0] sm:$0xff] }
 0x61f   : > { %v7453_v29 = vpop.f32.mrb[28].mxu1 }
 0x620   : > { %v11807_v21 = vpop.f32.mrb[29].mxu1 }
 0x621   : > { %v12085_v21 = vpack.c.bf16 %v9425_v56, %v9424_v55  ;;  %v9472_v56 = vld [vmem:[%s15180_s9 + $0x190] sm:$0xff] }
 0x663   : > { %v8103_v33 = vpop.f32.mrb[30].mxu1 }
 0x664   : > { %v8110_v24 = vmax.f32 %v7453_v29, %v8103_v33  ;;  %v11870_v30 = vpop.f32.mrb[31].mxu1  ;;  %v9443_v29 = vld [vmem:[%s15180_s9 + $0xa8] sm:$0xff] }
 0x665   : > { %v12087_v33 = vpack.c.bf16 %v9443_v29, %v9442_v28  ;;  %v9427_v30 = vld [vmem:[%s15180_s9 + $0x28] sm:$0xff]  ;;  %v9473_v28 = vld [vmem:[%s15180_s9 + $0x198] sm:$0xff] }
 0x666   : > { %8112 = vst.msk [vmem:[#allocation7 + $0x4] sm:$0xf] %vm5453_vm7, %v8110_v24  ;;  %v9426_v24 = vld [vmem:[%s15180_s9 + $0x20] sm:$0xff] }
 0x66d   : > { %v8115_v31 = vld [vmem:[#allocation7 + $0x4] ss:$2 sm:$0x3]  ;;  %v8119_v37 = vld [vmem:[#allocation7 + $0x5] ss:$2 sm:$0x3] }
 0x66e   : > { %v8121_v7 = vmax.f32 %v8115_v31, %v8119_v37  ;;  %v9444_v31 = vld [vmem:[%s15180_s9 + $0xb0] sm:$0xff]  ;;  %v9445_v37 = vld [vmem:[%s15180_s9 + $0xb8] sm:$0xff] }
 0x66f   : > { %v12091_v32 = vpack.c.bf16 %v9445_v37, %v9444_v31  ;;  %v12115_v31 = vpack.c.bf16 %v9473_v28, %v9472_v56  ;;  %v9456_v37 = vld [vmem:[%s15180_s9 + $0x110] sm:$0xff] }
 0x670   : > { %v8130_v38 = vadd.f32 %v14476_v1, %v8121_v7  ;;  %v12057_v1 = vpack.c.bf16 %v10392_v39, %v10384_v58  ;;  %v12089_v7 = vpack.c.bf16 %v9427_v30, %v9426_v24  ;;  %v9431_v58 = vld [vmem:[%s15180_s9 + $0x48] sm:$0xff]  ;;  %v9448_v39 = vld [vmem:[%s15180_s9 + $0xd0] sm:$0xff] }
 0x672   : > { %v8132_v49 = vmax.f32 %v8130_v38, 0.0  ;;  %v9447_v38 = vld [vmem:[%s15180_s9 + $0xc8] sm:$0xff] }
 0x674   : > { %10396 = vmatmul.mubr.msk.f32.vlgmr.msra.gmra.mrb[32].mxu1 %vm3954_vm3, %v8132_v49  ;;  %v9069_v0 = vrot.slane %v8132_v49, 1 }
 0x675   : > { %12054 = vmatpush1.bf16.msra.mxu1 %v12053_v48  ;;  %8895 = vmatprep.mubr.f32.mxu1 %v15343_v13  ;;  %v12093_v48 = vpack.c.bf16 %v9429_v45, %v9428_v34  ;;  %v9474_v34 = vld [vmem:[%s15180_s9 + $0x1a0] sm:$0xff]  ;;  %v9475_v45 = vld [vmem:[%s15180_s9 + $0x1a8] sm:$0xff] }
 0x676   : > { %12056 = vmatprep.subr.bf16.mxu1 %v12055_v57  ;;  %v9430_v57 = vld [vmem:[%s15180_s9 + $0x40] sm:$0xff] }
 0x677   : > { %v12097_v59 = vpack.c.bf16 %v9431_v58, %v9430_v57  ;;  %v12119_v58 = vpack.c.bf16 %v9475_v45, %v9474_v34  ;;  %v9489_v34 = vld [vmem:[%s15180_s9 + $0x218] sm:$0xff] }
 0x678   : > { %10397 = vmatmul.mubr.msk.f32.vlgmr.msra.gmra.mrb[34].mxu1 %vm3954_vm3, %v8132_v49 }
 0x679   : > { %12058 = vmatpush1.bf16.msra.mxu1 %v12057_v1  ;;  %8966 = vmatprep.mubr.f32.mxu1 %v15343_v13  ;;  %v12099_v1 = vpack.c.bf16 %v9449_v40, %v9448_v39  ;;  %v9458_v39 = vld [vmem:[%s15180_s9 + $0x120] sm:$0xff]  ;;  %v9459_v40 = vld [vmem:[%s15180_s9 + $0x128] sm:$0xff] }
 0x67a   : > { %12060 = vmatprep.subr.bf16.mxu1 %v12059_v60  ;;  %v9432_v60 = vld [vmem:[%s15180_s9 + $0x50] sm:$0xff] }
 0x67b   : > { %v12101_v63 = vpack.c.bf16 %v9433_v41, %v9432_v60  ;;  %v12121_v41 = vpack.c.bf16 %v9459_v40, %v9458_v39  ;;  %v9491_v39 = vld [vmem:[%s15180_s9 + $0x228] sm:$0xff]  ;;  %v9508_v40 = vld [vmem:[%s15180_s9 + $0x2b0] sm:$0xff] }
 0x67c   : > { %10398 = vmatmul.mubr.msk.f32.vlgmr.msra.gmra.mrb[36].mxu1 %vm3954_vm3, %v8132_v49 }
 0x67d   : > { %12062 = vmatpush1.bf16.msra.mxu1 %v12061_v2  ;;  %9037 = vmatprep.mubr.f32.mxu1 %v15343_v13  ;;  %v12103_v2 = vpack.c.bf16 %v9451_v62, %v9450_v61 }
 0x67e   : > { %12064 = vmatprep.subr.bf16.mxu1 %v12063_v3  ;;  %v9434_v3 = vld [vmem:[%s15180_s9 + $0x60] sm:$0xff] }
 0x67f   : > { %v12105_v42 = vpack.c.bf16 %v9435_v10, %v9434_v3  ;;  %v9461_v3 = vld [vmem:[%s15180_s9 + $0x138] sm:$0xff] }
 0x680   : > { %10399 = vmatmul.mubr.msk.f32.vlgmr.msra.gmra.mrb[38].mxu1 %vm3954_vm3, %v8132_v49  ;;  %v12095_v49 = vpack.c.bf16 %v9447_v38, %v9446_v47 }
 0x681   : > { %12066 = vmatpush1.bf16.msra.mxu1 %v12065_v43  ;;  %9136 = vmatprep.mubr.f32.mxu1 %v15343_v13  ;;  %v9366_v43 = vlaneseq }
 0x682   : > { %12068 = vmatprep.subr.bf16.mxu1 %v12067_v6  ;;  %v12107_v6 = vpack.c.bf16 %v9453_v5, %v9452_v4  ;;  %v9479_v4 = vld [vmem:[%s15180_s9 + $0x1c8] sm:$0xff] }
 0x684   : > { %10416 = vmatmul.mubr.msk.f32.vlgmr.msra.gmra.mrb[32].mxu1 %vm3954_vm3, %v9069_v0 }
 0x685   : > { %12070 = vmatpush1.bf16.msra.mxu1 %v12069_v46  ;;  %9207 = vmatprep.mubr.f32.mxu1 %v15343_v13  ;;  %v9471_v46 = vld [vmem:[%s15180_s9 + $0x188] sm:$0xff] }
 0x686   : > { %12072 = vmatprep.subr.bf16.mxu1 %v12071_v12  ;;  %v12111_v12 = vpack.c.bf16 %v9471_v46, %v9470_v25 }
 0x688   : > { %10417 = vmatmul.mubr.msk.f32.vlgmr.msra.gmra.mrb[34].mxu1 %vm3954_vm3, %v9069_v0 }
 0x689   : > { %12074 = vmatpush1.bf16.msra.mxu1 %v12073_v23  ;;  %9278 = vmatprep.mubr.f32.mxu1 %v15343_v13 }
 0x68a   : > { %12076 = vmatprep.subr.bf16.mxu1 %v12075_v51 }
 0x68c   : > { %10418 = vmatmul.mubr.msk.f32.vlgmr.msra.gmra.mrb[36].mxu1 %vm3954_vm3, %v9069_v0 }
 0x68d   : > { %12078 = vmatpush1.bf16.msra.mxu1 %v12077_v26  ;;  %9349 = vmatprep.mubr.f32.mxu1 %v15343_v13 }
 0x68e   : > { %12080 = vmatprep.subr.bf16.mxu1 %v12079_v11 }
 0x690   : > { %10419 = vmatmul.mubr.msk.f32.vlgmr.msra.gmra.mrb[38].mxu1 %vm3954_vm3, %v9069_v0  ;;  %v14795_v0 = vshrl.u32 %v9366_v43, 7 }
 0x691   : > { %12082 = vmatpush3.bf16.msra.mxu1 %v12081_v52  ;;  %v9455_v52 = vld [vmem:[%s15180_s9 + $0x108] sm:$0xff] }
 0x692   : > { %12084 = vmatprep.subr.bf16.mxu1 %v12083_v20  ;;  %v9384_v14 = vsub.s32 4, %v14795_v0  ;;  %v9392_v22 = vsub.s32 6, %v14795_v0  ;;  %v9396_v23 = vsub.s32 7, %v14795_v0  ;;  %v9368_v27 = vsub.s32 0, %v14795_v0 }
 0x693   : > { %v9372_v17 = vsub.s32 1, %v14795_v0  ;;  %v9380_v11 = vsub.s32 3, %v14795_v0 }
 0x694   : > { %v9385_v16 = vrot.slane %v14801_v15, %v9384_v14  ;;  %v9393_v51 = vrot.slane %v14801_v15, %v9392_v22  ;;  %v9397_v53 = vrot.slane %v14801_v15, %v9396_v23  ;;  %v9369_v18 = vrot.slane %v14801_v15, %v9368_v27  ;;  %v9465_v14 = vld [vmem:[%s15180_s9 + $0x158] sm:$0xff]  ;;  %v9483_v22 = vld [vmem:[%s15180_s9 + $0x1e8] sm:$0xff]  ;;  %v9466_v27 = vld [vmem:[%s15180_s9 + $0x160] sm:$0xff] }
 0x695   : > { %12086 = vmatpush3.bf16.msra.mxu1 %v12085_v21  ;;  %v9373_v26 = vrot.slane %v14801_v15, %v9372_v17  ;;  %v9381_v55 = vrot.slane %v14801_v15, %v9380_v11  ;;  %v9467_v17 = vld [vmem:[%s15180_s9 + $0x168] sm:$0xff]  ;;  %v9485_v11 = vld [vmem:[%s15180_s9 + $0x1f8] sm:$0xff] }
 0x696   : > { %12088 = vmatprep.subr.bf16.mxu1 %v12087_v33  ;;  %v12113_v33 = vpack.c.bf16 %v9455_v52, %v9454_v36  ;;  %v9468_v36 = vld [vmem:[%s15180_s9 + $0x170] sm:$0xff] }
 0x699   : > { %12090 = vmatpush3.bf16.msra.mxu1 %v12089_v7  ;;  %v9457_v7 = vld [vmem:[%s15180_s9 + $0x118] sm:$0xff] }
 0x69a   : > { %12092 = vmatprep.subr.bf16.mxu1 %v12091_v32 }
 0x69d   : > { %12094 = vmatpush3.bf16.msra.mxu1 %v12093_v48  ;;  %v12117_v48 = vpack.c.bf16 %v9457_v7, %v9456_v37 }
 0x69e   : > { %12096 = vmatprep.subr.bf16.mxu1 %v12095_v49 }
 0x6a1   : > { %12098 = vmatpush3.bf16.msra.mxu1 %v12097_v59  ;;  %v9476_v59 = vld [vmem:[%s15180_s9 + $0x1b0] sm:$0xff] }
 0x6a2   : > { %12100 = vmatprep.subr.bf16.mxu1 %v12099_v1  ;;  %v9477_v1 = vld [vmem:[%s15180_s9 + $0x1b8] sm:$0xff] }
 0x6a5   : > { %12102 = vmatpush3.bf16.msra.mxu1 %v12101_v63  ;;  %v12123_v63 = vpack.c.bf16 %v9477_v1, %v9476_v59  ;;  %v9509_v59 = vld [vmem:[%s15180_s9 + $0x2b8] sm:$0xff] }
 0x6a6   : > { %12104 = vmatprep.subr.bf16.mxu1 %v12103_v2  ;;  %v9460_v2 = vld [vmem:[%s15180_s9 + $0x130] sm:$0xff] }
 0x6a7   : > { %v12125_v5 = vpack.c.bf16 %v9461_v3, %v9460_v2  ;;  %v9511_v2 = vld [vmem:[%s15180_s9 + $0x2c8] sm:$0xff] }
 0x6a9   : > { %12106 = vmatpush3.bf16.msra.mxu1 %v12105_v42  ;;  %v9478_v42 = vld [vmem:[%s15180_s9 + $0x1c0] sm:$0xff] }
 0x6aa   : > { %12108 = vmatprep.subr.bf16.mxu1 %v12107_v6  ;;  %v12127_v43 = vpack.c.bf16 %v9479_v4, %v9478_v42  ;;  %v9462_v6 = vld [vmem:[%s15180_s9 + $0x140] sm:$0xff] }
 0x6ab   : > { %v12129_v25 = vpack.c.bf16 %v9463_v44, %v9462_v6  ;;  %v9494_v4 = vld [vmem:[%s15180_s9 + $0x240] sm:$0xff]  ;;  %v9513_v6 = vld [vmem:[%s15180_s9 + $0x2d8] sm:$0xff] }
 0x6ad   : > { %12110 = vmatpush3.bf16.msra.mxu1 %v12109_v9  ;;  %v9481_v9 = vld [vmem:[%s15180_s9 + $0x1d8] sm:$0xff] }
 0x6ae   : > { %12112 = vmatprep.subr.bf16.mxu1 %v12111_v12  ;;  %v12131_v46 = vpack.c.bf16 %v9481_v9, %v9480_v8  ;;  %v9464_v12 = vld [vmem:[%s15180_s9 + $0x150] sm:$0xff] }
 0x6af   : > { %v12133_v23 = vpack.c.bf16 %v9465_v14, %v9464_v12  ;;  %v9496_v9 = vld [vmem:[%s15180_s9 + $0x250] sm:$0xff]  ;;  %v9515_v12 = vld [vmem:[%s15180_s9 + $0x2e8] sm:$0xff] }
 0x757   : > { %v9138_v19 = vpop.f32.mrb[32].mxu1 }
 0x758   : > { %v9406_v54 = vadd.f32 %v9369_v18, %v9138_v19  ;;  %v9140_v35 = vpop.f32.mrb[33].mxu1  ;;  %v9388_v18 = vsub.s32 5, %v14795_v0  ;;  %v12137_v19 = vpack.c.bf16 %v9467_v17, %v9466_v27 }
 0x759   : > { %v9407_v20 = vadd.f32 %v9373_v26, %v9140_v35  ;;  %v9484_v26 = vld [vmem:[%s15180_s9 + $0x1f0] sm:$0xff] }
 0x75a   : > { %v9414_v24 = vmax.f32 %v9406_v54, 0.0  ;;  %v12139_v35 = vpack.c.bf16 %v9485_v11, %v9484_v26  ;;  %v9389_v52 = vrot.slane %v14801_v15, %v9388_v18  ;;  %v9500_v18 = vld [vmem:[%s15180_s9 + $0x270] sm:$0xff]  ;;  %v9501_v26 = vld [vmem:[%s15180_s9 + $0x278] sm:$0xff] }
 0x75b   : > { %v9415_v29 = vmax.f32 %v9407_v20, 0.0  ;;  %v14826_v21 = vpop.f32.mrb[34].mxu1  ;;  %v9502_v20 = vld [vmem:[%s15180_s9 + $0x280] sm:$0xff]  ;;  %v12173_v11 = vpack.c.bf16 %v9501_v26, %v9500_v18 }
 0x75c   : > { %v9211_v30 = vpop.f32.mrb[35].mxu1 }
 0x75d   : > { %v9409_v32 = vadd.f32 %v9381_v55, %v9211_v30  ;;  %9616 = vmatprep.mubr.f32.mxu1 %v9415_v29  ;;  %v9503_v55 = vld [vmem:[%s15180_s9 + $0x288] sm:$0xff]  ;;  %v9504_v30 = vld [vmem:[%s15180_s9 + $0x290] sm:$0xff] }
 0x75e   : > { %9617 = vmatmul.mubr.f32.vlgmr.msra.gmra.mrb[40].mxu1 %v9414_v24  ;;  %v12143_v29 = vpack.c.bf16 %v9503_v55, %v9502_v20 }
 0x75f   : > { %v9417_v47 = vmax.f32 %v9409_v32, 0.0  ;;  %12114 = vmatpush3.bf16.msra.mxu1 %v12113_v33  ;;  %v9280_v38 = vpop.f32.mrb[36].mxu1  ;;  %v9486_v33 = vld [vmem:[%s15180_s9 + $0x200] sm:$0xff]  ;;  %v9488_v32 = vld [vmem:[%s15180_s9 + $0x210] sm:$0xff] }
 0x760   : > { %v14840_v49 = vadd.f32 %v9385_v16, %v9280_v38  ;;  %v14842_v57 = vpop.f32.mrb[37].mxu1  ;;  %12116 = vmatprep.subr.bf16.mxu1 %v12115_v31  ;;  %v9482_v16 = vld [vmem:[%s15180_s9 + $0x1e0] sm:$0xff]  ;;  %v9507_v38 = vld [vmem:[%s15180_s9 + $0x2a8] sm:$0xff] }
 0x761   : > { %9686 = vmatprep.mubr.f32.mxu1 %v9417_v47  ;;  %v9411_v24 = vadd.f32 %v9389_v52, %v14842_v57  ;;  %v9506_v47 = vld [vmem:[%s15180_s9 + $0x2a0] sm:$0xff]  ;;  %v9521_v52 = vld [vmem:[%s15180_s9 + $0x318] sm:$0xff] }
 0x762   : > { %v12151_v57 = vpack.c.bf16 %v9507_v38, %v9506_v47  ;;  %v9533_v47 = vld [vmem:[%s15180_s9 + $0x378] sm:$0xff] }
 0x763   : > { %12118 = vmatpush3.bf16.msra.mxu1 %v12117_v48  ;;  %v9351_v60 = vpop.f32.mrb[38].mxu1  ;;  %v9419_v45 = vmax.f32 %v9411_v24, 0.0  ;;  %v12149_v48 = vpack.c.bf16 %v9489_v34, %v9488_v32  ;;  %v9527_v24 = vld [vmem:[%s15180_s9 + $0x348] sm:$0xff] }
 0x764   : > { %v14856_v61 = vadd.f32 %v9393_v51, %v9351_v60  ;;  %v9353_v62 = vpop.f32.mrb[39].mxu1  ;;  %12120 = vmatprep.subr.bf16.mxu1 %v12119_v58  ;;  %v9376_v51 = vsub.s32 2, %v14795_v0  ;;  %v9469_v0 = vld [vmem:[%s15180_s9 + $0x178] sm:$0xff]  ;;  %v9490_v58 = vld [vmem:[%s15180_s9 + $0x220] sm:$0xff]  ;;  %v12155_v60 = vpack.c.bf16 %v9509_v59, %v9508_v40  ;;  %v9531_v32 = vld [vmem:[%s15180_s9 + $0x368] sm:$0xff] }
 0x765   : > { %v14864_v10 = vadd.f32 %v9397_v53, %v9353_v62  ;;  %v12135_v53 = vpack.c.bf16 %v9483_v22, %v9482_v16  ;;  %v12141_v56 = vpack.c.bf16 %v9469_v0, %v9468_v36  ;;  %v12153_v1 = vpack.c.bf16 %v9491_v39, %v9490_v58  ;;  %v9493_v62 = vld [vmem:[%s15180_s9 + $0x238] sm:$0xff]  ;;  %v9498_v22 = vld [vmem:[%s15180_s9 + $0x260] sm:$0xff]  ;;  %v9520_v0 = vld [vmem:[%s15180_s9 + $0x310] sm:$0xff] }
 0x766   : > { %v9377_v54 = vrot.slane %v14801_v15, %v9376_v51  ;;  %v9487_v15 = vld [vmem:[%s15180_s9 + $0x208] sm:$0xff]  ;;  %v9516_v51 = vld [vmem:[%s15180_s9 + $0x2f0] sm:$0xff]  ;;  %v9418_v36 = vmax.f32 %v14840_v49, 0.0  ;;  %v12179_v55 = vpack.c.bf16 %v9521_v52, %v9520_v0  ;;  %v9522_v49 = vld [vmem:[%s15180_s9 + $0x320] sm:$0xff] }
 0x767   : > { %12122 = vmatpush3.bf16.msra.mxu1 %v12121_v41  ;;  %v12145_v31 = vpack.c.bf16 %v9487_v15, %v9486_v33  ;;  %v9492_v41 = vld [vmem:[%s15180_s9 + $0x230] sm:$0xff]  ;;  %v9421_v20 = vmax.f32 %v14864_v10, 0.0  ;;  %v9526_v15 = vld [vmem:[%s15180_s9 + $0x340] sm:$0xff]  ;;  %v9537_v40 = vld [vmem:[%s15180_s9 + $0x398] sm:$0xff] }
 0x768   : > { %12124 = vmatprep.subr.bf16.mxu1 %v12123_v63  ;;  %v9408_v28 = vadd.f32 %v9377_v54, %v14826_v21  ;;  %v9505_v21 = vld [vmem:[%s15180_s9 + $0x298] sm:$0xff]  ;;  %v9510_v63 = vld [vmem:[%s15180_s9 + $0x2c0] sm:$0xff]  ;;  %v12157_v3 = vpack.c.bf16 %v9493_v62, %v9492_v41  ;;  %v9519_v54 = vld [vmem:[%s15180_s9 + $0x308] sm:$0xff] }
 0x769   : > { %v12147_v7 = vpack.c.bf16 %v9505_v21, %v9504_v30  ;;  %v12159_v42 = vpack.c.bf16 %v9511_v2, %v9510_v63  ;;  %v9524_v10 = vld [vmem:[%s15180_s9 + $0x330] sm:$0xff]  ;;  %v12188_v30 = vpack.c.bf16 %v9527_v24, %v9526_v15  ;;  %v9541_v63 = vld [vmem:[%s15180_s9 + $0x3b8] sm:$0xff] }
 0x76a   : > { %v9416_v37 = vmax.f32 %v9408_v28, 0.0  ;;  %v9528_v21 = vld [vmem:[%s15180_s9 + $0x350] sm:$0xff] }
 0x76b   : > { %12126 = vmatpush3.bf16.msra.mxu1 %v12125_v5  ;;  %v9495_v5 = vld [vmem:[%s15180_s9 + $0x248] sm:$0xff]  ;;  %v9536_v39 = vld [vmem:[%s15180_s9 + $0x390] sm:$0xff] }
 0x76c   : > { %12128 = vmatprep.subr.bf16.mxu1 %v12127_v43  ;;  %v9512_v43 = vld [vmem:[%s15180_s9 + $0x2d0] sm:$0xff]  ;;  %v12161_v44 = vpack.c.bf16 %v9495_v5, %v9494_v4  ;;  %v12203_v59 = vpack.c.bf16 %v9537_v40, %v9536_v39 }
 0x76d   : > { %v12163_v8 = vpack.c.bf16 %v9513_v6, %v9512_v43  ;;  %v9540_v62 = vld [vmem:[%s15180_s9 + $0x3b0] sm:$0xff]  ;;  %v9545_v43 = vld [vmem:[%s15180_s9 + $0x3d8] sm:$0xff] }
 0x76e   : > { %v12209_v2 = vpack.c.bf16 %v9541_v63, %v9540_v62  ;;  %v9544_v5 = vld [vmem:[%s15180_s9 + $0x3d0] sm:$0xff] }
 0x76f   : > { %12130 = vmatpush3.bf16.msra.mxu1 %v12129_v25  ;;  %v9497_v25 = vld [vmem:[%s15180_s9 + $0x258] sm:$0xff]  ;;  %v12215_v6 = vpack.c.bf16 %v9545_v43, %v9544_v5 }
 0x770   : > { %12132 = vmatprep.subr.bf16.mxu1 %v12131_v46  ;;  %v9514_v46 = vld [vmem:[%s15180_s9 + $0x2e0] sm:$0xff]  ;;  %v12165_v14 = vpack.c.bf16 %v9497_v25, %v9496_v9 }
 0x771   : > { %v12167_v16 = vpack.c.bf16 %v9515_v12, %v9514_v46 }
 0x773   : > { %12134 = vmatpush3.bf16.msra.mxu1 %v12133_v23  ;;  %v9499_v23 = vld [vmem:[%s15180_s9 + $0x268] sm:$0xff] }
 0x774   : > { %12136 = vmatprep.subr.bf16.mxu1 %v12135_v53  ;;  %v9517_v53 = vld [vmem:[%s15180_s9 + $0x2f8] sm:$0xff]  ;;  %v12169_v27 = vpack.c.bf16 %v9499_v23, %v9498_v22 }
 0x775   : > { %v12171_v17 = vpack.c.bf16 %v9517_v53, %v9516_v51 }
 0x777   : > { %12138 = vmatpush3.bf16.msra.mxu1 %v12137_v19  ;;  %v9518_v19 = vld [vmem:[%s15180_s9 + $0x300] sm:$0xff] }
 0x778   : > { %12140 = vmatprep.subr.bf16.mxu1 %v12139_v35  ;;  %v12176_v35 = vpack.c.bf16 %v9519_v54, %v9518_v19 }
 0x77b   : > { %12142 = vmatpush3.bf16.msra.mxu1 %v12141_v56  ;;  %v9523_v56 = vld [vmem:[%s15180_s9 + $0x328] sm:$0xff] }
 0x77c   : > { %12144 = vmatprep.subr.bf16.mxu1 %v12143_v29  ;;  %v12182_v28 = vpack.c.bf16 %v9523_v56, %v9522_v49  ;;  %v9525_v29 = vld [vmem:[%s15180_s9 + $0x338] sm:$0xff] }
 0x77d   : > { %v12185_v33 = vpack.c.bf16 %v9525_v29, %v9524_v10 }
 0x77e   : > { %9687 = vmatmul.mubr.f32.vlgmr.msra.gmra.mrb[42].mxu1 %v9416_v37 }
 0x77f   : > { %12146 = vmatpush3.bf16.msra.mxu1 %v12145_v31  ;;  %9756 = vmatprep.mubr.f32.mxu1 %v9419_v45  ;;  %v9529_v31 = vld [vmem:[%s15180_s9 + $0x358] sm:$0xff]  ;;  %v9532_v45 = vld [vmem:[%s15180_s9 + $0x370] sm:$0xff] }
 0x780   : > { %12148 = vmatprep.subr.bf16.mxu1 %v12147_v7  ;;  %v12191_v37 = vpack.c.bf16 %v9529_v31, %v9528_v21  ;;  %v9530_v7 = vld [vmem:[%s15180_s9 + $0x360] sm:$0xff]  ;;  %v12197_v38 = vpack.c.bf16 %v9533_v47, %v9532_v45 }
 0x781   : > { %v12194_v34 = vpack.c.bf16 %v9531_v32, %v9530_v7 }
 0x783   : > { %12150 = vmatpush3.bf16.msra.mxu1 %v12149_v48  ;;  %v9534_v48 = vld [vmem:[%s15180_s9 + $0x380] sm:$0xff] }
 0x784   : > { %12152 = vmatprep.subr.bf16.mxu1 %v12151_v57  ;;  %v9535_v57 = vld [vmem:[%s15180_s9 + $0x388] sm:$0xff] }
 0x785   : > { %v12200_v58 = vpack.c.bf16 %v9535_v57, %v9534_v48 }
 0x787   : > { %12154 = vmatpush3.bf16.msra.mxu1 %v12153_v1  ;;  %v9538_v1 = vld [vmem:[%s15180_s9 + $0x3a0] sm:$0xff] }
 0x788   : > { %12156 = vmatprep.subr.bf16.mxu1 %v12155_v60  ;;  %v9539_v60 = vld [vmem:[%s15180_s9 + $0x3a8] sm:$0xff] }
 0x789   : > { %v12206_v41 = vpack.c.bf16 %v9539_v60, %v9538_v1 }
 0x78b   : > { %12158 = vmatpush3.bf16.msra.mxu1 %v12157_v3  ;;  %v9542_v3 = vld [vmem:[%s15180_s9 + $0x3c0] sm:$0xff] }
 0x78c   : > { %12160 = vmatprep.subr.bf16.mxu1 %v12159_v42  ;;  %v9543_v42 = vld [vmem:[%s15180_s9 + $0x3c8] sm:$0xff] }
 0x78d   : > { %v12212_v4 = vpack.c.bf16 %v9543_v42, %v9542_v3 }
 0x78f   : > { %12162 = vmatpush3.bf16.msra.mxu1 %v12161_v44  ;;  %v9546_v44 = vld [vmem:[%s15180_s9 + $0x3e0] sm:$0xff] }
 0x790   : > { %12164 = vmatprep.subr.bf16.mxu1 %v12163_v8  ;;  %v9420_v8 = vmax.f32 %v14856_v61, 0.0 }
 0x793   : > { %12166 = vmatpush3.bf16.msra.mxu1 %v12165_v14 }
 0x794   : > { %12168 = vmatprep.subr.bf16.mxu1 %v12167_v16 }
 0x797   : > { %12170 = vmatpush3.bf16.msra.mxu1 %v12169_v27 }
 0x798   : > { %12172 = vmatprep.subr.bf16.mxu1 %v12171_v17 }
 0x79b   : > { %12174 = vmatpush3.bf16.msra.mxu1 %v12173_v11 }
 0x79c   : > { %12175 = vmatprep.subr.bf16.mxu1 %v12734_v50 }
 0x79e   : > { %9757 = vmatmul.mubr.f32.vlgmr.msra.gmra.mrb[44].mxu1 %v9418_v36 }
 0x79f   : > { %12177 = vmatpush1.bf16.msra.mxu1 %v12176_v35  ;;  %10420 = vmatprep.mubr.msk.f32.mxu1 %vm9548_vm8, %v9421_v20 }
 0x7a0   : > { %12178 = vmatprep.subr.bf16.mxu1 %v12734_v50 }
 0x7a3   : > { %12180 = vmatpush1.bf16.msra.mxu1 %v12179_v55 }
 0x7a4   : > { %12181 = vmatprep.subr.bf16.mxu1 %v12734_v50 }
 0x7a7   : > { %12183 = vmatpush1.bf16.msra.mxu1 %v12182_v28 }
 0x7a8   : > { %12184 = vmatprep.subr.bf16.mxu1 %v12734_v50 }
 0x7ab   : > { %12186 = vmatpush1.bf16.msra.mxu1 %v12185_v33 }
 0x7ac   : > { %12187 = vmatprep.subr.bf16.mxu1 %v12734_v50 }
 0x7af   : > { %12189 = vmatpush1.bf16.msra.mxu1 %v12188_v30 }
 0x7b0   : > { %12190 = vmatprep.subr.bf16.mxu1 %v12734_v50 }
 0x7b3   : > { %12192 = vmatpush1.bf16.msra.mxu1 %v12191_v37 }
 0x7b4   : > { %12193 = vmatprep.subr.bf16.mxu1 %v12734_v50 }
 0x7b7   : > { %12195 = vmatpush1.bf16.msra.mxu1 %v12194_v34 }
 0x7b8   : > { %12196 = vmatprep.subr.bf16.mxu1 %v12734_v50 }
 0x7bb   : > { %12198 = vmatpush1.bf16.msra.mxu1 %v12197_v38 }
 0x7bc   : > { %12199 = vmatprep.subr.bf16.mxu1 %v12734_v50 }
 0x7bf   : > { %12201 = vmatpush1.bf16.msra.mxu1 %v12200_v58 }
 0x7c0   : > { %12202 = vmatprep.subr.bf16.mxu1 %v12734_v50 }
 0x7c3   : > { %12204 = vmatpush1.bf16.msra.mxu1 %v12203_v59 }
 0x7c4   : > { %12205 = vmatprep.subr.bf16.mxu1 %v12734_v50 }
 0x7c7   : > { %12207 = vmatpush1.bf16.msra.mxu1 %v12206_v41 }
 0x7c8   : > { %12208 = vmatprep.subr.bf16.mxu1 %v12734_v50 }
 0x7cb   : > { %12210 = vmatpush1.bf16.msra.mxu1 %v12209_v2 }
 0x7cc   : > { %12211 = vmatprep.subr.bf16.mxu1 %v12734_v50 }
 0x7cf   : > { %12213 = vmatpush1.bf16.msra.mxu1 %v12212_v4 }
 0x7d0   : > { %12214 = vmatprep.subr.bf16.mxu1 %v12734_v50  ;;  %v9547_v50 = vld [vmem:[%s15181_s10] sm:$0x1] }
 0x7d3   : > { %12216 = vmatpush1.bf16.msra.mxu1 %v12215_v6 }
 0x7d4   : > { %9818 = vmatprep.subr.mxu1 %v15343_v13 }
 0x7d7   : > { %9819 = vmatpush1.msra.mxu1 %v9546_v44 }
 0x7d8   : > { %9827 = vmatmul.mubr.f32.vlgmr.msra.gmra.mrb[46].mxu1 %v9420_v8 }
 0x831   : > { %v10952_v9 = vpop.f32.mrb[40].mxu1 }
 0x832   : > { %v10953_v25 = vpop.f32.mrb[41].mxu1 }
 0x833   : > { %v10954_v46 = vadd.f32 %v10953_v25, %v10952_v9 }
 0x835   : > { %v9619_v13 = vadd.f32 %v10954_v46, %v9547_v50 }
 0x851   : > { %v10987_v12 = vpop.f32.mrb[42].mxu1 }
 0x852   : > { %v10988_v14 = vpop.f32.mrb[43].mxu1 }
 0x853   : > { %v10989_v16 = vadd.f32 %v10988_v14, %v10987_v12 }
 0x855   : > { %v9689_v22 = vadd.f32 %v10989_v16, %v9619_v13 }
 0x871   : > { %v11022_v23 = vpop.f32.mrb[44].mxu1 }
 0x872   : > { %v11023_v51 = vpop.f32.mrb[45].mxu1 }
 0x873   : > { %v11024_v53 = vadd.f32 %v11023_v51, %v11022_v23 }
 0x875   : > { %v9759_v61 = vadd.f32 %v11024_v53, %v9689_v22 }
 0x8ab   : > { %v9828_v27 = vpop.f32.mrb[46].mxu1 }
 0x8ac   : > { %v9829_v17 = vadd.f32 %v9828_v27, %v9759_v61  ;;  %v9830_v18 = vpop.f32.mrb[47].mxu1 }
 0x8ae   : > { %9833 = vst.msk [vmem:[%s378_s15] sm:$0x1] %vm9832_vm9, %v9829_v17 }
 0x8af   : > { %12682 = shalt.err (!%p12679_p3)
}
 0x8b0   : > { %s12683_s13 = scalar_lea.hbm %s15129_s25, 16  ;;  %s12687_s22 = scalar_lea.hbm %s15182_s11, 32 }
 0x8b1   : > { %p12684_p4 = scmp.ne.s32.totalorder %s15129_s25, %s12683_s13  ;;  %p12688_p9 = scmp.lt.u32.totalorder %s15129_s25, %s15182_s11 }
 0x8b2   : > { %p12689_p10 = scmp.lt.u32.totalorder %s12687_s22, %s12683_s13  ;;  %p12691_p12 = scmp.lt.u32.totalorder %s12683_s13, %s15129_s25 }
 0x8b3   : > { %p12685_p7 = pnand %p12684_p4, %p12835_p5 }
 0x8b4   : > { %p12690_p11 = por %p12689_p10, %p12688_p9 }
 0x8b5   : > { %p12686_p8 = pneg %p12685_p7 }
 0x8b6   : > { %p12692_p13 = por %p12691_p12, %p12690_p11 }
 0x8b8   : > { %p12693_p0 = pnand %p12692_p13, %p12686_p8 }
 0x8ba   : > { %12696 = shalt.err (!%p12693_p0)
}
 0x8bb   : > { %12627 = dma.vmem_to_hbm [thread:$0]  (%p12835_p5), %s15131_s16, 16, %s15129_s25, %s9835_s29  }
 0x8bc PF: > { %p12633_p1 = scmp.ge.s32.totalorder %s12731_s20, 2  ;;  %s9859_s0 = sand.u32 1, %s12719_s17  }
 0x8bd   : > { %s9860_s30 = scalar_lea.sflag [#allocation9], %s9859_s0 }
 0x8be   : > { %p12630_p2 = pnand %p12633_p1, %p12839_p6 }
 0x8c0   : > { %12714 = dma.done.wait (!%p12630_p2), %s9860_s30, 16  }
 0x8c1   : > { %12716 = vsyncadd (!%p12630_p2), %s9860_s30, 4294967280  ;;  %p21_p3 = scmp.ge.s32.totalorder %s12822_s23, 4   ;;  %s15344_s17 = smov %s12723_s18 }
 0x8c2   : > { %s15345_s18 = smov %s12727_s19  ;;  %s15346_s19 = smov %s12833_s26 }
 0x8c3   : > { %s15347_s20 = smov %s12822_s23  ;;  %23 = sbr.rel (!%p21_p3) target bundleno = 5 (0x5), region = 171 }
 0x8ca   :  { %9864 = vsyncpa [#allocation9], 1 }
 0x8cb   :  { %9866 = vsyncpa [#allocation9 + $0x1], 1 }

</bundles_post_ra>
